<compile_context>
chip_gen: v6e
topology: v6e:2x2x1
jax: 0.10.0
libtpu: 0.0.40
codegen_flags: <defaults>
</compile_context>

<pallas_src>
import jax
import jax.numpy as jnp
from jax.experimental import pallas as pl
from jax.experimental.pallas import tpu as pltpu


# ---------------------------------------------------------------------------
# Weight folding: PyTorch ConvTranspose2d weight (Cin, Cout, K, K)
#   -> (Cout, K*K*Cin), spatially flipped, tap-major (kh, kw, ci) to match the
#      in-kernel im2col layout.
# ---------------------------------------------------------------------------
def _fold_convt_weight(w_pt):
    cin, cout, k, _ = w_pt.shape
    wf = jnp.transpose(w_pt[:, :, ::-1, ::-1], (2, 3, 0, 1))   # (K, K, Cin, Cout)
    return jnp.transpose(wf.reshape(k * k * cin, cout))        # (Cout, K*K*Cin)


# ---------------------------------------------------------------------------
# Fused 3-layer transposed-conv chain, single pallas_call.
# ---------------------------------------------------------------------------
@jax.jit
def fused_convtranspose_chain(x_chw, w1m, b1, w2m, b2, w3m, b3):
    cin, H, W = x_chw.shape
    K1, K2 = 5, 3
    PAD1 = 3                                # K1 - 1 - padding(=1)
    H_o, W_o = H + 2, W + 2                 # spatial size of all three outputs

    WC = max(32, pl.next_power_of_2(W + 2 * PAD1))     # canvas width (lanes/row)
    L = H_o * WC                                       # GEMM width, layers 1-2
    ROWS3 = H_o if WC >= 128 else pl.cdiv(H_o, 128 // WC) * (128 // WC)
    L3 = ROWS3 * WC                                    # lane-aligned final width
    ROWS_IN = H + 2 * PAD1 + 2                         # input-canvas rows
    ROWS_MID = ROWS3 + 4                               # v1 / v2 canvas rows
    DST = WC + 1                                       # valid image at (1,1)

    c1, c2, c3 = w1m.shape[0], w2m.shape[0], w3m.shape[0]      # 32, 16, 8
    xcol_rows = max(K1 * K1 * cin, K2 * K2 * c1, K2 * K2 * c2)  # 400

    # Embed the input at (PAD1, PAD1) of a zero canvas: the K-1-p zero ring of
    # the transposed conv is part of the canvas (built once, ~48 KB of glue).
    xc = jnp.zeros((cin, ROWS_IN, WC), jnp.float32)
    xc = xc.at[:, PAD1:PAD1 + H, PAD1:PAD1 + W].set(x_chw)
    xc = xc.reshape(cin, ROWS_IN * WC)

    def kernel(x_ref, w1_ref, b1_ref, w2_ref, b2_ref, w3_ref, b3_ref,
               v1_ref, v2_ref, v3_ref, v7_ref, xcol_ref):

        def convt(src_ref, w_ref, b_ref, ksz, n_lanes):
            # Fold the K*K taps into the GEMM contraction: copy lane-shifted
            # canvas views into consecutive sublane blocks of the im2col
            # scratch, then one (Cout, K*K*Cin) @ (K*K*Cin, n_lanes) MXU GEMM.
            cin_l = src_ref.shape[0]
            t = 0
            for kh in range(ksz):
                for kw in range(ksz):
                    base = kh * WC + kw
                    xcol_ref[t * cin_l:(t + 1) * cin_l, :n_lanes] = \
                        src_ref[:, base:base + n_lanes]
                    t += 1
            xcol = xcol_ref[:ksz * ksz * cin_l, :n_lanes]
            y = jnp.dot(w_ref[...], xcol, preferred_element_type=jnp.float32)
            return y + b_ref[...]                      # (Cout, n_lanes)

        # Keep only the W_o valid columns of each canvas row (the other lanes
        # are row-wraparound garbage of the flattened-canvas GEMM).
        lane = jax.lax.broadcasted_iota(jnp.int32, (1, L), 1)
        col_ok = (lane & (WC - 1)) < W_o

        # ---- layer 1: 16 -> 32, k=5, p=1 ---------------------------------
        y1 = jnp.where(col_ok, convt(x_ref, w1_ref, b1_ref, K1, L), 0.0)
        v1_ref[...] = jnp.zeros_like(v1_ref)
        v1_ref[:, DST:DST + L] = y1

        # ---- layer 2: 32 -> 16, k=3, p=1  (input: v1 canvas, in VMEM) ----
        y2 = jnp.where(col_ok, convt(v1_ref, w2_ref, b2_ref, K2, L), 0.0)
        v2_ref[...] = jnp.zeros_like(v2_ref)
        v2_ref[:, DST:DST + L] = y2

        # ---- layer 3: 16 -> 8, k=3, p=1 + fused (x+4).clamp(0,8)/8 -------
        y3 = convt(v2_ref, w3_ref, b3_ref, K2, L3)
        v3_ref[...] = y3
        v7_ref[...] = jnp.clip(y3 + 4.0, 0.0, 8.0) * 0.125

    full = lambda shape: pl.BlockSpec(shape, lambda i: (0, 0))
    out_shape = (
        jax.ShapeDtypeStruct((c1, ROWS_MID * WC), jnp.float32),   # v1 canvas
        jax.ShapeDtypeStruct((c2, ROWS_MID * WC), jnp.float32),   # v2 canvas
        jax.ShapeDtypeStruct((c3, L3), jnp.float32),              # v3
        jax.ShapeDtypeStruct((c3, L3), jnp.float32),              # v7
    )
    v1c, v2c, v3c, v7c = pl.pallas_call(
        kernel,
        out_shape=out_shape,
        grid_spec=pltpu.PrefetchScalarGridSpec(
            num_scalar_prefetch=0,
            grid=(1,),
            in_specs=[full(xc.shape), full(w1m.shape), full(b1.shape),
                      full(w2m.shape), full(b2.shape),
                      full(w3m.shape), full(b3.shape)],
            out_specs=tuple(full(s.shape) for s in out_shape),
            scratch_shapes=[pltpu.VMEM((xcol_rows, L3), jnp.float32)]),
        compiler_params=pltpu.CompilerParams(
            dimension_semantics=("arbitrary",)),
    )(xc, w1m, b1, w2m, b2, w3m, b3)

    # Slice the valid H_o x W_o images out of the canvases (already
    # channels-first -> NCHW-ready without any transpose).
    v1 = v1c.reshape(c1, ROWS_MID, WC)[:, 1:1 + H_o, 1:1 + W_o]
    v2 = v2c.reshape(c2, ROWS_MID, WC)[:, 1:1 + H_o, 1:1 + W_o]
    v3 = v3c.reshape(c3, ROWS3, WC)[:, :H_o, :W_o]
    v7 = v7c.reshape(c3, ROWS3, WC)[:, :H_o, :W_o]
    return v1, v2, v3, v7


# ---------------------------------------------------------------------------
# Model (parameters initialized deterministically in-script)
# ---------------------------------------------------------------------------
class Model:
    def __init__(self, key):
        k = jax.random.split(key, 6)

        def init(kw, kb, cin, cout, ksz):
            scale = 1.0 / (cin * ksz * ksz) ** 0.5
            w = jax.random.uniform(kw, (cin, cout, ksz, ksz), jnp.float32,
                                   -scale, scale)
            b = jax.random.uniform(kb, (cout,), jnp.float32, -scale, scale)
            return w, b

        # conv_transpose : 16 -> 32, k=5, p=1
        self.w1, self.b1 = init(k[0], k[1], 16, 32, 5)
        # conv_transpose2: (corrected) 32 -> 16, k=3, p=1
        self.w2, self.b2 = init(k[2], k[3], 32, 16, 3)
        # conv_transpose3: (corrected) 16 -> 8,  k=3, p=1
        self.w3, self.b3 = init(k[4], k[5], 16, 8, 3)

        # folded GEMM weights / column biases consumed by the Pallas kernel
        self.w1m, self.b1c = _fold_convt_weight(self.w1), self.b1.reshape(-1, 1)
        self.w2m, self.b2c = _fold_convt_weight(self.w2), self.b2.reshape(-1, 1)
        self.w3m, self.b3c = _fold_convt_weight(self.w3), self.b3.reshape(-1, 1)

    def __call__(self, x_nchw):
        assert x_nchw.shape[0] == 1, "batch=1, matching the reference input"
        v1, v2, v3, v7 = fused_convtranspose_chain(
            x_nchw[0], self.w1m, self.b1c, self.w2m, self.b2c,
            self.w3m, self.b3c)
        return v7[None], v3[None], v2[None], v1[None]


# ---------------------------------------------------------------------------
# Pure-JAX reference for the full network (flip-and-correlate formulation).
# ---------------------------------------------------------------------------
def _ref_forward(x_nchw, model):
    def convt(x_nhwc, w_pt, b, p):
        _, _, k, _ = w_pt.shape
        pad = k - 1 - p
        wf = jnp.transpose(w_pt[:, :, ::-1, ::-1], (2, 3, 0, 1))  # HWIO
        y = jax.lax.conv_general_dilated(
            x_nhwc, wf, (1, 1), [(pad, pad), (pad, pad)],
            dimension_numbers=("NHWC", "HWIO", "NHWC"),
            precision=jax.lax.Precision.HIGHEST)
        return y + b

    x = jnp.transpose(x_nchw, (0, 2, 3, 1))
    v1 = convt(x, model.w1, model.b1, 1)
    v2 = convt(v1, model.w2, model.b2, 1)
    v3 = convt(v2, model.w3, model.b3, 1)
    v7 = jnp.clip(v3 + 4.0, 0.0, 8.0) / 8.0
    to_nchw = lambda a: jnp.transpose(a, (0, 3, 1, 2))
    return to_nchw(v7), to_nchw(v3), to_nchw(v2), to_nchw(v1)


if __name__ == "__main__":
    key = jax.random.PRNGKey(0)
    k_model, k_x = jax.random.split(key)

    model = Model(k_model)
    # Small input consistent with the module: NCHW, 16 channels, 16x16 spatial.
    x1 = jax.random.normal(k_x, (1, 16, 16, 16), jnp.float32)

    v7, v3, v2, v1 = model(x1)
    jax.block_until_ready((v7, v3, v2, v1))

    assert v1.shape == (1, 32, 18, 18)
    assert v2.shape == (1, 16, 18, 18)
    assert v3.shape == (1, 8, 18, 18)
    assert v7.shape == (1, 8, 18, 18)

    # Full-network reference check (all four outputs, per reviewer request).
    r7, r3, r2, r1 = _ref_forward(x1, model)
    for got, ref, name in ((v1, r1, "v1"), (v2, r2, "v2"),
                           (v3, r3, "v3"), (v7, r7, "v7")):
        assert jnp.allclose(got, ref, atol=1e-2, rtol=1e-2), name

    print("KERNEL_OK")
</pallas_src>

<mosaic_0001>
module attributes {stable_mosaic.version = 11 : i64} {
  func.func @kernel(%arg0: i32, %arg1: memref<16x768xf32, #tpu.memory_space<vmem>>, %arg2: memref<32x400xf32, #tpu.memory_space<vmem>>, %arg3: memref<32x1xf32, #tpu.memory_space<vmem>>, %arg4: memref<16x288xf32, #tpu.memory_space<vmem>>, %arg5: memref<16x1xf32, #tpu.memory_space<vmem>>, %arg6: memref<8x144xf32, #tpu.memory_space<vmem>>, %arg7: memref<8x1xf32, #tpu.memory_space<vmem>>, %arg8: memref<32x768xf32, #tpu.memory_space<vmem>>, %arg9: memref<16x768xf32, #tpu.memory_space<vmem>>, %arg10: memref<8x640xf32, #tpu.memory_space<vmem>>, %arg11: memref<8x640xf32, #tpu.memory_space<vmem>>, %arg12: memref<400x640xf32, #tpu.memory_space<vmem>>) attributes {dimension_semantics = [#tpu.dimension_semantics<arbitrary>], iteration_bounds = array<i64: 1>, scalar_prefetch = 0 : i64, scratch_operands = 1 : i64, tpu.core_type = #tpu.core_type<tc>, window_params = [{pipeline_mode = #tpu.pipeline_mode<synchronous>, transform_indices = @transform_0, window_bounds = array<i64: 16, 768>}, {pipeline_mode = #tpu.pipeline_mode<synchronous>, transform_indices = @transform_1, window_bounds = array<i64: 32, 400>}, {pipeline_mode = #tpu.pipeline_mode<synchronous>, transform_indices = @transform_2, window_bounds = array<i64: 32, 1>}, {pipeline_mode = #tpu.pipeline_mode<synchronous>, transform_indices = @transform_3, window_bounds = array<i64: 16, 288>}, {pipeline_mode = #tpu.pipeline_mode<synchronous>, transform_indices = @transform_4, window_bounds = array<i64: 16, 1>}, {pipeline_mode = #tpu.pipeline_mode<synchronous>, transform_indices = @transform_5, window_bounds = array<i64: 8, 144>}, {pipeline_mode = #tpu.pipeline_mode<synchronous>, transform_indices = @transform_6, window_bounds = array<i64: 8, 1>}, {pipeline_mode = #tpu.pipeline_mode<synchronous>, transform_indices = @transform_7, window_bounds = array<i64: 32, 768>}, {pipeline_mode = #tpu.pipeline_mode<synchronous>, transform_indices = @transform_8, window_bounds = array<i64: 16, 768>}, {pipeline_mode = #tpu.pipeline_mode<synchronous>, transform_indices = @transform_9, window_bounds = array<i64: 8, 640>}, {pipeline_mode = #tpu.pipeline_mode<synchronous>, transform_indices = @transform_10, window_bounds = array<i64: 8, 640>}]} {
    %0 = tpu.iota {dimensions = array<i32: 1>} : vector<1x576xi32>
    %c31_i32 = arith.constant 31 : i32
    %1 = vector.broadcast %c31_i32 : i32 to vector<1x576xi32>
    %2 = arith.andi %0, %1 : vector<1x576xi32>
    %c18_i32 = arith.constant 18 : i32
    %3 = vector.broadcast %c18_i32 : i32 to vector<1x576xi32>
    %4 = arith.cmpi slt, %2, %3 : vector<1x576xi32>
    %c0 = arith.constant 0 : index
    %c0_0 = arith.constant 0 : index
    %5 = vector.load %arg1[%c0, %c0_0] : memref<16x768xf32, #tpu.memory_space<vmem>>, vector<16x576xf32>
    %c0_1 = arith.constant 0 : index
    %c0_2 = arith.constant 0 : index
    %6 = vector.load %arg12[%c0_1, %c0_2] : memref<400x640xf32, #tpu.memory_space<vmem>>, vector<16x576xf32>
    tpu.vector_store %arg12[%c0_1, %c0_2], %5 {strides = array<i32>} : memref<400x640xf32, #tpu.memory_space<vmem>>, vector<16x576xf32>,
    %c0_3 = arith.constant 0 : index
    %c1 = arith.constant 1 : index
    %7 = vector.load %arg1[%c0_3, %c1] : memref<16x768xf32, #tpu.memory_space<vmem>>, vector<16x576xf32>
    %c16 = arith.constant 16 : index
    %c0_4 = arith.constant 0 : index
    %8 = vector.load %arg12[%c16, %c0_4] : memref<400x640xf32, #tpu.memory_space<vmem>>, vector<16x576xf32>
    tpu.vector_store %arg12[%c16, %c0_4], %7 {strides = array<i32>} : memref<400x640xf32, #tpu.memory_space<vmem>>, vector<16x576xf32>,
    %c0_5 = arith.constant 0 : index
    %c2 = arith.constant 2 : index
    %9 = vector.load %arg1[%c0_5, %c2] : memref<16x768xf32, #tpu.memory_space<vmem>>, vector<16x576xf32>
    %c32 = arith.constant 32 : index
    %c0_6 = arith.constant 0 : index
    %10 = vector.load %arg12[%c32, %c0_6] : memref<400x640xf32, #tpu.memory_space<vmem>>, vector<16x576xf32>
    tpu.vector_store %arg12[%c32, %c0_6], %9 {strides = array<i32>} : memref<400x640xf32, #tpu.memory_space<vmem>>, vector<16x576xf32>,
    %c0_7 = arith.constant 0 : index
    %c3 = arith.constant 3 : index
    %11 = vector.load %arg1[%c0_7, %c3] : memref<16x768xf32, #tpu.memory_space<vmem>>, vector<16x576xf32>
    %c48 = arith.constant 48 : index
    %c0_8 = arith.constant 0 : index
    %12 = vector.load %arg12[%c48, %c0_8] : memref<400x640xf32, #tpu.memory_space<vmem>>, vector<16x576xf32>
    tpu.vector_store %arg12[%c48, %c0_8], %11 {strides = array<i32>} : memref<400x640xf32, #tpu.memory_space<vmem>>, vector<16x576xf32>,
    %c0_9 = arith.constant 0 : index
    %c4 = arith.constant 4 : index
    %13 = vector.load %arg1[%c0_9, %c4] : memref<16x768xf32, #tpu.memory_space<vmem>>, vector<16x576xf32>
    %c64 = arith.constant 64 : index
    %c0_10 = arith.constant 0 : index
    %14 = vector.load %arg12[%c64, %c0_10] : memref<400x640xf32, #tpu.memory_space<vmem>>, vector<16x576xf32>
    tpu.vector_store %arg12[%c64, %c0_10], %13 {strides = array<i32>} : memref<400x640xf32, #tpu.memory_space<vmem>>, vector<16x576xf32>,
    %c0_11 = arith.constant 0 : index
    %c32_12 = arith.constant 32 : index
    %15 = vector.load %arg1[%c0_11, %c32_12] : memref<16x768xf32, #tpu.memory_space<vmem>>, vector<16x576xf32>
    %c80 = arith.constant 80 : index
    %c0_13 = arith.constant 0 : index
    %16 = vector.load %arg12[%c80, %c0_13] : memref<400x640xf32, #tpu.memory_space<vmem>>, vector<16x576xf32>
    tpu.vector_store %arg12[%c80, %c0_13], %15 {strides = array<i32>} : memref<400x640xf32, #tpu.memory_space<vmem>>, vector<16x576xf32>,
    %c0_14 = arith.constant 0 : index
    %c33 = arith.constant 33 : index
    %17 = vector.load %arg1[%c0_14, %c33] : memref<16x768xf32, #tpu.memory_space<vmem>>, vector<16x576xf32>
    %c96 = arith.constant 96 : index
    %c0_15 = arith.constant 0 : index
    %18 = vector.load %arg12[%c96, %c0_15] : memref<400x640xf32, #tpu.memory_space<vmem>>, vector<16x576xf32>
    tpu.vector_store %arg12[%c96, %c0_15], %17 {strides = array<i32>} : memref<400x640xf32, #tpu.memory_space<vmem>>, vector<16x576xf32>,
    %c0_16 = arith.constant 0 : index
    %c34 = arith.constant 34 : index
    %19 = vector.load %arg1[%c0_16, %c34] : memref<16x768xf32, #tpu.memory_space<vmem>>, vector<16x576xf32>
    %c112 = arith.constant 112 : index
    %c0_17 = arith.constant 0 : index
    %20 = vector.load %arg12[%c112, %c0_17] : memref<400x640xf32, #tpu.memory_space<vmem>>, vector<16x576xf32>
    tpu.vector_store %arg12[%c112, %c0_17], %19 {strides = array<i32>} : memref<400x640xf32, #tpu.memory_space<vmem>>, vector<16x576xf32>,
    %c0_18 = arith.constant 0 : index
    %c35 = arith.constant 35 : index
    %21 = vector.load %arg1[%c0_18, %c35] : memref<16x768xf32, #tpu.memory_space<vmem>>, vector<16x576xf32>
    %c128 = arith.constant 128 : index
    %c0_19 = arith.constant 0 : index
    %22 = vector.load %arg12[%c128, %c0_19] : memref<400x640xf32, #tpu.memory_space<vmem>>, vector<16x576xf32>
    tpu.vector_store %arg12[%c128, %c0_19], %21 {strides = array<i32>} : memref<400x640xf32, #tpu.memory_space<vmem>>, vector<16x576xf32>,
    %c0_20 = arith.constant 0 : index
    %c36 = arith.constant 36 : index
    %23 = vector.load %arg1[%c0_20, %c36] : memref<16x768xf32, #tpu.memory_space<vmem>>, vector<16x576xf32>
    %c144 = arith.constant 144 : index
    %c0_21 = arith.constant 0 : index
    %24 = vector.load %arg12[%c144, %c0_21] : memref<400x640xf32, #tpu.memory_space<vmem>>, vector<16x576xf32>
    tpu.vector_store %arg12[%c144, %c0_21], %23 {strides = array<i32>} : memref<400x640xf32, #tpu.memory_space<vmem>>, vector<16x576xf32>,
    %c0_22 = arith.constant 0 : index
    %c64_23 = arith.constant 64 : index
    %25 = vector.load %arg1[%c0_22, %c64_23] : memref<16x768xf32, #tpu.memory_space<vmem>>, vector<16x576xf32>
    %c160 = arith.constant 160 : index
    %c0_24 = arith.constant 0 : index
    %26 = vector.load %arg12[%c160, %c0_24] : memref<400x640xf32, #tpu.memory_space<vmem>>, vector<16x576xf32>
    tpu.vector_store %arg12[%c160, %c0_24], %25 {strides = array<i32>} : memref<400x640xf32, #tpu.memory_space<vmem>>, vector<16x576xf32>,
    %c0_25 = arith.constant 0 : index
    %c65 = arith.constant 65 : index
    %27 = vector.load %arg1[%c0_25, %c65] : memref<16x768xf32, #tpu.memory_space<vmem>>, vector<16x576xf32>
    %c176 = arith.constant 176 : index
    %c0_26 = arith.constant 0 : index
    %28 = vector.load %arg12[%c176, %c0_26] : memref<400x640xf32, #tpu.memory_space<vmem>>, vector<16x576xf32>
    tpu.vector_store %arg12[%c176, %c0_26], %27 {strides = array<i32>} : memref<400x640xf32, #tpu.memory_space<vmem>>, vector<16x576xf32>,
    %c0_27 = arith.constant 0 : index
    %c66 = arith.constant 66 : index
    %29 = vector.load %arg1[%c0_27, %c66] : memref<16x768xf32, #tpu.memory_space<vmem>>, vector<16x576xf32>
    %c192 = arith.constant 192 : index
    %c0_28 = arith.constant 0 : index
    %30 = vector.load %arg12[%c192, %c0_28] : memref<400x640xf32, #tpu.memory_space<vmem>>, vector<16x576xf32>
    tpu.vector_store %arg12[%c192, %c0_28], %29 {strides = array<i32>} : memref<400x640xf32, #tpu.memory_space<vmem>>, vector<16x576xf32>,
    %c0_29 = arith.constant 0 : index
    %c67 = arith.constant 67 : index
    %31 = vector.load %arg1[%c0_29, %c67] : memref<16x768xf32, #tpu.memory_space<vmem>>, vector<16x576xf32>
    %c208 = arith.constant 208 : index
    %c0_30 = arith.constant 0 : index
    %32 = vector.load %arg12[%c208, %c0_30] : memref<400x640xf32, #tpu.memory_space<vmem>>, vector<16x576xf32>
    tpu.vector_store %arg12[%c208, %c0_30], %31 {strides = array<i32>} : memref<400x640xf32, #tpu.memory_space<vmem>>, vector<16x576xf32>,
    %c0_31 = arith.constant 0 : index
    %c68 = arith.constant 68 : index
    %33 = vector.load %arg1[%c0_31, %c68] : memref<16x768xf32, #tpu.memory_space<vmem>>, vector<16x576xf32>
    %c224 = arith.constant 224 : index
    %c0_32 = arith.constant 0 : index
    %34 = vector.load %arg12[%c224, %c0_32] : memref<400x640xf32, #tpu.memory_space<vmem>>, vector<16x576xf32>
    tpu.vector_store %arg12[%c224, %c0_32], %33 {strides = array<i32>} : memref<400x640xf32, #tpu.memory_space<vmem>>, vector<16x576xf32>,
    %c0_33 = arith.constant 0 : index
    %c96_34 = arith.constant 96 : index
    %35 = vector.load %arg1[%c0_33, %c96_34] : memref<16x768xf32, #tpu.memory_space<vmem>>, vector<16x576xf32>
    %c240 = arith.constant 240 : index
    %c0_35 = arith.constant 0 : index
    %36 = vector.load %arg12[%c240, %c0_35] : memref<400x640xf32, #tpu.memory_space<vmem>>, vector<16x576xf32>
    tpu.vector_store %arg12[%c240, %c0_35], %35 {strides = array<i32>} : memref<400x640xf32, #tpu.memory_space<vmem>>, vector<16x576xf32>,
    %c0_36 = arith.constant 0 : index
    %c97 = arith.constant 97 : index
    %37 = vector.load %arg1[%c0_36, %c97] : memref<16x768xf32, #tpu.memory_space<vmem>>, vector<16x576xf32>
    %c256 = arith.constant 256 : index
    %c0_37 = arith.constant 0 : index
    %38 = vector.load %arg12[%c256, %c0_37] : memref<400x640xf32, #tpu.memory_space<vmem>>, vector<16x576xf32>
    tpu.vector_store %arg12[%c256, %c0_37], %37 {strides = array<i32>} : memref<400x640xf32, #tpu.memory_space<vmem>>, vector<16x576xf32>,
    %c0_38 = arith.constant 0 : index
    %c98 = arith.constant 98 : index
    %39 = vector.load %arg1[%c0_38, %c98] : memref<16x768xf32, #tpu.memory_space<vmem>>, vector<16x576xf32>
    %c272 = arith.constant 272 : index
    %c0_39 = arith.constant 0 : index
    %40 = vector.load %arg12[%c272, %c0_39] : memref<400x640xf32, #tpu.memory_space<vmem>>, vector<16x576xf32>
    tpu.vector_store %arg12[%c272, %c0_39], %39 {strides = array<i32>} : memref<400x640xf32, #tpu.memory_space<vmem>>, vector<16x576xf32>,
    %c0_40 = arith.constant 0 : index
    %c99 = arith.constant 99 : index
    %41 = vector.load %arg1[%c0_40, %c99] : memref<16x768xf32, #tpu.memory_space<vmem>>, vector<16x576xf32>
    %c288 = arith.constant 288 : index
    %c0_41 = arith.constant 0 : index
    %42 = vector.load %arg12[%c288, %c0_41] : memref<400x640xf32, #tpu.memory_space<vmem>>, vector<16x576xf32>
    tpu.vector_store %arg12[%c288, %c0_41], %41 {strides = array<i32>} : memref<400x640xf32, #tpu.memory_space<vmem>>, vector<16x576xf32>,
    %c0_42 = arith.constant 0 : index
    %c100 = arith.constant 100 : index
    %43 = vector.load %arg1[%c0_42, %c100] : memref<16x768xf32, #tpu.memory_space<vmem>>, vector<16x576xf32>
    %c304 = arith.constant 304 : index
    %c0_43 = arith.constant 0 : index
    %44 = vector.load %arg12[%c304, %c0_43] : memref<400x640xf32, #tpu.memory_space<vmem>>, vector<16x576xf32>
    tpu.vector_store %arg12[%c304, %c0_43], %43 {strides = array<i32>} : memref<400x640xf32, #tpu.memory_space<vmem>>, vector<16x576xf32>,
    %c0_44 = arith.constant 0 : index
    %c128_45 = arith.constant 128 : index
    %45 = vector.load %arg1[%c0_44, %c128_45] : memref<16x768xf32, #tpu.memory_space<vmem>>, vector<16x576xf32>
    %c320 = arith.constant 320 : index
    %c0_46 = arith.constant 0 : index
    %46 = vector.load %arg12[%c320, %c0_46] : memref<400x640xf32, #tpu.memory_space<vmem>>, vector<16x576xf32>
    tpu.vector_store %arg12[%c320, %c0_46], %45 {strides = array<i32>} : memref<400x640xf32, #tpu.memory_space<vmem>>, vector<16x576xf32>,
    %c0_47 = arith.constant 0 : index
    %c129 = arith.constant 129 : index
    %47 = vector.load %arg1[%c0_47, %c129] : memref<16x768xf32, #tpu.memory_space<vmem>>, vector<16x576xf32>
    %c336 = arith.constant 336 : index
    %c0_48 = arith.constant 0 : index
    %48 = vector.load %arg12[%c336, %c0_48] : memref<400x640xf32, #tpu.memory_space<vmem>>, vector<16x576xf32>
    tpu.vector_store %arg12[%c336, %c0_48], %47 {strides = array<i32>} : memref<400x640xf32, #tpu.memory_space<vmem>>, vector<16x576xf32>,
    %c0_49 = arith.constant 0 : index
    %c130 = arith.constant 130 : index
    %49 = vector.load %arg1[%c0_49, %c130] : memref<16x768xf32, #tpu.memory_space<vmem>>, vector<16x576xf32>
    %c352 = arith.constant 352 : index
    %c0_50 = arith.constant 0 : index
    %50 = vector.load %arg12[%c352, %c0_50] : memref<400x640xf32, #tpu.memory_space<vmem>>, vector<16x576xf32>
    tpu.vector_store %arg12[%c352, %c0_50], %49 {strides = array<i32>} : memref<400x640xf32, #tpu.memory_space<vmem>>, vector<16x576xf32>,
    %c0_51 = arith.constant 0 : index
    %c131 = arith.constant 131 : index
    %51 = vector.load %arg1[%c0_51, %c131] : memref<16x768xf32, #tpu.memory_space<vmem>>, vector<16x576xf32>
    %c368 = arith.constant 368 : index
    %c0_52 = arith.constant 0 : index
    %52 = vector.load %arg12[%c368, %c0_52] : memref<400x640xf32, #tpu.memory_space<vmem>>, vector<16x576xf32>
    tpu.vector_store %arg12[%c368, %c0_52], %51 {strides = array<i32>} : memref<400x640xf32, #tpu.memory_space<vmem>>, vector<16x576xf32>,
    %c0_53 = arith.constant 0 : index
    %c132 = arith.constant 132 : index
    %53 = vector.load %arg1[%c0_53, %c132] : memref<16x768xf32, #tpu.memory_space<vmem>>, vector<16x576xf32>
    %c384 = arith.constant 384 : index
    %c0_54 = arith.constant 0 : index
    %54 = vector.load %arg12[%c384, %c0_54] : memref<400x640xf32, #tpu.memory_space<vmem>>, vector<16x576xf32>
    tpu.vector_store %arg12[%c384, %c0_54], %53 {strides = array<i32>} : memref<400x640xf32, #tpu.memory_space<vmem>>, vector<16x576xf32>,
    %c0_55 = arith.constant 0 : index
    %c0_56 = arith.constant 0 : index
    %55 = vector.load %arg12[%c0_55, %c0_56] : memref<400x640xf32, #tpu.memory_space<vmem>>, vector<400x576xf32>
    %c0_57 = arith.constant 0 : index
    %c0_58 = arith.constant 0 : index
    %56 = vector.load %arg2[%c0_57, %c0_58] : memref<32x400xf32, #tpu.memory_space<vmem>>, vector<32x400xf32>
    %cst = arith.constant dense<0.000000e+00> : vector<32x576xf32>
    %57 = tpu.matmul %56, %55, %cst {dimension_numbers = #tpu.dot_dimension_numbers<[1], [0], [0], [1], [0, 0, 1, 1], [], []>} : vector<32x400xf32>, vector<400x576xf32>, vector<32x576xf32> -> vector<32x576xf32>
    %c0_59 = arith.constant 0 : index
    %c0_60 = arith.constant 0 : index
    %58 = vector.load %arg3[%c0_59, %c0_60] : memref<32x1xf32, #tpu.memory_space<vmem>>, vector<32x1xf32>
    %59 = vector.broadcast %58 : vector<32x1xf32> to vector<32x576xf32>
    %60 = arith.addf %57, %59 : vector<32x576xf32>
    %cst_61 = arith.constant 0.000000e+00 : f32
    %61 = vector.shape_cast %4 : vector<1x576xi1> to vector<1x576xi1>
    %62 = vector.broadcast %61 : vector<1x576xi1> to vector<32x576xi1>
    %63 = vector.broadcast %cst_61 : f32 to vector<32x576xf32>
    %64 = arith.select %62, %60, %63 : vector<32x576xi1>, vector<32x576xf32>
    %cst_62 = arith.constant 0.000000e+00 : f32
    %65 = vector.broadcast %cst_62 : f32 to vector<32x768xf32>
    %c0_63 = arith.constant 0 : index
    %c0_64 = arith.constant 0 : index
    %66 = vector.load %arg8[%c0_63, %c0_64] : memref<32x768xf32, #tpu.memory_space<vmem>>, vector<32x768xf32>
    tpu.vector_store %arg8[%c0_63, %c0_64], %65 {strides = array<i32>} : memref<32x768xf32, #tpu.memory_space<vmem>>, vector<32x768xf32>,
    %c0_65 = arith.constant 0 : index
    %c33_66 = arith.constant 33 : index
    %67 = vector.load %arg8[%c0_65, %c33_66] : memref<32x768xf32, #tpu.memory_space<vmem>>, vector<32x576xf32>
    tpu.vector_store %arg8[%c0_65, %c33_66], %64 {strides = array<i32>} : memref<32x768xf32, #tpu.memory_space<vmem>>, vector<32x576xf32>,
    %c0_67 = arith.constant 0 : index
    %c0_68 = arith.constant 0 : index
    %68 = vector.load %arg8[%c0_67, %c0_68] : memref<32x768xf32, #tpu.memory_space<vmem>>, vector<32x576xf32>
    %c0_69 = arith.constant 0 : index
    %c0_70 = arith.constant 0 : index
    %69 = vector.load %arg12[%c0_69, %c0_70] : memref<400x640xf32, #tpu.memory_space<vmem>>, vector<32x576xf32>
    tpu.vector_store %arg12[%c0_69, %c0_70], %68 {strides = array<i32>} : memref<400x640xf32, #tpu.memory_space<vmem>>, vector<32x576xf32>,
    %c0_71 = arith.constant 0 : index
    %c1_72 = arith.constant 1 : index
    %70 = vector.load %arg8[%c0_71, %c1_72] : memref<32x768xf32, #tpu.memory_space<vmem>>, vector<32x576xf32>
    %c32_73 = arith.constant 32 : index
    %c0_74 = arith.constant 0 : index
    %71 = vector.load %arg12[%c32_73, %c0_74] : memref<400x640xf32, #tpu.memory_space<vmem>>, vector<32x576xf32>
    tpu.vector_store %arg12[%c32_73, %c0_74], %70 {strides = array<i32>} : memref<400x640xf32, #tpu.memory_space<vmem>>, vector<32x576xf32>,
    %c0_75 = arith.constant 0 : index
    %c2_76 = arith.constant 2 : index
    %72 = vector.load %arg8[%c0_75, %c2_76] : memref<32x768xf32, #tpu.memory_space<vmem>>, vector<32x576xf32>
    %c64_77 = arith.constant 64 : index
    %c0_78 = arith.constant 0 : index
    %73 = vector.load %arg12[%c64_77, %c0_78] : memref<400x640xf32, #tpu.memory_space<vmem>>, vector<32x576xf32>
    tpu.vector_store %arg12[%c64_77, %c0_78], %72 {strides = array<i32>} : memref<400x640xf32, #tpu.memory_space<vmem>>, vector<32x576xf32>,
    %c0_79 = arith.constant 0 : index
    %c32_80 = arith.constant 32 : index
    %74 = vector.load %arg8[%c0_79, %c32_80] : memref<32x768xf32, #tpu.memory_space<vmem>>, vector<32x576xf32>
    %c96_81 = arith.constant 96 : index
    %c0_82 = arith.constant 0 : index
    %75 = vector.load %arg12[%c96_81, %c0_82] : memref<400x640xf32, #tpu.memory_space<vmem>>, vector<32x576xf32>
    tpu.vector_store %arg12[%c96_81, %c0_82], %74 {strides = array<i32>} : memref<400x640xf32, #tpu.memory_space<vmem>>, vector<32x576xf32>,
    %c0_83 = arith.constant 0 : index
    %c33_84 = arith.constant 33 : index
    %76 = vector.load %arg8[%c0_83, %c33_84] : memref<32x768xf32, #tpu.memory_space<vmem>>, vector<32x576xf32>
    %c128_85 = arith.constant 128 : index
    %c0_86 = arith.constant 0 : index
    %77 = vector.load %arg12[%c128_85, %c0_86] : memref<400x640xf32, #tpu.memory_space<vmem>>, vector<32x576xf32>
    tpu.vector_store %arg12[%c128_85, %c0_86], %76 {strides = array<i32>} : memref<400x640xf32, #tpu.memory_space<vmem>>, vector<32x576xf32>,
    %c0_87 = arith.constant 0 : index
    %c34_88 = arith.constant 34 : index
    %78 = vector.load %arg8[%c0_87, %c34_88] : memref<32x768xf32, #tpu.memory_space<vmem>>, vector<32x576xf32>
    %c160_89 = arith.constant 160 : index
    %c0_90 = arith.constant 0 : index
    %79 = vector.load %arg12[%c160_89, %c0_90] : memref<400x640xf32, #tpu.memory_space<vmem>>, vector<32x576xf32>
    tpu.vector_store %arg12[%c160_89, %c0_90], %78 {strides = array<i32>} : memref<400x640xf32, #tpu.memory_space<vmem>>, vector<32x576xf32>,
    %c0_91 = arith.constant 0 : index
    %c64_92 = arith.constant 64 : index
    %80 = vector.load %arg8[%c0_91, %c64_92] : memref<32x768xf32, #tpu.memory_space<vmem>>, vector<32x576xf32>
    %c192_93 = arith.constant 192 : index
    %c0_94 = arith.constant 0 : index
    %81 = vector.load %arg12[%c192_93, %c0_94] : memref<400x640xf32, #tpu.memory_space<vmem>>, vector<32x576xf32>
    tpu.vector_store %arg12[%c192_93, %c0_94], %80 {strides = array<i32>} : memref<400x640xf32, #tpu.memory_space<vmem>>, vector<32x576xf32>,
    %c0_95 = arith.constant 0 : index
    %c65_96 = arith.constant 65 : index
    %82 = vector.load %arg8[%c0_95, %c65_96] : memref<32x768xf32, #tpu.memory_space<vmem>>, vector<32x576xf32>
    %c224_97 = arith.constant 224 : index
    %c0_98 = arith.constant 0 : index
    %83 = vector.load %arg12[%c224_97, %c0_98] : memref<400x640xf32, #tpu.memory_space<vmem>>, vector<32x576xf32>
    tpu.vector_store %arg12[%c224_97, %c0_98], %82 {strides = array<i32>} : memref<400x640xf32, #tpu.memory_space<vmem>>, vector<32x576xf32>,
    %c0_99 = arith.constant 0 : index
    %c66_100 = arith.constant 66 : index
    %84 = vector.load %arg8[%c0_99, %c66_100] : memref<32x768xf32, #tpu.memory_space<vmem>>, vector<32x576xf32>
    %c256_101 = arith.constant 256 : index
    %c0_102 = arith.constant 0 : index
    %85 = vector.load %arg12[%c256_101, %c0_102] : memref<400x640xf32, #tpu.memory_space<vmem>>, vector<32x576xf32>
    tpu.vector_store %arg12[%c256_101, %c0_102], %84 {strides = array<i32>} : memref<400x640xf32, #tpu.memory_space<vmem>>, vector<32x576xf32>,
    %c0_103 = arith.constant 0 : index
    %c0_104 = arith.constant 0 : index
    %86 = vector.load %arg12[%c0_103, %c0_104] : memref<400x640xf32, #tpu.memory_space<vmem>>, vector<288x576xf32>
    %c0_105 = arith.constant 0 : index
    %c0_106 = arith.constant 0 : index
    %87 = vector.load %arg4[%c0_105, %c0_106] : memref<16x288xf32, #tpu.memory_space<vmem>>, vector<16x288xf32>
    %cst_107 = arith.constant dense<0.000000e+00> : vector<16x576xf32>
    %88 = tpu.matmul %87, %86, %cst_107 {dimension_numbers = #tpu.dot_dimension_numbers<[1], [0], [0], [1], [0, 0, 1, 1], [], []>} : vector<16x288xf32>, vector<288x576xf32>, vector<16x576xf32> -> vector<16x576xf32>
    %c0_108 = arith.constant 0 : index
    %c0_109 = arith.constant 0 : index
    %89 = vector.load %arg5[%c0_108, %c0_109] : memref<16x1xf32, #tpu.memory_space<vmem>>, vector<16x1xf32>
    %90 = vector.broadcast %89 : vector<16x1xf32> to vector<16x576xf32>
    %91 = arith.addf %88, %90 : vector<16x576xf32>
    %cst_110 = arith.constant 0.000000e+00 : f32
    %92 = vector.shape_cast %4 : vector<1x576xi1> to vector<1x576xi1>
    %93 = vector.broadcast %92 : vector<1x576xi1> to vector<16x576xi1>
    %94 = vector.broadcast %cst_110 : f32 to vector<16x576xf32>
    %95 = arith.select %93, %91, %94 : vector<16x576xi1>, vector<16x576xf32>
    %cst_111 = arith.constant 0.000000e+00 : f32
    %96 = vector.broadcast %cst_111 : f32 to vector<16x768xf32>
    %c0_112 = arith.constant 0 : index
    %c0_113 = arith.constant 0 : index
    %97 = vector.load %arg9[%c0_112, %c0_113] : memref<16x768xf32, #tpu.memory_space<vmem>>, vector<16x768xf32>
    tpu.vector_store %arg9[%c0_112, %c0_113], %96 {strides = array<i32>} : memref<16x768xf32, #tpu.memory_space<vmem>>, vector<16x768xf32>,
    %c0_114 = arith.constant 0 : index
    %c33_115 = arith.constant 33 : index
    %98 = vector.load %arg9[%c0_114, %c33_115] : memref<16x768xf32, #tpu.memory_space<vmem>>, vector<16x576xf32>
    tpu.vector_store %arg9[%c0_114, %c33_115], %95 {strides = array<i32>} : memref<16x768xf32, #tpu.memory_space<vmem>>, vector<16x576xf32>,
    %c0_116 = arith.constant 0 : index
    %c0_117 = arith.constant 0 : index
    %99 = vector.load %arg9[%c0_116, %c0_117] : memref<16x768xf32, #tpu.memory_space<vmem>>, vector<16x640xf32>
    %c0_118 = arith.constant 0 : index
    %c0_119 = arith.constant 0 : index
    %100 = vector.load %arg12[%c0_118, %c0_119] : memref<400x640xf32, #tpu.memory_space<vmem>>, vector<16x640xf32>
    tpu.vector_store %arg12[%c0_118, %c0_119], %99 {strides = array<i32>} : memref<400x640xf32, #tpu.memory_space<vmem>>, vector<16x640xf32>,
    %c0_120 = arith.constant 0 : index
    %c1_121 = arith.constant 1 : index
    %101 = vector.load %arg9[%c0_120, %c1_121] : memref<16x768xf32, #tpu.memory_space<vmem>>, vector<16x640xf32>
    %c16_122 = arith.constant 16 : index
    %c0_123 = arith.constant 0 : index
    %102 = vector.load %arg12[%c16_122, %c0_123] : memref<400x640xf32, #tpu.memory_space<vmem>>, vector<16x640xf32>
    tpu.vector_store %arg12[%c16_122, %c0_123], %101 {strides = array<i32>} : memref<400x640xf32, #tpu.memory_space<vmem>>, vector<16x640xf32>,
    %c0_124 = arith.constant 0 : index
    %c2_125 = arith.constant 2 : index
    %103 = vector.load %arg9[%c0_124, %c2_125] : memref<16x768xf32, #tpu.memory_space<vmem>>, vector<16x640xf32>
    %c32_126 = arith.constant 32 : index
    %c0_127 = arith.constant 0 : index
    %104 = vector.load %arg12[%c32_126, %c0_127] : memref<400x640xf32, #tpu.memory_space<vmem>>, vector<16x640xf32>
    tpu.vector_store %arg12[%c32_126, %c0_127], %103 {strides = array<i32>} : memref<400x640xf32, #tpu.memory_space<vmem>>, vector<16x640xf32>,
    %c0_128 = arith.constant 0 : index
    %c32_129 = arith.constant 32 : index
    %105 = vector.load %arg9[%c0_128, %c32_129] : memref<16x768xf32, #tpu.memory_space<vmem>>, vector<16x640xf32>
    %c48_130 = arith.constant 48 : index
    %c0_131 = arith.constant 0 : index
    %106 = vector.load %arg12[%c48_130, %c0_131] : memref<400x640xf32, #tpu.memory_space<vmem>>, vector<16x640xf32>
    tpu.vector_store %arg12[%c48_130, %c0_131], %105 {strides = array<i32>} : memref<400x640xf32, #tpu.memory_space<vmem>>, vector<16x640xf32>,
    %c0_132 = arith.constant 0 : index
    %c33_133 = arith.constant 33 : index
    %107 = vector.load %arg9[%c0_132, %c33_133] : memref<16x768xf32, #tpu.memory_space<vmem>>, vector<16x640xf32>
    %c64_134 = arith.constant 64 : index
    %c0_135 = arith.constant 0 : index
    %108 = vector.load %arg12[%c64_134, %c0_135] : memref<400x640xf32, #tpu.memory_space<vmem>>, vector<16x640xf32>
    tpu.vector_store %arg12[%c64_134, %c0_135], %107 {strides = array<i32>} : memref<400x640xf32, #tpu.memory_space<vmem>>, vector<16x640xf32>,
    %c0_136 = arith.constant 0 : index
    %c34_137 = arith.constant 34 : index
    %109 = vector.load %arg9[%c0_136, %c34_137] : memref<16x768xf32, #tpu.memory_space<vmem>>, vector<16x640xf32>
    %c80_138 = arith.constant 80 : index
    %c0_139 = arith.constant 0 : index
    %110 = vector.load %arg12[%c80_138, %c0_139] : memref<400x640xf32, #tpu.memory_space<vmem>>, vector<16x640xf32>
    tpu.vector_store %arg12[%c80_138, %c0_139], %109 {strides = array<i32>} : memref<400x640xf32, #tpu.memory_space<vmem>>, vector<16x640xf32>,
    %c0_140 = arith.constant 0 : index
    %c64_141 = arith.constant 64 : index
    %111 = vector.load %arg9[%c0_140, %c64_141] : memref<16x768xf32, #tpu.memory_space<vmem>>, vector<16x640xf32>
    %c96_142 = arith.constant 96 : index
    %c0_143 = arith.constant 0 : index
    %112 = vector.load %arg12[%c96_142, %c0_143] : memref<400x640xf32, #tpu.memory_space<vmem>>, vector<16x640xf32>
    tpu.vector_store %arg12[%c96_142, %c0_143], %111 {strides = array<i32>} : memref<400x640xf32, #tpu.memory_space<vmem>>, vector<16x640xf32>,
    %c0_144 = arith.constant 0 : index
    %c65_145 = arith.constant 65 : index
    %113 = vector.load %arg9[%c0_144, %c65_145] : memref<16x768xf32, #tpu.memory_space<vmem>>, vector<16x640xf32>
    %c112_146 = arith.constant 112 : index
    %c0_147 = arith.constant 0 : index
    %114 = vector.load %arg12[%c112_146, %c0_147] : memref<400x640xf32, #tpu.memory_space<vmem>>, vector<16x640xf32>
    tpu.vector_store %arg12[%c112_146, %c0_147], %113 {strides = array<i32>} : memref<400x640xf32, #tpu.memory_space<vmem>>, vector<16x640xf32>,
    %c0_148 = arith.constant 0 : index
    %c66_149 = arith.constant 66 : index
    %115 = vector.load %arg9[%c0_148, %c66_149] : memref<16x768xf32, #tpu.memory_space<vmem>>, vector<16x640xf32>
    %c128_150 = arith.constant 128 : index
    %c0_151 = arith.constant 0 : index
    %116 = vector.load %arg12[%c128_150, %c0_151] : memref<400x640xf32, #tpu.memory_space<vmem>>, vector<16x640xf32>
    tpu.vector_store %arg12[%c128_150, %c0_151], %115 {strides = array<i32>} : memref<400x640xf32, #tpu.memory_space<vmem>>, vector<16x640xf32>,
    %c0_152 = arith.constant 0 : index
    %c0_153 = arith.constant 0 : index
    %117 = vector.load %arg12[%c0_152, %c0_153] : memref<400x640xf32, #tpu.memory_space<vmem>>, vector<144x640xf32>
    %c0_154 = arith.constant 0 : index
    %c0_155 = arith.constant 0 : index
    %118 = vector.load %arg6[%c0_154, %c0_155] : memref<8x144xf32, #tpu.memory_space<vmem>>, vector<8x144xf32>
    %cst_156 = arith.constant dense<0.000000e+00> : vector<8x640xf32>
    %119 = tpu.matmul %118, %117, %cst_156 {dimension_numbers = #tpu.dot_dimension_numbers<[1], [0], [0], [1], [0, 0, 1, 1], [], []>} : vector<8x144xf32>, vector<144x640xf32>, vector<8x640xf32> -> vector<8x640xf32>
    %c0_157 = arith.constant 0 : index
    %c0_158 = arith.constant 0 : index
    %120 = vector.load %arg7[%c0_157, %c0_158] : memref<8x1xf32, #tpu.memory_space<vmem>>, vector<8x1xf32>
    %121 = vector.broadcast %120 : vector<8x1xf32> to vector<8x640xf32>
    %122 = arith.addf %119, %121 : vector<8x640xf32>
    %c0_159 = arith.constant 0 : index
    %c0_160 = arith.constant 0 : index
    %123 = vector.load %arg10[%c0_159, %c0_160] : memref<8x640xf32, #tpu.memory_space<vmem>>, vector<8x640xf32>
    tpu.vector_store %arg10[%c0_159, %c0_160], %122 {strides = array<i32>} : memref<8x640xf32, #tpu.memory_space<vmem>>, vector<8x640xf32>,
    %cst_161 = arith.constant 4.000000e+00 : f32
    %124 = vector.broadcast %cst_161 : f32 to vector<8x640xf32>
    %125 = arith.addf %122, %124 : vector<8x640xf32>
    %cst_162 = arith.constant 0.000000e+00 : f32
    %cst_163 = arith.constant 8.000000e+00 : f32
    %126 = vector.broadcast %cst_162 : f32 to vector<8x640xf32>
    %127 = arith.maximumf %126, %125 : vector<8x640xf32>
    %128 = vector.broadcast %cst_163 : f32 to vector<8x640xf32>
    %129 = arith.minimumf %128, %127 : vector<8x640xf32>
    %cst_164 = arith.constant 1.250000e-01 : f32
    %130 = vector.broadcast %cst_164 : f32 to vector<8x640xf32>
    %131 = arith.mulf %129, %130 : vector<8x640xf32>
    %c0_165 = arith.constant 0 : index
    %c0_166 = arith.constant 0 : index
    %132 = vector.load %arg11[%c0_165, %c0_166] : memref<8x640xf32, #tpu.memory_space<vmem>>, vector<8x640xf32>
    tpu.vector_store %arg11[%c0_165, %c0_166], %131 {strides = array<i32>} : memref<8x640xf32, #tpu.memory_space<vmem>>, vector<8x640xf32>,
    return
  }
  func.func @transform_0(%arg0: i32) -> (i32, i32) {
    %c0_i32 = arith.constant 0 : i32
    %c0_i32_0 = arith.constant 0 : i32
    %c0_i32_1 = arith.constant 0 : i32
    return %c0_i32, %c0_i32_0 : i32, i32
  }
  func.func @transform_1(%arg0: i32) -> (i32, i32) {
    %c0_i32 = arith.constant 0 : i32
    %c0_i32_0 = arith.constant 0 : i32
    %c0_i32_1 = arith.constant 0 : i32
    return %c0_i32, %c0_i32_0 : i32, i32
  }
  func.func @transform_2(%arg0: i32) -> (i32, i32) {
    %c0_i32 = arith.constant 0 : i32
    %c0_i32_0 = arith.constant 0 : i32
    %c0_i32_1 = arith.constant 0 : i32
    return %c0_i32, %c0_i32_0 : i32, i32
  }
  func.func @transform_3(%arg0: i32) -> (i32, i32) {
    %c0_i32 = arith.constant 0 : i32
    %c0_i32_0 = arith.constant 0 : i32
    %c0_i32_1 = arith.constant 0 : i32
    return %c0_i32, %c0_i32_0 : i32, i32
  }
  func.func @transform_4(%arg0: i32) -> (i32, i32) {
    %c0_i32 = arith.constant 0 : i32
    %c0_i32_0 = arith.constant 0 : i32
    %c0_i32_1 = arith.constant 0 : i32
    return %c0_i32, %c0_i32_0 : i32, i32
  }
  func.func @transform_5(%arg0: i32) -> (i32, i32) {
    %c0_i32 = arith.constant 0 : i32
    %c0_i32_0 = arith.constant 0 : i32
    %c0_i32_1 = arith.constant 0 : i32
    return %c0_i32, %c0_i32_0 : i32, i32
  }
  func.func @transform_6(%arg0: i32) -> (i32, i32) {
    %c0_i32 = arith.constant 0 : i32
    %c0_i32_0 = arith.constant 0 : i32
    %c0_i32_1 = arith.constant 0 : i32
    return %c0_i32, %c0_i32_0 : i32, i32
  }
  func.func @transform_7(%arg0: i32) -> (i32, i32) {
    %c0_i32 = arith.constant 0 : i32
    %c0_i32_0 = arith.constant 0 : i32
    %c0_i32_1 = arith.constant 0 : i32
    return %c0_i32, %c0_i32_0 : i32, i32
  }
  func.func @transform_8(%arg0: i32) -> (i32, i32) {
    %c0_i32 = arith.constant 0 : i32
    %c0_i32_0 = arith.constant 0 : i32
    %c0_i32_1 = arith.constant 0 : i32
    return %c0_i32, %c0_i32_0 : i32, i32
  }
  func.func @transform_9(%arg0: i32) -> (i32, i32) {
    %c0_i32 = arith.constant 0 : i32
    %c0_i32_0 = arith.constant 0 : i32
    %c0_i32_1 = arith.constant 0 : i32
    return %c0_i32, %c0_i32_0 : i32, i32
  }
  func.func @transform_10(%arg0: i32) -> (i32, i32) {
    %c0_i32 = arith.constant 0 : i32
    %c0_i32_0 = arith.constant 0 : i32
    %c0_i32_1 = arith.constant 0 : i32
    return %c0_i32, %c0_i32_0 : i32, i32
  }
}

</mosaic_0001>

<bundles_post_ra>
// kernel: fused_convtranspose_chain.1
= control target key start
LH: loop header
LB: loop body
LE: loop exit
PB: predicated region body
PF: predicated region fallthrough
CT: control target
= control target key end

     0   :  { %s9103_s19 = smov 94   ;;  %s5867_s24 = smov 125   ;;  %vm9107_vm0 = vcmask 769024   ;;  %vm245_vm1 = vcmask 1022976   ;;  %vm9108_vm2 = vcmask 777216   ;;  %vm176_vm3 = vcmask 1031168   ;;  %s9090_s0 = inlined_call_operand.vmem [shape: f32[16,768], index: 0, kind: input, shape index: {}]   ;;  %s9091_s1 = inlined_call_operand.vmem [shape: f32[32,400], index: 1, kind: input, shape index: {}]   ;;  %s9092_s2 = inlined_call_operand.vmem [shape: f32[32,1], index: 2, kind: input, shape index: {}]   ;;  %s9093_s7 = inlined_call_operand.vmem [shape: f32[32,768], index: 7, kind: output, shape index: {0}]   ;;  %s9094_s3 = inlined_call_operand.vmem [shape: f32[16,288], index: 3, kind: input, shape index: {}]   ;;  %s9095_s4 = inlined_call_operand.vmem [shape: f32[16,1], index: 4, kind: input, shape index: {}]   ;;  %s9096_s8 = inlined_call_operand.vmem [shape: f32[16,768], index: 8, kind: output, shape index: {1}]   ;;  %s9097_s5 = inlined_call_operand.vmem [shape: f32[8,144], index: 5, kind: input, shape index: {}]   ;;  %s9098_s6 = inlined_call_operand.vmem [shape: f32[8,1], index: 6, kind: input, shape index: {}]   ;;  %s9099_s9 = inlined_call_operand.vmem [shape: f32[8,640], index: 9, kind: output, shape index: {2}]   ;;  %s9100_s10 = inlined_call_operand.vmem [shape: f32[8,640], index: 10, kind: output, shape index: {3}]  }
   0x1   :  { %v5946_v0 = vld [vmem:[%s9090_s0 + $0x38] sm:$0xff]  ;;  %v5951_v1 = vld [vmem:[%s9090_s0 + $0x30] sm:$0xff]  ;;  %v5956_v2 = vld [vmem:[%s9090_s0 + $0x40] sm:$0xff]  ;;  %s9101_s29 = smov 95   ;;  %s5869_s12 = smov 126   ;;  %vm9109_vm4 = vcmask 785408  }
   0x2   :  { %513 = vrot.lane.b32.xlu0 %v5946_v0, %s9103_s19  ;;  %511 = vrot.lane.b32.xlu1 %v5951_v1, %s9103_s19  ;;  %v5965_v3 = vld [vmem:[%s9090_s0 + $0x8] sm:$0xff]  ;;  %v5970_v4 = vld [vmem:[%s9090_s0 + $0x10] sm:$0xff]  ;;  %s9105_s13 = smov 96   ;;  %s5871_s14 = smov 127   ;;  %vm9111_vm5 = vcmask 1039360   ;;  %vm9110_vm6 = vcmask 1014784  }
   0x3   :  { %v5983_v5 = vld [vmem:[%s9090_s0 + $0x48] sm:$0xff]  ;;  %v5988_v6 = vld [vmem:[%s9090_s0] sm:$0xff]  ;;  %v6005_v7 = vld [vmem:[%s9090_s0 + $0x18] sm:$0xff]  ;;  %s5872_s15 = smov 124   ;;  %s5873_s16 = smov 28   ;;  %vm9112_vm7 = vcmask 130048  }
   0x4   :  { %s5874_s17 = smov 29   ;;  %s5875_s18 = smov 30   ;;  %vm1436_vm8 = vcmask 228352   ;;  %vm1357_vm9 = vcmask 236544   ;;  %vm1278_vm10 = vcmask 244736   ;;  %vm1199_vm11 = vcmask 252928  }
   0x5   :  { %s5876_s20 = smov 31   ;;  %s5877_s21 = smov 32   ;;  %vm1120_vm12 = vcmask 261120   ;;  %vm1041_vm13 = vcmask 490496   ;;  %vm60_vm14 = vcmask 523264   ;;  %vm962_vm15 = vcmask 498688  }
   0x6   :  { %515 = vrot.lane.b32.xlu0 %v5956_v2, %s9103_s19  ;;  %503 = vrot.lane.b32.xlu1 %v5965_v3, %s9103_s19  ;;  %s5878_s22 = smov 60   ;;  %s5879_s11 = smov 61  }
   0x7   :  { %s5880_s23 = smov 62   ;;  %s5881_s28 = smov 63  }
   0x8   :  { %s5882_s30 = smov 64   ;;  %s5883_s27 = smov 92  }
   0x9   :  { %s9138_s25 = smov 94   ;;  %s9149_s26 = smov 95  }
   0xa   :  { %505 = vrot.lane.b32.xlu0 %v5970_v4, %s9103_s19  ;;  %1655 = vrot.lane.b32.xlu1 %v5956_v2, %s5867_s24 }
   0xe   :  { %1657 = vrot.lane.b32.xlu0 %v5983_v5, %s5867_s24  ;;  %501 = vrot.lane.b32.xlu1 %v5988_v6, %s9103_s19 }
  0x12   :  { %1653 = vrot.lane.b32.xlu0 %v5946_v0, %s5867_s24  ;;  %444 = vrot.lane.b32.xlu1 %v5946_v0, %s9101_s29 }
  0x16   :  { %446 = vrot.lane.b32.xlu0 %v5956_v2, %s9101_s29  ;;  %1645 = vrot.lane.b32.xlu1 %v5970_v4, %s5867_s24 }
  0x1a   :  { %1647 = vrot.lane.b32.xlu0 %v6005_v7, %s5867_s24  ;;  %442 = vrot.lane.b32.xlu1 %v5951_v1, %s9101_s29 }
  0x1e   :  { %1643 = vrot.lane.b32.xlu0 %v5965_v3, %s5867_s24  ;;  %434 = vrot.lane.b32.xlu1 %v5965_v3, %s9101_s29 }
  0x22   :  { %436 = vrot.lane.b32.xlu0 %v5970_v4, %s9101_s29  ;;  %1587 = vrot.lane.b32.xlu1 %v5956_v2, %s5869_s12 }
  0x26   :  { %1589 = vrot.lane.b32.xlu0 %v5983_v5, %s5869_s12  ;;  %432 = vrot.lane.b32.xlu1 %v5988_v6, %s9101_s29 }
  0x2a   :  { %1585 = vrot.lane.b32.xlu0 %v5946_v0, %s5869_s12  ;;  %375 = vrot.lane.b32.xlu1 %v5946_v0, %s9105_s13 }
  0x2e   :  { %377 = vrot.lane.b32.xlu0 %v5956_v2, %s9105_s13  ;;  %1577 = vrot.lane.b32.xlu1 %v5970_v4, %s5869_s12 }
  0x32   :  { %1579 = vrot.lane.b32.xlu0 %v6005_v7, %s5869_s12  ;;  %373 = vrot.lane.b32.xlu1 %v5951_v1, %s9105_s13 }
  0x36   :  { %1575 = vrot.lane.b32.xlu0 %v5965_v3, %s5869_s12  ;;  %365 = vrot.lane.b32.xlu1 %v5965_v3, %s9105_s13 }
  0x3a   :  { %367 = vrot.lane.b32.xlu0 %v5970_v4, %s9105_s13  ;;  %1519 = vrot.lane.b32.xlu1 %v5956_v2, %s5871_s14 }
  0x3e   :  { %1521 = vrot.lane.b32.xlu0 %v5983_v5, %s5871_s14  ;;  %363 = vrot.lane.b32.xlu1 %v5988_v6, %s9105_s13 }
  0x42   :  { %1517 = vrot.lane.b32.xlu0 %v5946_v0, %s5871_s14  ;;  %306 = vrot.lane.b32.xlu1 %v5946_v0, %s5872_s15 }
  0x46   :  { %308 = vrot.lane.b32.xlu0 %v5956_v2, %s5872_s15  ;;  %1509 = vrot.lane.b32.xlu1 %v5970_v4, %s5871_s14 }
  0x4a   :  { %1511 = vrot.lane.b32.xlu0 %v6005_v7, %s5871_s14  ;;  %304 = vrot.lane.b32.xlu1 %v5951_v1, %s5872_s15 }
  0x4e   :  { %1507 = vrot.lane.b32.xlu0 %v5965_v3, %s5871_s14  ;;  %296 = vrot.lane.b32.xlu1 %v5965_v3, %s5872_s15 }
  0x52   :  { %298 = vrot.lane.b32.xlu0 %v5970_v4, %s5872_s15  ;;  %294 = vrot.lane.b32.xlu1 %v5988_v6, %s5872_s15 }
  0x56   :  { %239 = vrot.lane.b32.xlu1 %v5956_v2, %s5867_s24  ;;  %237 = vrot.lane.b32.xlu0 %v5946_v0, %s5867_s24 }
  0x5a   :  { %235 = vrot.lane.b32.xlu0 %v5951_v1, %s5867_s24  ;;  %227 = vrot.lane.b32.xlu1 %v5965_v3, %s5867_s24 }
  0x5e   :  { %229 = vrot.lane.b32.xlu0 %v5970_v4, %s5867_s24  ;;  %1426 = vrot.lane.b32.xlu1 %v5946_v0, %s5873_s16 }
  0x62   :  { %1428 = vrot.lane.b32.xlu0 %v5956_v2, %s5873_s16  ;;  %225 = vrot.lane.b32.xlu1 %v5988_v6, %s5867_s24 }
  0x66   :  { %1424 = vrot.lane.b32.xlu0 %v5951_v1, %s5873_s16  ;;  %168 = vrot.lane.b32.xlu1 %v5946_v0, %s5869_s12 }
  0x6a   :  { %170 = vrot.lane.b32.xlu0 %v5956_v2, %s5869_s12  ;;  %1414 = vrot.lane.b32.xlu1 %v5965_v3, %s5873_s16 }
  0x6e   :  { %1416 = vrot.lane.b32.xlu0 %v5970_v4, %s5873_s16  ;;  %166 = vrot.lane.b32.xlu1 %v5951_v1, %s5869_s12 }
  0x72   :  { %1412 = vrot.lane.b32.xlu0 %v5988_v6, %s5873_s16  ;;  %158 = vrot.lane.b32.xlu1 %v5965_v3, %s5869_s12 }
  0x74   :  { %v514_v8 = vpop.permute.xlu0 %513  ;;  %v512_v9 = vpop.permute.xlu1 %511 }
  0x75   :  { %v526_v13 = vsel %vm9107_vm0, %v512_v9, %v514_v8 }
  0x76   :  { %160 = vrot.lane.b32.xlu0 %v5970_v4, %s5869_s12  ;;  %1347 = vrot.lane.b32.xlu1 %v5946_v0, %s5874_s17 }
  0x78   :  { %v6103_v10 = vpop.permute.xlu0 %515  ;;  %v504_v11 = vpop.permute.xlu1 %503 }
  0x79   :  { %v527_v12 = vsel %vm9107_vm0, %v514_v8, %v6103_v10 }
  0x7a   :  { %1349 = vrot.lane.b32.xlu0 %v5956_v2, %s5874_s17  ;;  %156 = vrot.lane.b32.xlu1 %v5988_v6, %s5869_s12 }
  0x7b   :  { %2062 = vmatprep.subr.mxu0 %v527_v12 }
  0x7c   :  { %v6112_v14 = vpop.permute.xlu0 %505  ;;  %v1656_v15 = vpop.permute.xlu1 %1655  ;;  %2063 = vmatpush1.msra.mxu0 %v526_v13 }
  0x7d   :  { %v523_v16 = vsel %vm9107_vm0, %v504_v11, %v6112_v14 }
  0x7e   :  { %1345 = vrot.lane.b32.xlu0 %v5951_v1, %s5874_s17  ;;  %99 = vrot.lane.b32.xlu1 %v5946_v0, %s5871_s14 }
  0x7f   :  { %2064 = vmatprep.subr.mxu0 %v523_v16 }
  0x80   :  { %v6120_v17 = vpop.permute.xlu0 %1657  ;;  %v502_v18 = vpop.permute.xlu1 %501 }
  0x81   :  { %v1668_v19 = vsel %vm245_vm1, %v1656_v15, %v6120_v17  ;;  %v522_v20 = vsel %vm9107_vm0, %v502_v18, %v504_v11  ;;  %v2012_v18 = vld [vmem:[%s9091_s1 + $0x18] sm:$0xff] }
  0x82   :  { %101 = vrot.lane.b32.xlu0 %v5956_v2, %s5871_s14  ;;  %1335 = vrot.lane.b32.xlu1 %v5965_v3, %s5874_s17 }
  0x83   :  { %2065 = vmatpush1.msra.mxu0 %v522_v20  ;;  %2151 = vmatprep.subr.mxu1 %v1668_v19 }
  0x84   :  { %v1654_v21 = vpop.permute.xlu0 %1653  ;;  %v445_v22 = vpop.permute.xlu1 %444  ;;  %5674 = vmatprep.mubr.msk.f32.mxu1 %vm9112_vm7, %v2012_v18 }
  0x85   :  { %v1667_v23 = vsel %vm245_vm1, %v1654_v21, %v1656_v15 }
  0x86   :  { %1337 = vrot.lane.b32.xlu0 %v5970_v4, %s5874_s17  ;;  %97 = vrot.lane.b32.xlu1 %v5951_v1, %s5871_s14 }
  0x87   :  { %2152 = vmatpush1.msra.mxu1 %v1667_v23 }
  0x88   :  { %v6134_v24 = vpop.permute.xlu0 %446  ;;  %v1646_v25 = vpop.permute.xlu1 %1645 }
  0x89   :  { %v458_v26 = vsel %vm9108_vm2, %v445_v22, %v6134_v24 }
  0x8a   :  { %1333 = vrot.lane.b32.xlu0 %v5988_v6, %s5874_s17  ;;  %89 = vrot.lane.b32.xlu1 %v5965_v3, %s5871_s14 }
  0x8b   :  { %2066 = vmatprep.subr.mxu0 %v458_v26 }
  0x8c   :  { %v6142_v27 = vpop.permute.xlu0 %1647  ;;  %v443_v28 = vpop.permute.xlu1 %442 }
  0x8d   :  { %v1664_v29 = vsel %vm245_vm1, %v1646_v25, %v6142_v27  ;;  %v457_v30 = vsel %vm9108_vm2, %v443_v28, %v445_v22  ;;  %v6262_v28 = vld [vmem:[%s9090_s0 + $0x50] sm:$0xff] }
  0x8e   :  { %91 = vrot.lane.b32.xlu0 %v5970_v4, %s5871_s14  ;;  %1268 = vrot.lane.b32.xlu1 %v5946_v0, %s5875_s18 }
  0x8f   :  { %2067 = vmatpush1.msra.mxu0 %v457_v30  ;;  %2153 = vmatprep.subr.mxu1 %v1664_v29 }
  0x90   :  { %v1644_v31 = vpop.permute.xlu0 %1643  ;;  %v435_v32 = vpop.permute.xlu1 %434 }
  0x91   :  { %v1663_v33 = vsel %vm245_vm1, %v1644_v31, %v1646_v25 }
  0x92   :  { %1270 = vrot.lane.b32.xlu0 %v5956_v2, %s5875_s18  ;;  %87 = vrot.lane.b32.xlu1 %v5988_v6, %s5871_s14 }
  0x93   :  { %2154 = vmatpush1.msra.mxu1 %v1663_v33 }
  0x94   :  { %v6156_v34 = vpop.permute.xlu0 %436  ;;  %v1588_v35 = vpop.permute.xlu1 %1587 }
  0x95   :  { %v454_v36 = vsel %vm9108_vm2, %v435_v32, %v6156_v34 }
  0x96   :  { %1266 = vrot.lane.b32.xlu0 %v5951_v1, %s5875_s18  ;;  %1256 = vrot.lane.b32.xlu1 %v5965_v3, %s5875_s18 }
  0x97   :  { %2068 = vmatprep.subr.mxu0 %v454_v36  ;;  %v6282_v36 = vld [vmem:[%s9090_s0 + $0x20] sm:$0xff] }
  0x98   :  { %v6164_v37 = vpop.permute.xlu0 %1589  ;;  %v433_v38 = vpop.permute.xlu1 %432 }
  0x99   :  { %v1600_v39 = vsel %vm176_vm3, %v1588_v35, %v6164_v37  ;;  %v453_v40 = vsel %vm9108_vm2, %v433_v38, %v435_v32 }
  0x9a   :  { %1258 = vrot.lane.b32.xlu0 %v5970_v4, %s5875_s18  ;;  %1254 = vrot.lane.b32.xlu1 %v5988_v6, %s5875_s18 }
  0x9b   :  { %2069 = vmatpush1.msra.mxu0 %v453_v40  ;;  %2155 = vmatprep.subr.mxu1 %v1600_v39 }
  0x9c   :  { %v1586_v41 = vpop.permute.xlu0 %1585  ;;  %v376_v42 = vpop.permute.xlu1 %375 }
  0x9d   :  { %v1599_v43 = vsel %vm176_vm3, %v1586_v41, %v1588_v35 }
  0x9e   :  { %1189 = vrot.lane.b32.xlu0 %v5946_v0, %s5876_s20  ;;  %1191 = vrot.lane.b32.xlu1 %v5956_v2, %s5876_s20 }
  0x9f   :  { %2156 = vmatpush1.msra.mxu1 %v1599_v43 }
  0xa0   :  { %v6178_v44 = vpop.permute.xlu0 %377  ;;  %v1578_v45 = vpop.permute.xlu1 %1577 }
  0xa1   :  { %v389_v46 = vsel %vm9109_vm4, %v376_v42, %v6178_v44 }
  0xa2   :  { %1187 = vrot.lane.b32.xlu0 %v5951_v1, %s5876_s20  ;;  %1110 = vrot.lane.b32.xlu1 %v5946_v0, %s5877_s21 }
  0xa3   :  { %2070 = vmatprep.subr.mxu0 %v389_v46 }
  0xa4   :  { %v6186_v47 = vpop.permute.xlu0 %1579  ;;  %v374_v48 = vpop.permute.xlu1 %373 }
  0xa5   :  { %v1596_v49 = vsel %vm176_vm3, %v1578_v45, %v6186_v47  ;;  %v388_v50 = vsel %vm9109_vm4, %v374_v48, %v376_v42 }
  0xa6   :  { %1112 = vrot.lane.b32.xlu0 %v5956_v2, %s5877_s21  ;;  %1177 = vrot.lane.b32.xlu1 %v5965_v3, %s5876_s20 }
  0xa7   :  { %2071 = vmatpush1.msra.mxu0 %v388_v50  ;;  %2157 = vmatprep.subr.mxu1 %v1596_v49 }
  0xa8   :  { %v1576_v51 = vpop.permute.xlu0 %1575  ;;  %v366_v52 = vpop.permute.xlu1 %365 }
  0xa9   :  { %v1595_v53 = vsel %vm176_vm3, %v1576_v51, %v1578_v45 }
  0xaa   :  { %1179 = vrot.lane.b32.xlu0 %v5970_v4, %s5876_s20  ;;  %1108 = vrot.lane.b32.xlu1 %v5951_v1, %s5877_s21 }
  0xab   :  { %2158 = vmatpush1.msra.mxu1 %v1595_v53 }
  0xac   :  { %v6200_v54 = vpop.permute.xlu0 %367  ;;  %v1520_v55 = vpop.permute.xlu1 %1519 }
  0xad   :  { %v385_v56 = vsel %vm9109_vm4, %v366_v52, %v6200_v54 }
  0xae   :  { %1175 = vrot.lane.b32.xlu0 %v5988_v6, %s5876_s20  ;;  %1098 = vrot.lane.b32.xlu1 %v5965_v3, %s5877_s21 }
  0xaf   :  { %2072 = vmatprep.subr.mxu0 %v385_v56 }
  0xb0   :  { %v6208_v57 = vpop.permute.xlu0 %1521  ;;  %v364_v58 = vpop.permute.xlu1 %363 }
  0xb1   :  { %v1532_v59 = vsel %vm9111_vm5, %v1520_v55, %v6208_v57  ;;  %v384_v60 = vsel %vm9109_vm4, %v364_v58, %v366_v52 }
  0xb2   :  { %1100 = vrot.lane.b32.xlu0 %v5970_v4, %s5877_s21  ;;  %1723 = vrot.lane.b32.xlu1 %v5956_v2, %s5872_s15 }
  0xb3   :  { %2073 = vmatpush1.msra.mxu0 %v384_v60  ;;  %2159 = vmatprep.subr.mxu1 %v1532_v59 }
  0xb4   :  { %v1518_v61 = vpop.permute.xlu0 %1517  ;;  %v307_v62 = vpop.permute.xlu1 %306 }
  0xb5   :  { %v1531_v63 = vsel %vm9111_vm5, %v1518_v61, %v1520_v55 }
  0xb6   :  { %1725 = vrot.lane.b32.xlu0 %v5983_v5, %s5872_s15  ;;  %1096 = vrot.lane.b32.xlu1 %v5988_v6, %s5877_s21 }
  0xb7   :  { %2160 = vmatpush1.msra.mxu1 %v1531_v63 }
  0xb8   :  { %v6222_v8 = vpop.permute.xlu0 %308  ;;  %v1510_v9 = vpop.permute.xlu1 %1509 }
  0xb9   :  { %v320_v11 = vsel %vm9110_vm6, %v307_v62, %v6222_v8 }
  0xba   :  { %1721 = vrot.lane.b32.xlu0 %v5946_v0, %s5872_s15  ;;  %1031 = vrot.lane.b32.xlu1 %v5946_v0, %s5878_s22 }
  0xbb   :  { %2074 = vmatprep.subr.mxu0 %v320_v11  ;;  %v6339_v11 = vld [vmem:[%s9090_s0 + $0x50] sm:$0xff] }
  0xbc   :  { %v6230_v12 = vpop.permute.xlu0 %1511  ;;  %v305_v13 = vpop.permute.xlu1 %304  ;;  %1485 = vst [vmem:[#allocation2 + $0x680] sm:$0xff] %v6339_v11 }
  0xbd   :  { %v1528_v15 = vsel %vm9111_vm5, %v1510_v9, %v6230_v12  ;;  %v319_v16 = vsel %vm9110_vm6, %v305_v13, %v307_v62 }
  0xbe   :  { %1033 = vrot.lane.b32.xlu0 %v5956_v2, %s5878_s22  ;;  %1713 = vrot.lane.b32.xlu1 %v5970_v4, %s5872_s15 }
  0xbf   :  { %2075 = vmatpush1.msra.mxu0 %v319_v16  ;;  %2161 = vmatprep.subr.mxu1 %v1528_v15 }
  0xc0   :  { %v1508_v19 = vpop.permute.xlu0 %1507  ;;  %v297_v20 = vpop.permute.xlu1 %296 }
  0xc1   :  { %v1527_v21 = vsel %vm9111_vm5, %v1508_v19, %v1510_v9 }
  0xc2   :  { %1715 = vrot.lane.b32.xlu0 %v6005_v7, %s5872_s15  ;;  %1029 = vrot.lane.b32.xlu1 %v5951_v1, %s5878_s22 }
  0xc3   :  { %2162 = vmatpush1.msra.mxu1 %v1527_v21 }
  0xc4   :  { %v6248_v22 = vpop.permute.xlu0 %298  ;;  %v295_v23 = vpop.permute.xlu1 %294  ;;  %2163 = vmatprep.subr.mxu1 %v5956_v2 }
  0xc5   :  { %v316_v25 = vsel %vm9110_vm6, %v297_v20, %v6248_v22  ;;  %v315_v26 = vsel %vm9110_vm6, %v295_v23, %v297_v20  ;;  %2164 = vmatpush1.msra.mxu1 %v5946_v0  ;;  %v6359_v20 = vld [vmem:[%s9090_s0 + $0x20] sm:$0xff] }
  0xc6   :  { %1711 = vrot.lane.b32.xlu0 %v5965_v3, %s5872_s15  ;;  %517 = vrot.lane.b32.xlu1 %v5983_v5, %s9103_s19  ;;  %1480 = vst [vmem:[#allocation2 + $0x658] sm:$0xff] %v6359_v20 }
  0xc7   :  { %2076 = vmatprep.subr.mxu0 %v316_v25  ;;  %2165 = vmatprep.subr.mxu1 %v5970_v4 }
  0xc8   :  { %v6265_v29 = vpop.permute.xlu1 %239  ;;  %v238_v30 = vpop.permute.xlu0 %237  ;;  %2077 = vmatpush1.msra.mxu0 %v315_v26  ;;  %2166 = vmatpush1.msra.mxu1 %v5965_v3 }
  0xc9   :  { %v251_v31 = vsel %vm245_vm1, %v238_v30, %v6265_v29 }
  0xca   :  { %519 = vrot.lane.b32.xlu0 %v6262_v28, %s9103_s19  ;;  %1019 = vrot.lane.b32.xlu1 %v5965_v3, %s5878_s22 }
  0xcb   :  { %2078 = vmatprep.subr.mxu0 %v251_v31 }
  0xcc   :  { %v236_v32 = vpop.permute.xlu0 %235  ;;  %v228_v33 = vpop.permute.xlu1 %227 }
  0xcd   :  { %v250_v35 = vsel %vm245_vm1, %v236_v32, %v238_v30 }
  0xce   :  { %1021 = vrot.lane.b32.xlu0 %v5970_v4, %s5878_s22  ;;  %1017 = vrot.lane.b32.xlu1 %v5988_v6, %s5878_s22 }
  0xcf   :  { %2079 = vmatpush1.msra.mxu0 %v250_v35 }
  0xd0   :  { %v6284_v38 = vpop.permute.xlu0 %229  ;;  %v1427_v39 = vpop.permute.xlu1 %1426 }
  0xd1   :  { %v247_v40 = vsel %vm245_vm1, %v228_v33, %v6284_v38 }
  0xd2   :  { %507 = vrot.lane.b32.xlu0 %v6005_v7, %s9103_s19  ;;  %509 = vrot.lane.b32.xlu1 %v6282_v36, %s9103_s19 }
  0xd3   :  { %2080 = vmatprep.subr.mxu0 %v247_v40 }
  0xd4   :  { %v6292_v41 = vpop.permute.xlu0 %1428  ;;  %v226_v42 = vpop.permute.xlu1 %225 }
  0xd5   :  { %v1443_v43 = vsel %vm1436_vm8, %v1427_v39, %v6292_v41  ;;  %v246_v45 = vsel %vm245_vm1, %v226_v42, %v228_v33  ;;  %v6402_v33 = vld [vmem:[%s9090_s0 + $0x48] sm:$0xff] }
  0xd6   :  { %952 = vrot.lane.b32.xlu0 %v5946_v0, %s5879_s11  ;;  %954 = vrot.lane.b32.xlu1 %v5956_v2, %s5879_s11  ;;  %v6415_v42 = vld [vmem:[%s9090_s0 + $0x8] sm:$0xff] }
  0xd7   :  { %2081 = vmatpush1.msra.mxu0 %v246_v45  ;;  %2167 = vmatprep.subr.mxu1 %v1443_v43 }
  0xd8   :  { %v1425_v46 = vpop.permute.xlu0 %1424  ;;  %v169_v48 = vpop.permute.xlu1 %168 }
  0xd9   :  { %v1442_v49 = vsel %vm1436_vm8, %v1425_v46, %v1427_v39 }
  0xda   :  { %950 = vrot.lane.b32.xlu0 %v5951_v1, %s5879_s11  ;;  %448 = vrot.lane.b32.xlu1 %v5983_v5, %s9101_s29 }
  0xdb   :  { %2168 = vmatpush1.msra.mxu1 %v1442_v49  ;;  %v6429_v49 = vld [vmem:[%s9090_s0 + $0x10] sm:$0xff] }
  0xdc   :  { %v6306_v50 = vpop.permute.xlu0 %170  ;;  %v1415_v51 = vpop.permute.xlu1 %1414 }
  0xdd   :  { %v182_v52 = vsel %vm176_vm3, %v169_v48, %v6306_v50 }
  0xde   :  { %450 = vrot.lane.b32.xlu0 %v6262_v28, %s9101_s29  ;;  %940 = vrot.lane.b32.xlu1 %v5965_v3, %s5879_s11 }
  0xdf   :  { %2082 = vmatprep.subr.mxu0 %v182_v52 }
  0xe0   :  { %v6314_v53 = vpop.permute.xlu0 %1416  ;;  %v167_v55 = vpop.permute.xlu1 %166 }
  0xe1   :  { %v1438_v56 = vsel %vm1436_vm8, %v1415_v51, %v6314_v53  ;;  %v181_v58 = vsel %vm176_vm3, %v167_v55, %v169_v48 }
  0xe2   :  { %942 = vrot.lane.b32.xlu0 %v5970_v4, %s5879_s11  ;;  %938 = vrot.lane.b32.xlu1 %v5988_v6, %s5879_s11 }
  0xe3   :  { %2083 = vmatpush1.msra.mxu0 %v181_v58  ;;  %2169 = vmatprep.subr.mxu1 %v1438_v56  ;;  %v6446_v58 = vld [vmem:[%s9090_s0 + $0x18] sm:$0xff] }
  0xe4   :  { %v1413_v59 = vpop.permute.xlu0 %1412  ;;  %v159_v60 = vpop.permute.xlu1 %158 }
  0xe5   :  { %v1437_v61 = vsel %vm1436_vm8, %v1413_v59, %v1415_v51  ;;  %v6434_v51 = vld [vmem:[%s9090_s0] sm:$0xff] }
  0xe6   :  { %438 = vrot.lane.b32.xlu0 %v6005_v7, %s9101_s29  ;;  %440 = vrot.lane.b32.xlu1 %v6282_v36, %s9101_s29  ;;  %s5884_s29 = smov 93  }
  0xe7   :  { %2170 = vmatpush1.msra.mxu1 %v1437_v61 }
  0xe8   :  { %v6328_v62 = vpop.permute.xlu0 %160  ;;  %v1348_v63 = vpop.permute.xlu1 %1347 }
  0xe9   :  { %v178_v9 = vsel %vm176_vm3, %v159_v60, %v6328_v62 }
  0xea   :  { %873 = vrot.lane.b32.xlu0 %v5946_v0, %s5880_s23  ;;  %875 = vrot.lane.b32.xlu1 %v5956_v2, %s5880_s23 }
  0xeb   :  { %2084 = vmatprep.subr.mxu0 %v178_v9 }
  0xec   :  { %v6342_v13 = vpop.permute.xlu0 %1349  ;;  %v157_v15 = vpop.permute.xlu1 %156 }
  0xed   :  { %v1364_v16 = vsel %vm1357_vm9, %v1348_v63, %v6342_v13  ;;  %v177_v0 = vsel %vm176_vm3, %v157_v15, %v159_v60 }
  0xee   :  { %871 = vrot.lane.b32.xlu0 %v5951_v1, %s5880_s23  ;;  %379 = vrot.lane.b32.xlu1 %v5983_v5, %s9105_s13 }
  0xef   :  { %2085 = vmatpush1.msra.mxu0 %v177_v0  ;;  %2171 = vmatprep.subr.mxu1 %v1364_v16 }
  0xf0   :  { %v1346_v2 = vpop.permute.xlu0 %1345  ;;  %v100_v18 = vpop.permute.xlu1 %99 }
  0xf1   :  { %v1363_v19 = vsel %vm1357_vm9, %v1346_v2, %v1348_v63 }
  0xf2   :  { %381 = vrot.lane.b32.xlu0 %v6262_v28, %s9105_s13  ;;  %861 = vrot.lane.b32.xlu1 %v5965_v3, %s5880_s23 }
  0xf3   :  { %2172 = vmatpush1.msra.mxu1 %v1363_v19 }
  0xf4   :  { %v6362_v1 = vpop.permute.xlu0 %101  ;;  %v1336_v5 = vpop.permute.xlu1 %1335 }
  0xf5   :  { %v113_v21 = vsel %vm9111_vm5, %v100_v18, %v6362_v1 }
  0xf6   :  { %863 = vrot.lane.b32.xlu0 %v5970_v4, %s5880_s23  ;;  %859 = vrot.lane.b32.xlu1 %v5988_v6, %s5880_s23  ;;  %v6382_v4 = vld [vmem:[%s9090_s0 + $0x38] sm:$0xff]  ;;  %v6387_v6 = vld [vmem:[%s9090_s0 + $0x40] sm:$0xff] }
  0xf7   :  { %2086 = vmatprep.subr.mxu0 %v113_v21 }
  0xf8   :  { %v6370_v3 = vpop.permute.xlu0 %1337  ;;  %v98_v23 = vpop.permute.xlu1 %97 }
  0xf9   :  { %v1359_v25 = vsel %vm1357_vm9, %v1336_v5, %v6370_v3  ;;  %v112_v26 = vsel %vm9111_vm5, %v98_v23, %v100_v18 }
  0xfa   :  { %369 = vrot.lane.b32.xlu0 %v6005_v7, %s9105_s13  ;;  %371 = vrot.lane.b32.xlu1 %v6282_v36, %s9105_s13  ;;  %v6397_v7 = vld [vmem:[%s9090_s0 + $0x30] sm:$0xff] }
  0xfb   :  { %2087 = vmatpush1.msra.mxu0 %v112_v26  ;;  %2173 = vmatprep.subr.mxu1 %v1359_v25 }
  0xfc   :  { %v1334_v30 = vpop.permute.xlu0 %1333  ;;  %v90_v31 = vpop.permute.xlu1 %89 }
  0xfd   :  { %v1358_v32 = vsel %vm1357_vm9, %v1334_v30, %v1336_v5 }
  0xfe   :  { %794 = vrot.lane.b32.xlu0 %v6382_v4, %s5881_s28  ;;  %796 = vrot.lane.b32.xlu1 %v6387_v6, %s5881_s28 }
  0xff   :  { %2174 = vmatpush1.msra.mxu1 %v1358_v32 }
 0x100   :  { %v6404_v35 = vpop.permute.xlu0 %91  ;;  %v1269_v39 = vpop.permute.xlu1 %1268 }
 0x101   :  { %v109_v40 = vsel %vm9111_vm5, %v90_v31, %v6404_v35 }
 0x102   :  { %792 = vrot.lane.b32.xlu0 %v6397_v7, %s5881_s28  ;;  %310 = vrot.lane.b32.xlu1 %v6402_v33, %s5872_s15 }
 0x103   :  { %2088 = vmatprep.subr.mxu0 %v109_v40  ;;  %v6493_v40 = vld [vmem:[%s9090_s0 + $0x48] sm:$0xff] }
 0x104   :  { %v6417_v43 = vpop.permute.xlu0 %1270  ;;  %v88_v45 = vpop.permute.xlu1 %87 }
 0x105   :  { %v1285_v46 = vsel %vm1278_vm10, %v1269_v39, %v6417_v43  ;;  %v108_v48 = vsel %vm9111_vm5, %v88_v45, %v90_v31 }
 0x106   :  { %312 = vrot.lane.b32.xlu0 %v6262_v28, %s5872_s15  ;;  %782 = vrot.lane.b32.xlu1 %v6415_v42, %s5881_s28 }
 0x107   :  { %2175 = vmatprep.subr.mxu1 %v1285_v46  ;;  %2089 = vmatpush1.msra.mxu0 %v108_v48 }
 0x108   :  { %v1267_v52 = vpop.permute.xlu0 %1266  ;;  %v1257_v55 = vpop.permute.xlu1 %1256  ;;  %2090 = vmatprep.subr.mxu0 %v6382_v4 }
 0x109   :  { %v1284_v56 = vsel %vm1278_vm10, %v1267_v52, %v1269_v39  ;;  %2091 = vmatpush1.msra.mxu0 %v6397_v7 }
 0x10a   :  { %784 = vrot.lane.b32.xlu0 %v6429_v49, %s5881_s28  ;;  %780 = vrot.lane.b32.xlu1 %v6434_v51, %s5881_s28 }
 0x10b   :  { %2176 = vmatpush1.msra.mxu1 %v1284_v56  ;;  %2092 = vmatprep.subr.mxu0 %v6415_v42 }
 0x10c   :  { %v6449_v59 = vpop.permute.xlu0 %1258  ;;  %v1255_v60 = vpop.permute.xlu1 %1254  ;;  %2093 = vmatpush1.msra.mxu0 %v6434_v51 }
 0x10d   :  { %v1280_v61 = vsel %vm1278_vm10, %v1257_v55, %v6449_v59  ;;  %v1279_v63 = vsel %vm1278_vm10, %v1255_v60, %v1257_v55 }
 0x10e   :  { %300 = vrot.lane.b32.xlu0 %v6446_v58, %s5872_s15  ;;  %302 = vrot.lane.b32.xlu1 %v6282_v36, %s5872_s15 }
 0x10f   :  { %2177 = vmatprep.subr.mxu1 %v1280_v61  ;;  %v6515_v61 = vld [vmem:[%s9090_s0 + $0x18] sm:$0xff] }
 0x110   :  { %v1190_v9 = vpop.permute.xlu0 %1189  ;;  %v6459_v15 = vpop.permute.xlu1 %1191  ;;  %2178 = vmatpush1.msra.mxu1 %v1279_v63 }
 0x111   :  { %v1206_v16 = vsel %vm1199_vm11, %v1190_v9, %v6459_v15 }
 0x112   :  { %720 = vrot.lane.b32.xlu0 %v6382_v4, %s5882_s30  ;;  %722 = vrot.lane.b32.xlu1 %v6387_v6, %s5882_s30 }
 0x113   :  { %2179 = vmatprep.subr.mxu1 %v1206_v16 }
 0x114   :  { %v1188_v0 = vpop.permute.xlu0 %1187  ;;  %v1111_v2 = vpop.permute.xlu1 %1110 }
 0x115   :  { %v1205_v18 = vsel %vm1199_vm11, %v1188_v0, %v1190_v9 }
 0x116   :  { %718 = vrot.lane.b32.xlu0 %v6397_v7, %s5882_s30  ;;  %241 = vrot.lane.b32.xlu1 %v6402_v33, %s5867_s24 }
 0x117   :  { %2180 = vmatpush1.msra.mxu1 %v1205_v18 }
 0x118   :  { %v6472_v19 = vpop.permute.xlu0 %1112  ;;  %v1178_v5 = vpop.permute.xlu1 %1177 }
 0x119   :  { %v1127_v21 = vsel %vm1120_vm12, %v1111_v2, %v6472_v19 }
 0x11a   :  { %243 = vrot.lane.b32.xlu0 %v6262_v28, %s5867_s24  ;;  %710 = vrot.lane.b32.xlu1 %v6415_v42, %s5882_s30 }
 0x11b   :  { %2094 = vmatprep.subr.mxu0 %v1127_v21 }
 0x11c   :  { %v6480_v23 = vpop.permute.xlu0 %1179  ;;  %v1109_v25 = vpop.permute.xlu1 %1108 }
 0x11d   :  { %v1201_v26 = vsel %vm1199_vm11, %v1178_v5, %v6480_v23  ;;  %v1126_v30 = vsel %vm1120_vm12, %v1109_v25, %v1111_v2 }
 0x11e   :  { %712 = vrot.lane.b32.xlu0 %v6429_v49, %s5882_s30  ;;  %708 = vrot.lane.b32.xlu1 %v6434_v51, %s5882_s30 }
 0x11f   :  { %2095 = vmatpush2.msra.mxu0 %v1126_v30  ;;  %2181 = vmatprep.subr.mxu1 %v1201_v26 }
 0x120   :  { %v1176_v31 = vpop.permute.xlu0 %1175  ;;  %v1099_v32 = vpop.permute.xlu1 %1098 }
 0x121   :  { %v1200_v39 = vsel %vm1199_vm11, %v1176_v31, %v1178_v5 }
 0x122   :  { %231 = vrot.lane.b32.xlu0 %v6446_v58, %s5867_s24  ;;  %233 = vrot.lane.b32.xlu1 %v6282_v36, %s5867_s24 }
 0x123   :  { %2182 = vmatpush1.msra.mxu1 %v1200_v39  ;;  %v2011_v39 = vld [vmem:[%s9091_s1 + $0x10] sm:$0xff] }
 0x124   :  { %v6499_v45 = vpop.permute.xlu0 %1100  ;;  %v1724_v46 = vpop.permute.xlu1 %1723 }
 0x125   :  { %v1122_v48 = vsel %vm1120_vm12, %v1099_v32, %v6499_v45 }
 0x126   :  { %651 = vrot.lane.b32.xlu0 %v6382_v4, %s5883_s27  ;;  %653 = vrot.lane.b32.xlu1 %v6387_v6, %s5883_s27 }
 0x127   :  { %2096 = vmatprep.subr.mxu0 %v1122_v48 }
 0x128   :  { %v6507_v52 = vpop.permute.xlu0 %1725  ;;  %v1097_v55 = vpop.permute.xlu1 %1096 }
 0x129   :  { %v1736_v56 = vsel %vm9110_vm6, %v1724_v46, %v6507_v52  ;;  %v1121_v60 = vsel %vm1120_vm12, %v1097_v55, %v1099_v32 }
 0x12a   :  { %649 = vrot.lane.b32.xlu0 %v6397_v7, %s5883_s27  ;;  %172 = vrot.lane.b32.xlu1 %v6402_v33, %s5869_s12 }
 0x12b   :  { %2097 = vmatpush2.msra.mxu0 %v1121_v60  ;;  %2211 = vmatprep.subr.mxu1 %v1736_v56 }
 0x12c   :  { %v1722_v63 = vpop.permute.xlu0 %1721  ;;  %v1032_v9 = vpop.permute.xlu1 %1031 }
 0x12d   :  { %v1735_v16 = vsel %vm9110_vm6, %v1722_v63, %v1724_v46 }
 0x12e   :  { %174 = vrot.lane.b32.xlu0 %v6262_v28, %s5869_s12  ;;  %641 = vrot.lane.b32.xlu1 %v6415_v42, %s5883_s27 }
 0x12f   :  { %2212 = vmatpush2.msra.mxu1 %v1735_v16 }
 0x130   :  { %v6526_v0 = vpop.permute.xlu0 %1033  ;;  %v1714_v2 = vpop.permute.xlu1 %1713 }
 0x131   :  { %v1048_v18 = vsel %vm1041_vm13, %v1032_v9, %v6526_v0 }
 0x132   :  { %643 = vrot.lane.b32.xlu0 %v6429_v49, %s5883_s27  ;;  %639 = vrot.lane.b32.xlu1 %v6434_v51, %s5883_s27 }
 0x133   :  { %2098 = vmatprep.subr.mxu0 %v1048_v18 }
 0x134   :  { %v6534_v5 = vpop.permute.xlu0 %1715  ;;  %v1030_v21 = vpop.permute.xlu1 %1029 }
 0x135   :  { %v1732_v25 = vsel %vm9110_vm6, %v1714_v2, %v6534_v5  ;;  %v1047_v26 = vsel %vm1041_vm13, %v1030_v21, %v1032_v9 }
 0x136   :  { %162 = vrot.lane.b32.xlu0 %v6446_v58, %s5869_s12  ;;  %164 = vrot.lane.b32.xlu1 %v6282_v36, %s5869_s12 }
 0x137   :  { %2099 = vmatpush2.msra.mxu0 %v1047_v26  ;;  %2213 = vmatprep.subr.mxu1 %v1732_v25  ;;  %v6603_v26 = vld [vmem:[%s9090_s0 + $0x28] sm:$0xff] }
 0x138   :  { %v1712_v30 = vpop.permute.xlu0 %1711  ;;  %v518_v31 = vpop.permute.xlu1 %517 }
 0x139   :  { %v1731_v32 = vsel %vm9110_vm6, %v1712_v30, %v1714_v2 }
 0x13a   :  { %582 = vrot.lane.b32.xlu0 %v6382_v4, %s5884_s29  ;;  %584 = vrot.lane.b32.xlu1 %v6387_v6, %s5884_s29  ;;  %v528_v4 = vsel %vm9107_vm0, %v6103_v10, %v518_v31  ;;  %v6571_v10 = vld [vmem:[%s9091_s1 + $0x8] sm:$0xff] }
 0x13b   :  { %2214 = vmatpush2.msra.mxu1 %v1731_v32  ;;  %2126 = vmatprep.mubr.f32.mxu0 %v6571_v10 }
 0x13c   :  { %v520_v46 = vpop.permute.xlu0 %519  ;;  %v1020_v48 = vpop.permute.xlu1 %1019  ;;  %2216 = vmatmul.mubr.f32.vlgmr.msra.gmra.mxu1 %v2011_v39 }
 0x13d   :  { %v529_v55 = vsel %vm9107_vm0, %v518_v31, %v520_v46  ;;  %549 = vst.msk [vmem:[#allocation2 + $0x278] sm:$0xff] %vm60_vm14, %v520_v46 }
 0x13e   :  { %580 = vrot.lane.b32.xlu0 %v6397_v7, %s5884_s29  ;;  %103 = vrot.lane.b32.xlu1 %v6402_v33, %s5871_s14 }
 0x13f   :  { %2240 = vmatprep.subr.mxu1 %v529_v55 }
 0x140   :  { %v6559_v6 = vpop.permute.xlu0 %1021  ;;  %v1018_v56 = vpop.permute.xlu1 %1017  ;;  %2241 = vmatpush1.msra.mxu1 %v528_v4 }
 0x141   :  { %v1043_v60 = vsel %vm1041_vm13, %v1020_v48, %v6559_v6  ;;  %v1042_v63 = vsel %vm1041_vm13, %v1018_v56, %v1020_v48 }
 0x142   :  { %105 = vrot.lane.b32.xlu0 %v6262_v28, %s5871_s14  ;;  %572 = vrot.lane.b32.xlu1 %v6415_v42, %s5884_s29 }
 0x143   :  { %2100 = vmatprep.subr.mxu0 %v1043_v60 }
 0x144   :  { %v508_v7 = vpop.permute.xlu0 %507  ;;  %v510_v9 = vpop.permute.xlu1 %509  ;;  %2101 = vmatpush2.msra.mxu0 %v1042_v63 }
 0x145   :  { %v524_v16 = vsel %vm9107_vm0, %v6112_v14, %v508_v7  ;;  %v525_v2 = vsel %vm9107_vm0, %v508_v7, %v510_v9  ;;  %544 = vst.msk [vmem:[#allocation2 + $0x250] sm:$0xff] %vm60_vm14, %v510_v9  ;;  %v6593_v14 = vld [vmem:[%s9090_s0 + $0x58] sm:$0xff]  ;;  %vm883_vm0 = vcmask 506880  }
 0x146   :  { %574 = vrot.lane.b32.xlu0 %v6429_v49, %s5884_s29  ;;  %570 = vrot.lane.b32.xlu1 %v6434_v51, %s5884_s29 }
 0x147   :  { %2242 = vmatprep.subr.mxu1 %v525_v2 }
 0x148   :  { %v953_v42 = vpop.permute.xlu0 %952  ;;  %v6582_v18 = vpop.permute.xlu1 %954  ;;  %2243 = vmatpush1.msra.mxu1 %v524_v16 }
 0x149   :  { %v969_v21 = vsel %vm962_vm15, %v953_v42, %v6582_v18 }
 0x14a   :  { %93 = vrot.lane.b32.xlu0 %v6446_v58, %s5871_s14  ;;  %95 = vrot.lane.b32.xlu1 %v6282_v36, %s5871_s14 }
 0x14b   :  { %2102 = vmatprep.subr.mxu0 %v969_v21 }
 0x14c   :  { %v951_v49 = vpop.permute.xlu0 %950  ;;  %v449_v51 = vpop.permute.xlu1 %448 }
 0x14d   :  { %v968_v25 = vsel %vm962_vm15, %v951_v49, %v953_v42  ;;  %v459_v39 = vsel %vm9108_vm2, %v6134_v24, %v449_v51 }
 0x14e   :  { %1659 = vrot.lane.b32.xlu0 %v6262_v28, %s5867_s24  ;;  %1661 = vrot.lane.b32.xlu1 %v6593_v14, %s5867_s24 }
 0x14f   :  { %2103 = vmatpush2.msra.mxu0 %v968_v25  ;;  %v6648_v25 = vld [vmem:[%s9090_s0 + $0x58] sm:$0xff] }
 0x150   :  { %v451_v30 = vpop.permute.xlu0 %450  ;;  %v941_v31 = vpop.permute.xlu1 %940  ;;  %1486 = vst.msk [vmem:[#allocation2 + $0x688] sm:$0xff] %vm60_vm14, %v6648_v25 }
 0x151   :  { %v460_v32 = vsel %vm9108_vm2, %v449_v51, %v451_v30  ;;  %480 = vst.msk [vmem:[#allocation2 + $0x228] sm:$0xff] %vm60_vm14, %v451_v30  ;;  %v6657_v30 = vld [vmem:[%s9090_s0 + $0x28] sm:$0xff] }
 0x152   :  { %1649 = vrot.lane.b32.xlu0 %v6282_v36, %s5867_s24  ;;  %1651 = vrot.lane.b32.xlu1 %v6603_v26, %s5867_s24  ;;  %1481 = vst.msk [vmem:[#allocation2 + $0x660] sm:$0xff] %vm60_vm14, %v6657_v30 }
 0x153   :  { %2244 = vmatprep.subr.mxu1 %v460_v32 }
 0x154   :  { %v6613_v46 = vpop.permute.xlu0 %942  ;;  %v939_v48 = vpop.permute.xlu1 %938  ;;  %2245 = vmatpush1.msra.mxu1 %v459_v39 }
 0x155   :  { %v964_v55 = vsel %vm962_vm15, %v941_v31, %v6613_v46  ;;  %v963_v4 = vsel %vm962_vm15, %v939_v48, %v941_v31 }
 0x156   :  { %1591 = vrot.lane.b32.xlu0 %v6262_v28, %s5869_s12  ;;  %1593 = vrot.lane.b32.xlu1 %v6593_v14, %s5869_s12 }
 0x157   :  { %2104 = vmatprep.subr.mxu0 %v964_v55 }
 0x158   :  { %v439_v56 = vpop.permute.xlu0 %438  ;;  %v441_v60 = vpop.permute.xlu1 %440  ;;  %2105 = vmatpush2.msra.mxu0 %v963_v4 }
 0x159   :  { %v455_v24 = vsel %vm9108_vm2, %v6156_v34, %v439_v56  ;;  %v456_v63 = vsel %vm9108_vm2, %v439_v56, %v441_v60  ;;  %475 = vst.msk [vmem:[#allocation2 + $0x200] sm:$0xff] %vm60_vm14, %v441_v60  ;;  %vm804_vm2 = vcmask 515072  }
 0x15a   :  { %1114 = vrot.lane.b32.xlu0 %v6402_v33, %s5877_s21  ;;  %1116 = vrot.lane.b32.xlu1 %v6262_v28, %s5877_s21 }
 0x15b   :  { %2246 = vmatprep.subr.mxu1 %v456_v63 }
 0x15c   :  { %v874_v7 = vpop.permute.xlu0 %873  ;;  %v6630_v9 = vpop.permute.xlu1 %875  ;;  %2247 = vmatpush1.msra.mxu1 %v455_v24 }
 0x15d   :  { %v890_v16 = vsel %vm883_vm0, %v874_v7, %v6630_v9 }
 0x15e   :  { %1581 = vrot.lane.b32.xlu0 %v6282_v36, %s5869_s12  ;;  %1583 = vrot.lane.b32.xlu1 %v6603_v26, %s5869_s12 }
 0x15f   :  { %2106 = vmatprep.subr.mxu0 %v890_v16 }
 0x160   :  { %v872_v34 = vpop.permute.xlu0 %871  ;;  %v380_v2 = vpop.permute.xlu1 %379 }
 0x161   :  { %v889_v42 = vsel %vm883_vm0, %v872_v34, %v874_v7  ;;  %v390_v31 = vsel %vm9109_vm4, %v6178_v44, %v380_v2 }
 0x162   :  { %1102 = vrot.lane.b32.xlu0 %v6446_v58, %s5877_s21  ;;  %1104 = vrot.lane.b32.xlu1 %v6282_v36, %s5877_s21 }
 0x163   :  { %2107 = vmatpush2.msra.mxu0 %v889_v42 }
 0x164   :  { %v382_v21 = vpop.permute.xlu0 %381  ;;  %v862_v49 = vpop.permute.xlu1 %861 }
 0x165   :  { %v391_v51 = vsel %vm9109_vm4, %v380_v2, %v382_v21  ;;  %411 = vst.msk [vmem:[#allocation2 + $0x1d8] sm:$0xff] %vm60_vm14, %v382_v21 }
 0x166   :  { %1523 = vrot.lane.b32.xlu0 %v6262_v28, %s5871_s14  ;;  %1525 = vrot.lane.b32.xlu1 %v6593_v14, %s5871_s14 }
 0x167   :  { %2248 = vmatprep.subr.mxu1 %v391_v51 }
 0x168   :  { %v6665_v32 = vpop.permute.xlu0 %863  ;;  %v860_v28 = vpop.permute.xlu1 %859  ;;  %2249 = vmatpush1.msra.mxu1 %v390_v31 }
 0x169   :  { %v885_v39 = vsel %vm883_vm0, %v862_v49, %v6665_v32  ;;  %v884_v48 = vsel %vm883_vm0, %v860_v28, %v862_v49 }
 0x16a   :  { %1035 = vrot.lane.b32.xlu0 %v6402_v33, %s5878_s22  ;;  %1037 = vrot.lane.b32.xlu1 %v6339_v11, %s5878_s22 }
 0x16b   :  { %2108 = vmatprep.subr.mxu0 %v885_v39 }
 0x16c   :  { %v370_v44 = vpop.permute.xlu0 %369  ;;  %v372_v55 = vpop.permute.xlu1 %371  ;;  %2109 = vmatpush2.msra.mxu0 %v884_v48 }
 0x16d   :  { %v386_v4 = vsel %vm9109_vm4, %v6200_v54, %v370_v44  ;;  %v387_v56 = vsel %vm9109_vm4, %v370_v44, %v372_v55  ;;  %406 = vst.msk [vmem:[#allocation2 + $0x1b0] sm:$0xff] %vm60_vm14, %v372_v55  ;;  %vm659_vm4 = vcmask 752640  }
 0x16e   :  { %1513 = vrot.lane.b32.xlu0 %v6282_v36, %s5871_s14  ;;  %1515 = vrot.lane.b32.xlu1 %v6603_v26, %s5871_s14 }
 0x16f   :  { %2250 = vmatprep.subr.mxu1 %v387_v56 }
 0x170   :  { %v795_v60 = vpop.permute.xlu0 %794  ;;  %v6682_v24 = vpop.permute.xlu1 %796  ;;  %2251 = vmatpush1.msra.mxu1 %v386_v4 }
 0x171   :  { %v811_v63 = vsel %vm804_vm2, %v795_v60, %v6682_v24 }
 0x172   :  { %1023 = vrot.lane.b32.xlu0 %v6446_v58, %s5878_s22  ;;  %1025 = vrot.lane.b32.xlu1 %v6359_v20, %s5878_s22 }
 0x173   :  { %2110 = vmatprep.subr.mxu0 %v811_v63 }
 0x174   :  { %v793_v54 = vpop.permute.xlu0 %792  ;;  %v311_v36 = vpop.permute.xlu1 %310 }
 0x175   :  { %v810_v7 = vsel %vm804_vm2, %v793_v54, %v795_v60  ;;  %v321_v42 = vsel %vm9110_vm6, %v6222_v8, %v311_v36 }
 0x176   :  { %956 = vrot.lane.b32.xlu0 %v6402_v33, %s5879_s11  ;;  %958 = vrot.lane.b32.xlu1 %v6339_v11, %s5879_s11 }
 0x177   :  { %2111 = vmatpush2.msra.mxu0 %v810_v7 }
 0x178   :  { %v313_v16 = vpop.permute.xlu0 %312  ;;  %v783_v34 = vpop.permute.xlu1 %782 }
 0x179   :  { %v322_v2 = vsel %vm9110_vm6, %v311_v36, %v313_v16  ;;  %342 = vst.msk [vmem:[#allocation2 + $0x188] sm:$0xff] %vm60_vm14, %v313_v16 }
 0x17a   :  { %944 = vrot.lane.b32.xlu0 %v6446_v58, %s5879_s11  ;;  %946 = vrot.lane.b32.xlu1 %v6359_v20, %s5879_s11 }
 0x17b   :  { %2252 = vmatprep.subr.mxu1 %v322_v2 }
 0x17c   :  { %v6703_v21 = vpop.permute.xlu0 %784  ;;  %v781_v49 = vpop.permute.xlu1 %780  ;;  %2253 = vmatpush1.msra.mxu1 %v321_v42 }
 0x17d   :  { %v806_v51 = vsel %vm804_vm2, %v783_v34, %v6703_v21  ;;  %v805_v31 = vsel %vm804_vm2, %v781_v49, %v783_v34 }
 0x17e   :  { %1430 = vrot.lane.b32.xlu0 %v6402_v33, %s5873_s16  ;;  %1432 = vrot.lane.b32.xlu1 %v6339_v11, %s5873_s16 }
 0x17f   :  { %2112 = vmatprep.subr.mxu0 %v806_v51 }
 0x180   :  { %v301_v28 = vpop.permute.xlu0 %300  ;;  %v303_v39 = vpop.permute.xlu1 %302  ;;  %2113 = vmatpush2.msra.mxu0 %v805_v31 }
 0x181   :  { %v317_v8 = vsel %vm9110_vm6, %v6248_v22, %v301_v28  ;;  %v318_v48 = vsel %vm9110_vm6, %v301_v28, %v303_v39  ;;  %337 = vst.msk [vmem:[#allocation2 + $0x160] sm:$0xff] %vm60_vm14, %v303_v39  ;;  %vm590_vm6 = vcmask 760832  }
 0x182   :  { %877 = vrot.lane.b32.xlu0 %v6402_v33, %s5880_s23  ;;  %879 = vrot.lane.b32.xlu1 %v6339_v11, %s5880_s23 }
 0x183   :  { %2254 = vmatprep.subr.mxu1 %v318_v48 }
 0x184   :  { %v721_v44 = vpop.permute.xlu0 %720  ;;  %v6720_v55 = vpop.permute.xlu1 %722  ;;  %2255 = vmatpush1.msra.mxu1 %v317_v8 }
 0x185   :  { %v733_v4 = vsel %vm60_vm14, %v721_v44, %v6720_v55 }
 0x186   :  { %1418 = vrot.lane.b32.xlu0 %v6446_v58, %s5873_s16  ;;  %1420 = vrot.lane.b32.xlu1 %v6359_v20, %s5873_s16 }
 0x187   :  { %2114 = vmatprep.subr.mxu0 %v733_v4 }
 0x188   :  { %v719_v22 = vpop.permute.xlu0 %718  ;;  %v242_v56 = vpop.permute.xlu1 %241 }
 0x189   :  { %v732_v60 = vsel %vm60_vm14, %v719_v22, %v721_v44  ;;  %v252_v7 = vsel %vm245_vm1, %v6265_v29, %v242_v56 }
 0x18a   :  { %865 = vrot.lane.b32.xlu0 %v6446_v58, %s5880_s23  ;;  %867 = vrot.lane.b32.xlu1 %v6359_v20, %s5880_s23 }
 0x18b   :  { %2115 = vmatpush2.msra.mxu0 %v732_v60 }
 0x18c   :  { %v244_v63 = vpop.permute.xlu0 %243  ;;  %v711_v54 = vpop.permute.xlu1 %710 }
 0x18d   :  { %v253_v36 = vsel %vm245_vm1, %v242_v56, %v244_v63  ;;  %273 = vst.msk [vmem:[#allocation2 + $0x138] sm:$0xff] %vm60_vm14, %v244_v63 }
 0x18e   :  { %1351 = vrot.lane.b32.xlu0 %v6402_v33, %s5874_s17  ;;  %1353 = vrot.lane.b32.xlu1 %v6339_v11, %s5874_s17 }
 0x18f   :  { %2256 = vmatprep.subr.mxu1 %v253_v36 }
 0x190   :  { %v6741_v16 = vpop.permute.xlu0 %712  ;;  %v709_v34 = vpop.permute.xlu1 %708  ;;  %2257 = vmatpush1.msra.mxu1 %v252_v7 }
 0x191   :  { %v729_v2 = vsel %vm60_vm14, %v711_v54, %v6741_v16  ;;  %v728_v42 = vsel %vm60_vm14, %v709_v34, %v711_v54 }
 0x192   :  { %798 = vrot.lane.b32.xlu0 %v6402_v33, %s5881_s28  ;;  %800 = vrot.lane.b32.xlu1 %v6339_v11, %s5881_s28 }
 0x193   :  { %2116 = vmatprep.subr.mxu0 %v729_v2 }
 0x194   :  { %v232_v49 = vpop.permute.xlu0 %231  ;;  %v234_v51 = vpop.permute.xlu1 %233  ;;  %2117 = vmatpush2.msra.mxu0 %v728_v42  ;;  %v6795_v42 = vld [vmem:[%s9091_s1 + $0x38] sm:$0xff] }
 0x195   :  { %v248_v29 = vsel %vm245_vm1, %v6284_v38, %v232_v49  ;;  %v249_v31 = vsel %vm245_vm1, %v232_v49, %v234_v51  ;;  %268 = vst.msk [vmem:[#allocation2 + $0x110] sm:$0xff] %vm60_vm14, %v234_v51  ;;  %5675 = vmatprep.mubr.msk.f32.mxu1 %vm9112_vm7, %v6795_v42 }
 0x196   :  { %1339 = vrot.lane.b32.xlu0 %v6446_v58, %s5874_s17  ;;  %1341 = vrot.lane.b32.xlu1 %v6359_v20, %s5874_s17 }
 0x197   :  { %2258 = vmatprep.subr.mxu1 %v249_v31  ;;  %v6825_v31 = vld [vmem:[%s9091_s1 + $0x50] sm:$0xff] }
 0x198   :  { %v652_v28 = vpop.permute.xlu0 %651  ;;  %v6758_v39 = vpop.permute.xlu1 %653  ;;  %2259 = vmatpush1.msra.mxu1 %v248_v29  ;;  %v6816_v29 = vld [vmem:[%s9091_s1 + $0x58] sm:$0xff] }
 0x199   :  { %v665_v8 = vsel %vm659_vm4, %v652_v28, %v6758_v39 }
 0x19a   :  { %786 = vrot.lane.b32.xlu0 %v6446_v58, %s5881_s28  ;;  %788 = vrot.lane.b32.xlu1 %v6359_v20, %s5881_s28 }
 0x19b   :  { %2118 = vmatprep.subr.mxu0 %v665_v8 }
 0x19c   :  { %v650_v38 = vpop.permute.xlu0 %649  ;;  %v173_v48 = vpop.permute.xlu1 %172 }
 0x19d   :  { %v664_v44 = vsel %vm659_vm4, %v650_v38, %v652_v28  ;;  %v183_v60 = vsel %vm176_vm3, %v6306_v50, %v173_v48 }
 0x19e   :  { %1272 = vrot.lane.b32.xlu0 %v6402_v33, %s5875_s18  ;;  %1274 = vrot.lane.b32.xlu1 %v6339_v11, %s5875_s18 }
 0x19f   :  { %2119 = vmatpush2.msra.mxu0 %v664_v44  ;;  %v6843_v44 = vld [vmem:[%s9091_s1 + $0x70] sm:$0xff] }
 0x1a0   :  { %v175_v4 = vpop.permute.xlu0 %174  ;;  %v642_v22 = vpop.permute.xlu1 %641 }
 0x1a1   :  { %v184_v56 = vsel %vm176_vm3, %v173_v48, %v175_v4  ;;  %204 = vst.msk [vmem:[#allocation2 + $0xe8] sm:$0xff] %vm60_vm14, %v175_v4  ;;  %v6834_v48 = vld [vmem:[%s9091_s1 + $0x78] sm:$0xff] }
 0x1a2   :  { %724 = vrot.lane.b32.xlu0 %v6493_v40, %s5882_s30  ;;  %726 = vrot.lane.b32.xlu1 %v6339_v11, %s5882_s30 }
 0x1a3   :  { %2260 = vmatprep.subr.mxu1 %v184_v56 }
 0x1a4   :  { %v6779_v33 = vpop.permute.xlu0 %643  ;;  %v640_v63 = vpop.permute.xlu1 %639  ;;  %2261 = vmatpush1.msra.mxu1 %v183_v60 }
 0x1a5   :  { %v661_v54 = vsel %vm659_vm4, %v642_v22, %v6779_v33  ;;  %v660_v36 = vsel %vm659_vm4, %v640_v63, %v642_v22 }
 0x1a6   :  { %1260 = vrot.lane.b32.xlu0 %v6446_v58, %s5875_s18  ;;  %1262 = vrot.lane.b32.xlu1 %v6359_v20, %s5875_s18 }
 0x1a7   :  { %2120 = vmatprep.subr.mxu0 %v661_v54 }
 0x1a8   :  { %v163_v7 = vpop.permute.xlu0 %162  ;;  %v165_v34 = vpop.permute.xlu1 %164  ;;  %2121 = vmatpush2.msra.mxu0 %v660_v36 }
 0x1a9   :  { %v179_v50 = vsel %vm176_vm3, %v6328_v62, %v163_v7  ;;  %v180_v2 = vsel %vm176_vm3, %v163_v7, %v165_v34  ;;  %199 = vst.msk [vmem:[#allocation2 + $0xc0] sm:$0xff] %vm60_vm14, %v165_v34  ;;  %v6804_v62 = vld [vmem:[%s9091_s1 + $0x30] sm:$0xff] }
 0x1aa   :  { %714 = vrot.lane.b32.xlu0 %v6515_v61, %s5882_s30  ;;  %716 = vrot.lane.b32.xlu1 %v6359_v20, %s5882_s30 }
 0x1ab   :  { %2262 = vmatprep.subr.mxu1 %v180_v2  ;;  %2222 = vmatmul.mubr.f32.gmra.mxu1 %v6804_v62 }
 0x1ac   :  { %v583_v58 = vpop.permute.xlu0 %582  ;;  %v6808_v49 = vpop.permute.xlu1 %584  ;;  %2263 = vmatpush1.msra.mxu1 %v179_v50  ;;  %5676 = vmatprep.mubr.msk.f32.mxu1 %vm9112_vm7, %v6816_v29  ;;  %v6874_v50 = vld [vmem:[%s9091_s1 + $0x28] sm:$0xff] }
 0x1ad   :  { %v596_v51 = vsel %vm590_vm6, %v583_v58, %v6808_v49 }
 0x1ae   :  { %1193 = vrot.lane.b32.xlu0 %v6493_v40, %s5876_s20  ;;  %1195 = vrot.lane.b32.xlu1 %v6339_v11, %s5876_s20 }
 0x1af   :  { %2122 = vmatprep.subr.mxu0 %v596_v51  ;;  %2228 = vmatmul.mubr.f32.gmra.mxu1 %v6825_v31  ;;  %v6888_v51 = vld [vmem:[%s9091_s1 + $0x20] sm:$0xff] }
 0x1b0   :  { %v581_v28 = vpop.permute.xlu0 %580  ;;  %v104_v8 = vpop.permute.xlu1 %103  ;;  %5677 = vmatprep.mubr.msk.f32.mxu1 %vm9112_vm7, %v6834_v48 }
 0x1b1   :  { %v595_v38 = vsel %vm590_vm6, %v581_v28, %v583_v58  ;;  %v114_v60 = vsel %vm9111_vm5, %v6362_v1, %v104_v8  ;;  %v6869_v1 = vld [vmem:[%s9091_s1] sm:$0xff] }
 0x1b2   :  { %655 = vrot.lane.b32.xlu0 %v6493_v40, %s5883_s27  ;;  %657 = vrot.lane.b32.xlu1 %v6339_v11, %s5883_s27 }
 0x1b3   :  { %2123 = vmatpush2.msra.mxu0 %v595_v38  ;;  %2234 = vmatmul.mubr.f32.gmra.mxu1 %v6843_v44  ;;  %v5885_v38 = vmov 0  }
 0x1b4   :  { %v106_v4 = vpop.permute.xlu0 %105  ;;  %v573_v22 = vpop.permute.xlu1 %572  ;;  %2304 = vmatprep.mubr.f32.mxu1 %v6571_v10  ;;  %5816 = vset.pattern.permute.xlu0 %v5885_v38 }
 0x1b5   :  { %v115_v56 = vsel %vm9111_vm5, %v104_v8, %v106_v4  ;;  %135 = vst.msk [vmem:[#allocation2 + $0x98] sm:$0xff] %vm60_vm14, %v106_v4  ;;  %v53_v8 = vld [vmem:[%s9090_s0 + $0x40] sm:$0xff]  ;;  %5817 = vset.pattern.permute.xlu1 %v5885_v38 }
 0x1b6   :  { %1181 = vrot.lane.b32.xlu0 %v6515_v61, %s5876_s20  ;;  %1183 = vrot.lane.b32.xlu1 %v6359_v20, %s5876_s20 }
 0x1b7   :  { %2264 = vmatprep.subr.mxu1 %v115_v56  ;;  %v48_v56 = vld [vmem:[%s9090_s0 + $0x10] sm:$0xff] }
 0x1b8   :  { %v6857_v63 = vpop.permute.xlu0 %574  ;;  %v571_v54 = vpop.permute.xlu1 %570  ;;  %2265 = vmatpush1.msra.mxu1 %v114_v60 }
 0x1b9   :  { %v592_v36 = vsel %vm590_vm6, %v573_v22, %v6857_v63  ;;  %v591_v7 = vsel %vm590_vm6, %v571_v54, %v573_v22 }
 0x1ba   :  { %645 = vrot.lane.b32.xlu0 %v6515_v61, %s5883_s27  ;;  %647 = vrot.lane.b32.xlu1 %v6359_v20, %s5883_s27 }
 0x1bb   :  { %2124 = vmatprep.subr.mxu0 %v592_v36 }
 0x1bc   :  { %v94_v10 = vpop.permute.xlu0 %93  ;;  %v96_v34 = vpop.permute.xlu1 %95  ;;  %2125 = vmatpush2.msra.mxu0 %v591_v7 }
 0x1bd   :  { %v110_v2 = vsel %vm9111_vm5, %v6404_v35, %v94_v10  ;;  %v111_v58 = vsel %vm9111_vm5, %v94_v10, %v96_v34  ;;  %130 = vst.msk [vmem:[#allocation2 + $0x70] sm:$0xff] %vm60_vm14, %v96_v34  ;;  %2127 = vmatmul.mubr.f32.vlgmr.msra.gmra.mxu0 %v6869_v1  ;;  %v6926_v10 = vld [vmem:[%s9091_s1 + $0x68] sm:$0xff] }
 0x1be   :  { %1727 = vrot.lane.b32.xlu0 %v6339_v11, %s5872_s15  ;;  %1729 = vrot.lane.b32.xlu1 %v6593_v14, %s5872_s15 }
 0x1bf   :  { %2266 = vmatprep.subr.mxu1 %v111_v58  ;;  %2132 = vmatprep.mubr.f32.mxu0 %v6874_v50 }
 0x1c0   :  { %v1660_v35 = vpop.permute.xlu0 %1659  ;;  %v1662_v28 = vpop.permute.xlu1 %1661  ;;  %2267 = vmatpush1.msra.mxu1 %v110_v2  ;;  %v6937_v2 = vld [vmem:[%s9091_s1 + $0x60] sm:$0xff] }
 0x1c1   :  { %v1669_v4 = vsel %vm245_vm1, %v6120_v17, %v1660_v35  ;;  %v1670_v22 = vsel %vm245_vm1, %v1660_v35, %v1662_v28  ;;  %1690 = vst.msk [vmem:[#allocation2 + $0x778] sm:$0xff] %vm60_vm14, %v1662_v28  ;;  %2268 = vmatprep.subr.mxu1 %v6493_v40  ;;  %2133 = vmatmul.mubr.f32.gmra.mxu0 %v6888_v51  ;;  %v6910_v17 = vld [vmem:[%s9091_s1 + $0x48] sm:$0xff] }
 0x1c2   :  { %586 = vrot.lane.b32.xlu0 %v6493_v40, %s5884_s29  ;;  %588 = vrot.lane.b32.xlu1 %v6339_v11, %s5884_s29  ;;  %v6916_v11 = vld [vmem:[%s9091_s1 + $0x40] sm:$0xff] }
 0x1c3   :  { %2329 = vmatprep.subr.mxu0 %v1670_v22  ;;  %2269 = vmatpush1.msra.mxu1 %v53_v8 }
 0x1c4   :  { %v1650_v60 = vpop.permute.xlu0 %1649  ;;  %v1652_v54 = vpop.permute.xlu1 %1651  ;;  %2330 = vmatpush1.msra.mxu0 %v1669_v4  ;;  %2270 = vmatprep.subr.mxu1 %v6515_v61 }
 0x1c5   :  { %v1665_v36 = vsel %vm245_vm1, %v6142_v27, %v1650_v60  ;;  %v1666_v7 = vsel %vm245_vm1, %v1650_v60, %v1652_v54  ;;  %1685 = vst.msk [vmem:[#allocation2 + $0x750] sm:$0xff] %vm60_vm14, %v1652_v54  ;;  %2271 = vmatpush1.msra.mxu1 %v48_v56  ;;  %2138 = vmatprep.mubr.f32.mxu0 %v6910_v17  ;;  %vm9114_vm1 = vcmask 1014784  }
 0x1c6   :  { %1717 = vrot.lane.b32.xlu0 %v6359_v20, %s5872_s15  ;;  %1719 = vrot.lane.b32.xlu1 %v6603_v26, %s5872_s15 }
 0x1c7   :  { %2331 = vmatprep.subr.mxu0 %v1666_v7  ;;  %2139 = vmatmul.mubr.f32.gmra.mxu0 %v6916_v11 }
 0x1c8   :  { %v1592_v27 = vpop.permute.xlu0 %1591  ;;  %v1594_v34 = vpop.permute.xlu1 %1593  ;;  %2332 = vmatpush1.msra.mxu0 %v1665_v36  ;;  %2144 = vmatprep.mubr.f32.mxu0 %v6926_v10 }
 0x1c9   :  { %v1601_v58 = vsel %vm176_vm3, %v6164_v37, %v1592_v27  ;;  %v1602_v35 = vsel %vm176_vm3, %v1592_v27, %v1594_v34  ;;  %1622 = vst.msk [vmem:[#allocation2 + $0x728] sm:$0xff] %vm60_vm14, %v1594_v34  ;;  %v6953_v37 = vld [vmem:[%s9091_s1 + $0x18] sm:$0xff] }
 0x1ca   :  { %576 = vrot.lane.b32.xlu0 %v6515_v61, %s5884_s29  ;;  %578 = vrot.lane.b32.xlu1 %v6359_v20, %s5884_s29 }
 0x1cb   :  { %2333 = vmatprep.subr.mxu0 %v1602_v35  ;;  %2145 = vmatmul.mubr.f32.gmra.mxu0 %v6937_v2 }
 0x1cc   :  { %v1115_v28 = vpop.permute.xlu0 %1114  ;;  %v6948_v8 = vpop.permute.xlu1 %1116  ;;  %2334 = vmatpush1.msra.mxu0 %v1601_v58  ;;  %5678 = vmatprep.mubr.msk.f32.mxu0 %vm9112_vm7, %v6953_v37 }
 0x1cd   :  { %v1128_v38 = vsel %vm1120_vm12, %v6472_v19, %v1115_v28  ;;  %v1129_v20 = vsel %vm1120_vm12, %v1115_v28, %v6948_v8 }
 0x1ce   :  { %1118 = vrot.lane.b32.xlu0 %v6593_v14, %s5877_s21  ;;  %1106 = vrot.lane.b32.xlu1 %v6603_v26, %s5877_s21 }
 0x1cf   :  { %2272 = vmatprep.subr.mxu1 %v1129_v20 }
 0x1d0   :  { %v1582_v4 = vpop.permute.xlu0 %1581  ;;  %v1584_v22 = vpop.permute.xlu1 %1583  ;;  %2273 = vmatpush2.msra.mxu1 %v1128_v38 }
 0x1d1   :  { %v1597_v56 = vsel %vm176_vm3, %v6186_v47, %v1582_v4  ;;  %v1598_v60 = vsel %vm176_vm3, %v1582_v4, %v1584_v22  ;;  %1617 = vst.msk [vmem:[#allocation2 + $0x700] sm:$0xff] %vm60_vm14, %v1584_v22  ;;  %v55_v4 = vld [vmem:[%s9090_s0 + $0x50] sm:$0xff] }
 0x1d2   :  { %1039 = vrot.lane.b32.xlu0 %v6593_v14, %s5878_s22  ;;  %1027 = vrot.lane.b32.xlu1 %v6603_v26, %s5878_s22  ;;  %66 = vst.msk [vmem:[#allocation2 + $0x48] sm:$0xff] %vm60_vm14, %v55_v4 }
 0x1d3   :  { %2335 = vmatprep.subr.mxu0 %v1598_v60 }
 0x1d4   :  { %v1103_v19 = vpop.permute.xlu0 %1102  ;;  %v6973_v54 = vpop.permute.xlu1 %1104  ;;  %2336 = vmatpush1.msra.mxu0 %v1597_v56  ;;  %v50_v56 = vld [vmem:[%s9090_s0 + $0x20] sm:$0xff] }
 0x1d5   :  { %v1123_v36 = vsel %vm1120_vm12, %v6499_v45, %v1103_v19  ;;  %v1124_v47 = vsel %vm1120_vm12, %v1103_v19, %v6973_v54  ;;  %61 = vst.msk [vmem:[#allocation2 + $0x20] sm:$0xff] %vm60_vm14, %v50_v56  ;;  %v2026_v56 = vld [vmem:[%s9092_s2 + $0x8] sm:$0xff] }
 0x1d6   :  { %960 = vrot.lane.b32.xlu0 %v6593_v14, %s5879_s11  ;;  %948 = vrot.lane.b32.xlu1 %v6603_v26, %s5879_s11 }
 0x1d7   :  { %2274 = vmatprep.subr.mxu1 %v1124_v47 }
 0x1d8   :  { %v1524_v7 = vpop.permute.xlu0 %1523  ;;  %v1526_v27 = vpop.permute.xlu1 %1525  ;;  %2275 = vmatpush2.msra.mxu1 %v1123_v36  ;;  %v5854_v36 = vld [vmem:[#allocation2 + $0x680] sm:$0xff] }
 0x1d9   :  { %v1533_v34 = vsel %vm9111_vm5, %v6208_v57, %v1524_v7  ;;  %v1534_v58 = vsel %vm9111_vm5, %v1524_v7, %v1526_v27  ;;  %1554 = vst.msk [vmem:[#allocation2 + $0x6d8] sm:$0xff] %vm60_vm14, %v1526_v27  ;;  %v5855_v7 = vld [vmem:[#allocation2 + $0x658] sm:$0xff] }
 0x1da   :  { %881 = vrot.lane.b32.xlu0 %v6593_v14, %s5880_s23  ;;  %869 = vrot.lane.b32.xlu1 %v6603_v26, %s5880_s23 }
 0x1db   :  { %2337 = vmatprep.subr.mxu0 %v1534_v58 }
 0x1dc   :  { %v1036_v45 = vpop.permute.xlu0 %1035  ;;  %v6991_v35 = vpop.permute.xlu1 %1037  ;;  %2338 = vmatpush1.msra.mxu0 %v1533_v34 }
 0x1dd   :  { %v1049_v28 = vsel %vm1041_vm13, %v6526_v0, %v1036_v45  ;;  %v1050_v57 = vsel %vm1041_vm13, %v1036_v45, %v6991_v35 }
 0x1de   :  { %802 = vrot.lane.b32.xlu0 %v6593_v14, %s5881_s28  ;;  %790 = vrot.lane.b32.xlu1 %v6603_v26, %s5881_s28 }
 0x1df   :  { %2276 = vmatprep.subr.mxu1 %v1050_v57 }
 0x1e0   :  { %v1514_v38 = vpop.permute.xlu0 %1513  ;;  %v1516_v20 = vpop.permute.xlu1 %1515  ;;  %2277 = vmatpush2.msra.mxu1 %v1049_v28 }
 0x1e1   :  { %v1529_v0 = vsel %vm9111_vm5, %v6230_v12, %v1514_v38  ;;  %v1530_v22 = vsel %vm9111_vm5, %v1514_v38, %v1516_v20  ;;  %1549 = vst.msk [vmem:[#allocation2 + $0x6b0] sm:$0xff] %vm60_vm14, %v1516_v20  ;;  %v2027_v20 = vld [vmem:[%s9092_s2 + $0x10] sm:$0xff]  ;;  %vm9115_vm5 = vmmov %vm9114_vm1 }
 0x1e2   :  { %1434 = vrot.lane.b32.xlu0 %v6593_v14, %s5873_s16  ;;  %1422 = vrot.lane.b32.xlu1 %v6603_v26, %s5873_s16 }
 0x1e3   :  { %2339 = vmatprep.subr.mxu0 %v1530_v22 }
 0x1e4   :  { %v1024_v12 = vpop.permute.xlu0 %1023  ;;  %v7017_v60 = vpop.permute.xlu1 %1025  ;;  %2340 = vmatpush1.msra.mxu0 %v1529_v0 }
 0x1e5   :  { %v1044_v19 = vsel %vm1041_vm13, %v6559_v6, %v1024_v12  ;;  %v1045_v14 = vsel %vm1041_vm13, %v1024_v12, %v7017_v60  ;;  %2341 = vmatprep.subr.mxu0 %v5854_v36 }
 0x1e6   :  { %1355 = vrot.lane.b32.xlu0 %v6648_v25, %s5874_s17  ;;  %1343 = vrot.lane.b32.xlu1 %v6657_v30, %s5874_s17 }
 0x1e7   :  { %2278 = vmatprep.subr.mxu1 %v1045_v14  ;;  %2342 = vmatpush1.msra.mxu0 %v6493_v40 }
 0x1e8   :  { %v957_v26 = vpop.permute.xlu0 %956  ;;  %v7028_v47 = vpop.permute.xlu1 %958  ;;  %2279 = vmatpush2.msra.mxu1 %v1044_v19  ;;  %2343 = vmatprep.subr.mxu0 %v5855_v7 }
 0x1e9   :  { %v970_v6 = vsel %vm962_vm15, %v6582_v18, %v957_v26  ;;  %v971_v27 = vsel %vm962_vm15, %v957_v26, %v7028_v47  ;;  %2344 = vmatpush1.msra.mxu0 %v6515_v61  ;;  %v2028_v61 = vld [vmem:[%s9092_s2 + $0x18] sm:$0xff] }
 0x1ea   :  { %1276 = vrot.lane.b32.xlu0 %v6648_v25, %s5875_s18  ;;  %1264 = vrot.lane.b32.xlu1 %v6657_v30, %s5875_s18  ;;  %s9126_s18 = smov 96  }
 0x1eb   :  { %2280 = vmatprep.subr.mxu1 %v971_v27 }
 0x1ec   :  { %v945_v40 = vpop.permute.xlu0 %944  ;;  %v7039_v34 = vpop.permute.xlu1 %946  ;;  %2281 = vmatpush2.msra.mxu1 %v970_v6 }
 0x1ed   :  { %v965_v58 = vsel %vm962_vm15, %v6613_v46, %v945_v40  ;;  %v966_v18 = vsel %vm962_vm15, %v945_v40, %v7039_v34 }
 0x1ee   :  { %1197 = vrot.lane.b32.xlu0 %v6648_v25, %s5876_s20  ;;  %1185 = vrot.lane.b32.xlu1 %v6657_v30, %s5876_s20  ;;  %v2025_v25 = vld [vmem:[%s9092_s2] sm:$0xff] }
 0x1ef   :  { %2282 = vmatprep.subr.mxu1 %v966_v18 }
 0x1f0   :  { %v1431_v45 = vpop.permute.xlu0 %1430  ;;  %v7052_v28 = vpop.permute.xlu1 %1432  ;;  %2283 = vmatpush2.msra.mxu1 %v965_v58 }
 0x1f1   :  { %v1444_v46 = vsel %vm1436_vm8, %v6292_v41, %v1431_v45  ;;  %v1445_v57 = vsel %vm1436_vm8, %v1431_v45, %v7052_v28 }
 0x1f2   :  { %2345 = vmatprep.subr.mxu0 %v1445_v57  ;;  %2046 = vperm.xlu0 %5816, %v2028_v61  }
 0x1f3   :  { %2346 = vmatpush1.msra.mxu0 %v1444_v46  ;;  %2041 = vperm.xlu1 %5817, %v2027_v20  }
 0x1f4   :  { %v878_v30 = vpop.permute.xlu0 %877  ;;  %v7061_v38 = vpop.permute.xlu1 %879 }
 0x1f5   :  { %v891_v41 = vsel %vm883_vm0, %v6630_v9, %v878_v30  ;;  %v892_v4 = vsel %vm883_vm0, %v878_v30, %v7061_v38 }
 0x1f6   :  { %2284 = vmatprep.subr.mxu1 %v892_v4  ;;  %2031 = vperm.xlu0 %5816, %v2025_v25  }
 0x1f7   :  { %2285 = vmatpush2.msra.mxu1 %v891_v41  ;;  %2036 = vperm.xlu1 %5817, %v2026_v56  }
 0x1f8   :  { %v1419_v0 = vpop.permute.xlu0 %1418  ;;  %v7070_v22 = vpop.permute.xlu1 %1420 }
 0x1f9   :  { %v1439_v12 = vsel %vm1436_vm8, %v6314_v53, %v1419_v0  ;;  %v1440_v9 = vsel %vm1436_vm8, %v1419_v0, %v7070_v22 }
 0x1fa   :  { %2347 = vmatprep.subr.mxu0 %v1440_v9 }
 0x1fb   :  { %2348 = vmatpush1.msra.mxu0 %v1439_v12 }
 0x1fc   :  { %v866_v19 = vpop.permute.xlu0 %865  ;;  %v7079_v14 = vpop.permute.xlu1 %867 }
 0x1fd   :  { %v886_v36 = vsel %vm883_vm0, %v6665_v32, %v866_v19  ;;  %v887_v26 = vsel %vm883_vm0, %v866_v19, %v7079_v14 }
 0x1fe   :  { %2286 = vmatprep.subr.mxu1 %v887_v26 }
 0x1ff   :  { %2287 = vmatpush2.msra.mxu1 %v886_v36 }
 0x200   :  { %v1352_v7 = vpop.permute.xlu0 %1351  ;;  %v7085_v6 = vpop.permute.xlu1 %1353 }
 0x201   :  { %v1365_v53 = vsel %vm1357_vm9, %v6342_v13, %v1352_v7  ;;  %v1366_v27 = vsel %vm1357_vm9, %v1352_v7, %v7085_v6 }
 0x202   :  { %2349 = vmatprep.subr.mxu0 %v1366_v27 }
 0x203   :  { %2350 = vmatpush1.msra.mxu0 %v1365_v53 }
 0x204   :  { %v799_v40 = vpop.permute.xlu0 %798  ;;  %v7091_v58 = vpop.permute.xlu1 %800 }
 0x205   :  { %v812_v32 = vsel %vm804_vm2, %v6682_v24, %v799_v40  ;;  %v813_v18 = vsel %vm804_vm2, %v799_v40, %v7091_v58 }
 0x206   :  { %2288 = vmatprep.subr.mxu1 %v813_v18 }
 0x207   :  { %2289 = vmatpush2.msra.mxu1 %v812_v32 }
 0x208   :  { %v1340_v61 = vpop.permute.xlu0 %1339  ;;  %v7097_v45 = vpop.permute.xlu1 %1341 }
 0x209   :  { %v1360_v13 = vsel %vm1357_vm9, %v6370_v3, %v1340_v61  ;;  %v1361_v46 = vsel %vm1357_vm9, %v1340_v61, %v7097_v45 }
 0x20a   :  { %2351 = vmatprep.subr.mxu0 %v1361_v46 }
 0x20b   :  { %2352 = vmatpush1.msra.mxu0 %v1360_v13 }
 0x20c   :  { %v787_v57 = vpop.permute.xlu0 %786  ;;  %v7103_v25 = vpop.permute.xlu1 %788 }
 0x20d   :  { %v807_v24 = vsel %vm804_vm2, %v6703_v21, %v787_v57  ;;  %v808_v30 = vsel %vm804_vm2, %v787_v57, %v7103_v25 }
 0x20e   :  { %2290 = vmatprep.subr.mxu1 %v808_v30 }
 0x20f   :  { %2291 = vmatpush2.msra.mxu1 %v807_v24 }
 0x210   :  { %v1273_v20 = vpop.permute.xlu0 %1272  ;;  %v7109_v41 = vpop.permute.xlu1 %1274 }
 0x211   :  { %v1286_v3 = vsel %vm1278_vm10, %v6417_v43, %v1273_v20  ;;  %v1287_v4 = vsel %vm1278_vm10, %v1273_v20, %v7109_v41 }
 0x212   :  { %2353 = vmatprep.subr.mxu0 %v1287_v4 }
 0x213   :  { %2354 = vmatpush1.msra.mxu0 %v1286_v3 }
 0x214   :  { %v725_v0 = vpop.permute.xlu0 %724  ;;  %v727_v56 = vpop.permute.xlu1 %726 }
 0x215   :  { %v734_v21 = vsel %vm60_vm14, %v6720_v55, %v725_v0  ;;  %v735_v12 = vsel %vm60_vm14, %v725_v0, %v727_v56  ;;  %755 = vst.msk [vmem:[#allocation2 + $0x368] sm:$0xff] %vm60_vm14, %v727_v56 }
 0x216   :  { %2292 = vmatprep.subr.mxu1 %v735_v12 }
 0x217   :  { %2293 = vmatpush2.msra.mxu1 %v734_v21 }
 0x218   :  { %v1261_v9 = vpop.permute.xlu0 %1260  ;;  %v7119_v19 = vpop.permute.xlu1 %1262 }
 0x219   :  { %v1281_v43 = vsel %vm1278_vm10, %v6449_v59, %v1261_v9  ;;  %v1282_v36 = vsel %vm1278_vm10, %v1261_v9, %v7119_v19 }
 0x21a   :  { %2355 = vmatprep.subr.mxu0 %v1282_v36 }
 0x21b   :  { %2356 = vmatpush1.msra.mxu0 %v1281_v43 }
 0x21c   :  { %v715_v26 = vpop.permute.xlu0 %714  ;;  %v717_v7 = vpop.permute.xlu1 %716 }
 0x21d   :  { %v730_v55 = vsel %vm60_vm14, %v6741_v16, %v715_v26  ;;  %v731_v53 = vsel %vm60_vm14, %v715_v26, %v717_v7  ;;  %750 = vst.msk [vmem:[#allocation2 + $0x340] sm:$0xff] %vm60_vm14, %v717_v7 }
 0x21e   :  { %2294 = vmatprep.subr.mxu1 %v731_v53 }
 0x21f   :  { %2295 = vmatpush2.msra.mxu1 %v730_v55 }
 0x220   :  { %v1194_v27 = vpop.permute.xlu0 %1193  ;;  %v7129_v40 = vpop.permute.xlu1 %1195 }
 0x221   :  { %v1207_v59 = vsel %vm1199_vm11, %v6459_v15, %v1194_v27  ;;  %v1208_v32 = vsel %vm1199_vm11, %v1194_v27, %v7129_v40 }
 0x222   :  { %2357 = vmatprep.subr.mxu0 %v1208_v32  ;;  %v5886_v32 = vmov 0.0  }
 0x223   :  { %2358 = vmatpush1.msra.mxu0 %v1207_v59  ;;  %2636 = vst [vmem:[%s9093_s7 + $0x90] sm:$0xff] %v5886_v32  ;;  %2618 = vst [vmem:[%s9093_s7] sm:$0xff] %v5886_v32 }
 0x224   :  { %v656_v18 = vpop.permute.xlu0 %655  ;;  %v658_v61 = vpop.permute.xlu1 %657  ;;  %2622 = vst [vmem:[%s9093_s7 + $0x20] sm:$0xff] %v5886_v32  ;;  %2623 = vst [vmem:[%s9093_s7 + $0x28] sm:$0xff] %v5886_v32 }
 0x225   :  { %v666_v16 = vsel %vm659_vm4, %v6758_v39, %v656_v18  ;;  %v667_v13 = vsel %vm659_vm4, %v656_v18, %v658_v61  ;;  %687 = vst.msk [vmem:[#allocation2 + $0x318] sm:$0xff] %vm60_vm14, %v658_v61  ;;  %v1998_v18 = vld [vmem:[#allocation2 + $0x778] sm:$0xff]  ;;  %2624 = vst [vmem:[%s9093_s7 + $0x30] sm:$0xff] %v5886_v32 }
 0x226   :  { %2296 = vmatprep.subr.mxu1 %v667_v13  ;;  %2628 = vst [vmem:[%s9093_s7 + $0x50] sm:$0xff] %v5886_v32  ;;  %2629 = vst [vmem:[%s9093_s7 + $0x58] sm:$0xff] %v5886_v32 }
 0x227   :  { %2297 = vmatpush2.msra.mxu1 %v666_v16  ;;  %2630 = vst [vmem:[%s9093_s7 + $0x60] sm:$0xff] %v5886_v32  ;;  %2634 = vst [vmem:[%s9093_s7 + $0x80] sm:$0xff] %v5886_v32 }
 0x228   :  { %v1182_v46 = vpop.permute.xlu0 %1181  ;;  %v7139_v57 = vpop.permute.xlu1 %1183  ;;  %2635 = vst [vmem:[%s9093_s7 + $0x88] sm:$0xff] %v5886_v32  ;;  %2640 = vst [vmem:[%s9093_s7 + $0xb0] sm:$0xff] %v5886_v32 }
 0x229   :  { %v1202_v15 = vsel %vm1199_vm11, %v6480_v23, %v1182_v46  ;;  %v1203_v24 = vsel %vm1199_vm11, %v1182_v46, %v7139_v57  ;;  %2641 = vst [vmem:[%s9093_s7 + $0xb8] sm:$0xff] %v5886_v32 }
 0x22a   :  { %2359 = vmatprep.subr.mxu0 %v1203_v24 }
 0x22b   :  { %2360 = vmatpush1.msra.mxu0 %v1202_v15 }
 0x22c   :  { %v646_v30 = vpop.permute.xlu0 %645  ;;  %v648_v20 = vpop.permute.xlu1 %647 }
 0x22d   :  { %v662_v39 = vsel %vm659_vm4, %v6779_v33, %v646_v30  ;;  %v663_v3 = vsel %vm659_vm4, %v646_v30, %v648_v20  ;;  %682 = vst.msk [vmem:[#allocation2 + $0x2f0] sm:$0xff] %vm60_vm14, %v648_v20  ;;  %vm9116_vm4 = vmmov %vm9114_vm1 }
 0x22e   :  { %2298 = vmatprep.subr.mxu1 %v663_v3  ;;  %v1968_v3 = vld [vmem:[#allocation2 + $0x688] sm:$0xff] }
 0x22f   :  { %2299 = vmatpush2.msra.mxu1 %v662_v39 }
 0x230   :  { %v1728_v4 = vpop.permute.xlu0 %1727  ;;  %v1730_v0 = vpop.permute.xlu1 %1729 }
 0x231   :  { %v1737_v23 = vsel %vm9114_vm1, %v6507_v52, %v1728_v4  ;;  %v1738_v56 = vsel %vm9115_vm5, %v1728_v4, %v1730_v0  ;;  %1758 = vst.msk [vmem:[#allocation2 + $0x7c8] sm:$0xff] %vm60_vm14, %v1730_v0  ;;  %vm9117_vm5 = vmmov %vm9114_vm1  ;;  %vm9113_vm1 = vcmask 793600  }
 0x232   :  { %2389 = vmatprep.subr.mxu0 %v1738_v56  ;;  %v1828_v56 = vld [vmem:[#allocation2 + $0x228] sm:$0xff] }
 0x233   :  { %2390 = vmatpush2.msra.mxu0 %v1737_v23 }
 0x234   :  { %v587_v21 = vpop.permute.xlu0 %586  ;;  %v589_v12 = vpop.permute.xlu1 %588 }
 0x235   :  { %v597_v33 = vsel %vm590_vm6, %v6808_v49, %v587_v21  ;;  %v598_v9 = vsel %vm590_vm6, %v587_v21, %v589_v12  ;;  %618 = vst.msk [vmem:[#allocation2 + $0x2c8] sm:$0xff] %vm60_vm14, %v589_v12  ;;  %v7164_v49 = vld [vmem:[%s9091_s1 + $0x10] sm:$0xff]  ;;  %v1963_v21 = vld [vmem:[#allocation2 + $0x660] sm:$0xff] }
 0x236   :  { %2300 = vmatprep.subr.mxu1 %v598_v9 }
 0x237   :  { %2301 = vmatpush2.msra.mxu1 %v597_v33 }
 0x238   :  { %v1718_v43 = vpop.permute.xlu0 %1717  ;;  %v1720_v36 = vpop.permute.xlu1 %1719 }
 0x239   :  { %v1733_v52 = vsel %vm9116_vm4, %v6534_v5, %v1718_v43  ;;  %v1734_v26 = vsel %vm9117_vm5, %v1718_v43, %v1720_v36  ;;  %1753 = vst.msk [vmem:[#allocation2 + $0x7a0] sm:$0xff] %vm60_vm14, %v1720_v36  ;;  %vm9129_vm4 = vcmask 785408  }
 0x23a   :  { %2391 = vmatprep.subr.mxu0 %v1734_v26  ;;  %vm9130_vm5 = vmmov %vm9129_vm4 }
 0x23b   :  { %2392 = vmatpush2.msra.mxu0 %v1733_v52 }
 0x23c   :  { %v577_v7 = vpop.permute.xlu0 %576  ;;  %v579_v55 = vpop.permute.xlu1 %578  ;;  %2394 = vmatmul.mubr.f32.vlgmr.msra.gmra.mxu0 %v7164_v49 }
 0x23d   :  { %v593_v53 = vsel %vm590_vm6, %v6857_v63, %v577_v7  ;;  %v594_v5 = vsel %vm590_vm6, %v577_v7, %v579_v55  ;;  %613 = vst.msk [vmem:[#allocation2 + $0x2a0] sm:$0xff] %vm60_vm14, %v579_v55  ;;  %5679 = vmatprep.mubr.msk.f32.mxu0 %vm9112_vm7, %v6795_v42  ;;  %v1993_v42 = vld [vmem:[#allocation2 + $0x750] sm:$0xff] }
 0x23e   :  { %2302 = vmatprep.subr.mxu1 %v594_v5  ;;  %v1813_v7 = vld [vmem:[#allocation2 + $0x1b0] sm:$0xff] }
 0x23f   :  { %2303 = vmatpush2.msra.mxu1 %v593_v53 }
 0x240   :  { %v1119_v27 = vpop.permute.xlu0 %1118  ;;  %v1107_v59 = vpop.permute.xlu1 %1106  ;;  %2305 = vmatmul.mubr.f32.vlgmr.msra.gmra.mxu1 %v6869_v1  ;;  %2503 = vmatprep.subr.mxu1 %v5886_v32 }
 0x241   :  { %v1130_v63 = vsel %vm1120_vm12, %v6948_v8, %v1119_v27  ;;  %v1125_v61 = vsel %vm1120_vm12, %v6973_v54, %v1107_v59  ;;  %2504 = vmatpush1.msra.mxu1 %v1998_v18  ;;  %2310 = vmatprep.mubr.f32.mxu1 %v6874_v50  ;;  %v1988_v54 = vld [vmem:[#allocation2 + $0x728] sm:$0xff] }
 0x242   :  { %1150 = vst.msk [vmem:[#allocation2 + $0x4f8] sm:$0xff] %vm60_vm14, %v1130_v63  ;;  %1145 = vst.msk [vmem:[#allocation2 + $0x4d0] sm:$0xff] %vm60_vm14, %v1125_v61  ;;  %2505 = vmatprep.subr.mxu1 %v5886_v32  ;;  %2400 = vmatmul.mubr.f32.gmra.mxu0 %v6804_v62  ;;  %v1983_v62 = vld [vmem:[#allocation2 + $0x700] sm:$0xff]  ;;  %v1808_v27 = vld [vmem:[#allocation2 + $0x188] sm:$0xff] }
 0x243   :  { %2506 = vmatpush1.msra.mxu1 %v1993_v42  ;;  %5680 = vmatprep.mubr.msk.f32.mxu0 %vm9112_vm7, %v6816_v29  ;;  %v1798_v42 = vld [vmem:[#allocation2 + $0x138] sm:$0xff] }
 0x244   :  { %v1040_v8 = vpop.permute.xlu0 %1039  ;;  %v1028_v16 = vpop.permute.xlu1 %1027  ;;  %2311 = vmatmul.mubr.f32.gmra.mxu1 %v6888_v51  ;;  %2507 = vmatprep.subr.mxu1 %v5886_v32 }
 0x245   :  { %v1051_v13 = vsel %vm1041_vm13, %v6991_v35, %v1040_v8  ;;  %v1046_v46 = vsel %vm1041_vm13, %v7017_v60, %v1028_v16  ;;  %2508 = vmatpush1.msra.mxu1 %v1988_v54  ;;  %2316 = vmatprep.mubr.f32.mxu1 %v6910_v17  ;;  %v1978_v60 = vld [vmem:[#allocation2 + $0x6d8] sm:$0xff] }
 0x246   :  { %1071 = vst.msk [vmem:[#allocation2 + $0x4a8] sm:$0xff] %vm60_vm14, %v1051_v13  ;;  %1066 = vst.msk [vmem:[#allocation2 + $0x480] sm:$0xff] %vm60_vm14, %v1046_v46  ;;  %2509 = vmatprep.subr.mxu1 %v5886_v32  ;;  %2406 = vmatmul.mubr.f32.gmra.mxu0 %v6825_v31  ;;  %v1838_v31 = vld [vmem:[#allocation2 + $0x278] sm:$0xff]  ;;  %v1793_v13 = vld [vmem:[#allocation2 + $0x110] sm:$0xff] }
 0x247   :  { %2510 = vmatpush1.msra.mxu1 %v1983_v62  ;;  %5681 = vmatprep.mubr.msk.f32.mxu0 %vm9112_vm7, %v6834_v48  ;;  %v1973_v48 = vld [vmem:[#allocation2 + $0x6b0] sm:$0xff]  ;;  %v1868_v46 = vld [vmem:[#allocation2 + $0x368] sm:$0xff] }
 0x248   :  { %v961_v29 = vpop.permute.xlu0 %960  ;;  %v949_v35 = vpop.permute.xlu1 %948  ;;  %2317 = vmatmul.mubr.f32.gmra.mxu1 %v6916_v11  ;;  %2511 = vmatprep.subr.mxu1 %v5886_v32 }
 0x249   :  { %v972_v15 = vsel %vm962_vm15, %v7028_v47, %v961_v29  ;;  %v967_v24 = vsel %vm962_vm15, %v7039_v34, %v949_v35  ;;  %v1918_v30 = vld [vmem:[#allocation2 + $0x4f8] sm:$0xff]  ;;  %2512 = vmatpush1.msra.mxu1 %v1978_v60  ;;  %2322 = vmatprep.mubr.f32.mxu1 %v6926_v10  ;;  %v1913_v20 = vld [vmem:[#allocation2 + $0x4d0] sm:$0xff]  ;;  %v1788_v29 = vld [vmem:[#allocation2 + $0xe8] sm:$0xff] }
 0x24a   :  { %992 = vst.msk [vmem:[#allocation2 + $0x458] sm:$0xff] %vm60_vm14, %v972_v15  ;;  %987 = vst.msk [vmem:[#allocation2 + $0x430] sm:$0xff] %vm60_vm14, %v967_v24  ;;  %5695 = vmatprep.subr.mxu0 %v1918_v30  ;;  %2513 = vmatprep.subr.mxu1 %v5886_v32  ;;  %v1833_v34 = vld [vmem:[#allocation2 + $0x250] sm:$0xff]  ;;  %v1863_v35 = vld [vmem:[#allocation2 + $0x340] sm:$0xff] }
 0x24b   :  { %5696 = vmatpush3.msra.mxu0 %v1838_v31  ;;  %2514 = vmatpush1.msra.mxu1 %v1973_v48  ;;  %v1858_v31 = vld [vmem:[#allocation2 + $0x318] sm:$0xff] }
 0x24c   :  { %v882_v47 = vpop.permute.xlu0 %881  ;;  %v870_v39 = vpop.permute.xlu1 %869  ;;  %5697 = vmatprep.subr.mxu0 %v1913_v20  ;;  %2323 = vmatmul.mubr.f32.gmra.mxu1 %v6937_v2  ;;  %v1778_v20 = vld [vmem:[#allocation2 + $0x98] sm:$0xff] }
 0x24d   :  { %v893_v4 = vsel %vm883_vm0, %v7061_v38, %v882_v47  ;;  %v888_v0 = vsel %vm883_vm0, %v7079_v14, %v870_v39  ;;  %5698 = vmatpush3.msra.mxu0 %v1833_v34  ;;  %v1908_v23 = vld [vmem:[#allocation2 + $0x4a8] sm:$0xff]  ;;  %2515 = vmatprep.subr.mxu1 %v5886_v32  ;;  %v1903_v12 = vld [vmem:[#allocation2 + $0x480] sm:$0xff]  ;;  %v1853_v47 = vld [vmem:[#allocation2 + $0x2f0] sm:$0xff] }
 0x24e   :  { %913 = vst.msk [vmem:[#allocation2 + $0x408] sm:$0xff] %vm60_vm14, %v893_v4  ;;  %908 = vst.msk [vmem:[#allocation2 + $0x3e0] sm:$0xff] %vm60_vm14, %v888_v0  ;;  %5699 = vmatprep.subr.mxu0 %v1908_v23  ;;  %2412 = vmatmul.mubr.f32.gmra.mxu0 %v6843_v44  ;;  %v1823_v14 = vld [vmem:[#allocation2 + $0x200] sm:$0xff]  ;;  %v1818_v44 = vld [vmem:[#allocation2 + $0x1d8] sm:$0xff] }
 0x24f   :  { %5700 = vmatpush3.msra.mxu0 %v1828_v56  ;;  %2516 = vmatpush1.msra.mxu1 %v1968_v3  ;;  %v1768_v39 = vld [vmem:[#allocation2 + $0x48] sm:$0xff]  ;;  %v1763_v4 = vld [vmem:[#allocation2 + $0x20] sm:$0xff] }
 0x250   :  { %v803_v38 = vpop.permute.xlu0 %802  ;;  %v791_v33 = vpop.permute.xlu1 %790  ;;  %5701 = vmatprep.subr.mxu0 %v1903_v12  ;;  %2517 = vmatprep.subr.mxu1 %v5886_v32  ;;  %v1848_v34 = vld [vmem:[#allocation2 + $0x2c8] sm:$0xff]  ;;  %v1843_v0 = vld [vmem:[#allocation2 + $0x2a0] sm:$0xff] }
 0x251   :  { %v814_v9 = vsel %vm804_vm2, %v7091_v58, %v803_v38  ;;  %v809_v43 = vsel %vm804_vm2, %v7103_v25, %v791_v33  ;;  %5702 = vmatpush3.msra.mxu0 %v1823_v14  ;;  %v1898_v36 = vld [vmem:[#allocation2 + $0x458] sm:$0xff]  ;;  %2518 = vmatpush1.msra.mxu1 %v1963_v21  ;;  %v1893_v52 = vld [vmem:[#allocation2 + $0x430] sm:$0xff]  ;;  %v5857_v58 = vld [vmem:[%s9091_s1 + $0x8] sm:$0xff] }
 0x252   :  { %834 = vst.msk [vmem:[#allocation2 + $0x3b8] sm:$0xff] %vm60_vm14, %v814_v9  ;;  %829 = vst.msk [vmem:[#allocation2 + $0x390] sm:$0xff] %vm60_vm14, %v809_v43  ;;  %5703 = vmatprep.subr.mxu0 %v1898_v36  ;;  %2519 = vmatprep.subr.mxu1 %v5886_v32  ;;  %v2008_v12 = vld [vmem:[#allocation2 + $0x7c8] sm:$0xff]  ;;  %v2003_v38 = vld [vmem:[#allocation2 + $0x7a0] sm:$0xff] }
 0x253   :  { %5704 = vmatpush3.msra.mxu0 %v1818_v44  ;;  %2482 = vmatprep.mubr.f32.mxu0 %v5857_v58  ;;  %v5863_v43 = vld [vmem:[%s9091_s1 + $0x70] sm:$0xff] }
 0x254   :  { %v1435_v26 = vpop.permute.xlu0 %1434  ;;  %v1423_v25 = vpop.permute.xlu1 %1422  ;;  %5705 = vmatprep.subr.mxu0 %v1893_v52  ;;  %5682 = vmatprep.mubr.msk.f32.mxu1 %vm9112_vm7, %v6953_v37  ;;  %v1803_v37 = vld [vmem:[#allocation2 + $0x160] sm:$0xff] }
 0x255   :  { %v1446_v55 = vsel %vm1436_vm8, %v7052_v28, %v1435_v26  ;;  %v1441_v53 = vsel %vm1436_vm8, %v7070_v22, %v1423_v25  ;;  %5706 = vmatpush3.msra.mxu0 %v1813_v7  ;;  %v1888_v5 = vld [vmem:[#allocation2 + $0x408] sm:$0xff]  ;;  %v1883_v59 = vld [vmem:[#allocation2 + $0x3e0] sm:$0xff]  ;;  %v30_v25 = vlaneseq }
 0x256   :  { %1466 = vst.msk [vmem:[#allocation2 + $0x638] sm:$0xff] %vm60_vm14, %v1446_v55  ;;  %1461 = vst.msk [vmem:[#allocation2 + $0x610] sm:$0xff] %vm60_vm14, %v1441_v53  ;;  %5707 = vmatprep.subr.mxu0 %v1888_v5 }
 0x257   :  { %5708 = vmatpush3.msra.mxu0 %v1808_v27 }
 0x258   :  { %v1356_v18 = vpop.permute.xlu0 %1355  ;;  %v1344_v63 = vpop.permute.xlu1 %1343  ;;  %5709 = vmatprep.subr.mxu0 %v1883_v59 }
 0x259   :  { %v1367_v28 = vsel %vm1357_vm9, %v7085_v6, %v1356_v18  ;;  %v1362_v22 = vsel %vm1357_vm9, %v7097_v45, %v1344_v63  ;;  %5710 = vmatpush3.msra.mxu0 %v1803_v37  ;;  %v1878_v61 = vld [vmem:[#allocation2 + $0x3b8] sm:$0xff]  ;;  %v1873_v8 = vld [vmem:[#allocation2 + $0x390] sm:$0xff]  ;;  %v7312_v63 = vand.u32 127, %v30_v25  ;;  %vm2739_vm9 = vcmask 1047816  }
 0x25a   :  { %1387 = vst.msk [vmem:[#allocation2 + $0x5e8] sm:$0xff] %vm60_vm14, %v1367_v28  ;;  %1382 = vst.msk [vmem:[#allocation2 + $0x5c0] sm:$0xff] %vm60_vm14, %v1362_v22  ;;  %5711 = vmatprep.subr.mxu0 %v1878_v61 }
 0x25b   :  { %5712 = vmatpush3.msra.mxu0 %v1798_v42  ;;  %v32_v61 = vadd.s32 128, %v7312_v63 }
 0x25c   :  { %v1277_v16 = vpop.permute.xlu0 %1276  ;;  %v1265_v54 = vpop.permute.xlu1 %1264  ;;  %5713 = vmatprep.subr.mxu0 %v1873_v8 }
 0x25d   :  { %v1288_v6 = vsel %vm1278_vm10, %v7109_v41, %v1277_v16  ;;  %v1283_v45 = vsel %vm1278_vm10, %v7119_v19, %v1265_v54  ;;  %5714 = vmatpush3.msra.mxu0 %v1793_v13  ;;  %v1958_v62 = vld [vmem:[#allocation2 + $0x638] sm:$0xff]  ;;  %v1953_v60 = vld [vmem:[#allocation2 + $0x610] sm:$0xff]  ;;  %v1783_v19 = vld [vmem:[#allocation2 + $0xc0] sm:$0xff]  ;;  %v36_v54 = vand.u32 31, %v7312_v63  ;;  %vm2702_vm10 = vcmask 269312  }
 0x25e   :  { %1308 = vst.msk [vmem:[#allocation2 + $0x598] sm:$0xff] %vm60_vm14, %v1288_v6  ;;  %1303 = vst.msk [vmem:[#allocation2 + $0x570] sm:$0xff] %vm60_vm14, %v1283_v45  ;;  %5715 = vmatprep.subr.mxu0 %v1868_v46  ;;  %2520 = vmatpush1.msra.mxu1 %v1958_v62  ;;  %v37_v62 = vand.u32 31, %v32_v61 }
 0x25f   :  { %5716 = vmatpush3.msra.mxu0 %v1788_v29  ;;  %2521 = vmatprep.subr.mxu1 %v5886_v32  ;;  %vm7324_vm6 = vcmp.lt.s32.totalorder %v36_v54, 18 }
 0x260   :  { %v1198_v15 = vpop.permute.xlu0 %1197  ;;  %v1186_v41 = vpop.permute.xlu1 %1185  ;;  %5717 = vmatprep.subr.mxu0 %v1863_v35  ;;  %2522 = vmatpush1.msra.mxu1 %v1953_v60  ;;  %vm7330_vm8 = vcmp.lt.s32.totalorder %v37_v62, 18 }
 0x261   :  { %v1209_v24 = vsel %vm1199_vm11, %v7129_v40, %v1198_v15  ;;  %v1204_v30 = vsel %vm1199_vm11, %v7139_v57, %v1186_v41  ;;  %5718 = vmatpush3.msra.mxu0 %v1783_v19  ;;  %2523 = vmatprep.subr.mxu1 %v5886_v32  ;;  %v1948_v48 = vld [vmem:[#allocation2 + $0x5e8] sm:$0xff]  ;;  %v1943_v40 = vld [vmem:[#allocation2 + $0x5c0] sm:$0xff]  ;;  %v1773_v57 = vld [vmem:[#allocation2 + $0x70] sm:$0xff] }
 0x262   :  { %1229 = vst.msk [vmem:[#allocation2 + $0x548] sm:$0xff] %vm60_vm14, %v1209_v24  ;;  %1224 = vst.msk [vmem:[#allocation2 + $0x520] sm:$0xff] %vm60_vm14, %v1204_v30  ;;  %5719 = vmatprep.subr.mxu0 %v1858_v31  ;;  %2524 = vmatpush1.msra.mxu1 %v1948_v48 }
 0x263   :  { %5720 = vmatpush3.msra.mxu0 %v1778_v20  ;;  %2525 = vmatprep.subr.mxu1 %v5886_v32 }
 0x264   :  { %5721 = vmatprep.subr.mxu0 %v1853_v47  ;;  %2526 = vmatpush1.msra.mxu1 %v1943_v40 }
 0x265   :  { %5722 = vmatpush3.msra.mxu0 %v1773_v57  ;;  %2527 = vmatprep.subr.mxu1 %v5886_v32  ;;  %v1938_v3 = vld [vmem:[#allocation2 + $0x598] sm:$0xff]  ;;  %v1933_v23 = vld [vmem:[#allocation2 + $0x570] sm:$0xff] }
 0x266   :  { %5723 = vmatprep.subr.mxu0 %v1848_v34  ;;  %2528 = vmatpush1.msra.mxu1 %v1938_v3 }
 0x267   :  { %5724 = vmatpush3.msra.mxu0 %v1768_v39  ;;  %2529 = vmatprep.subr.mxu1 %v5886_v32 }
 0x268   :  { %5725 = vmatprep.subr.mxu0 %v1843_v0  ;;  %2530 = vmatpush1.msra.mxu1 %v1933_v23 }
 0x269   :  { %5726 = vmatpush3.msra.mxu0 %v1763_v4  ;;  %2531 = vmatprep.subr.mxu1 %v5886_v32  ;;  %v1928_v56 = vld [vmem:[#allocation2 + $0x548] sm:$0xff]  ;;  %v1923_v21 = vld [vmem:[#allocation2 + $0x520] sm:$0xff]  ;;  %v33_v4 = vadd.s32 256, %v7312_v63 }
 0x26a   :  { %2483 = vmatmul.mubr.f32.vlgmr.msra.gmra.mxu0 %v6869_v1  ;;  %2532 = vmatpush1.msra.mxu1 %v1928_v56  ;;  %v5858_v1 = vld [vmem:[%s9091_s1 + $0x38] sm:$0xff] }
 0x26b   :  { %2533 = vmatprep.subr.mxu1 %v5886_v32  ;;  %2487 = vmatprep.mubr.f32.mxu0 %v6874_v50  ;;  %v7274_v50 = vpop.f32.mrf.mxu1 }
 0x26c   :  { %2534 = vmatpush1.msra.mxu1 %v1923_v21 }
 0x26d   :  { %2563 = vmatprep.subr.mxu1 %v5886_v32 }
 0x26e   :  { %2488 = vmatmul.mubr.f32.gmra.mxu0 %v6888_v51  ;;  %2564 = vmatpush2.msra.mxu1 %v2008_v12  ;;  %v5859_v51 = vld [vmem:[%s9091_s1 + $0x30] sm:$0xff]  ;;  %v7290_v14 = vpop.permute.xlu1 %2041 }
 0x26f   :  { %2565 = vmatprep.subr.mxu1 %v5886_v32  ;;  %2492 = vmatprep.mubr.f32.mxu0 %v6910_v17  ;;  %v5860_v17 = vld [vmem:[%s9091_s1 + $0x58] sm:$0xff] }
 0x270   :  { %2566 = vmatpush2.msra.mxu1 %v2003_v38  ;;  %v38_v38 = vand.u32 31, %v33_v4 }
 0x271   :  { %2568 = vmatmul.mubr.f32.vlgmr.msra.gmra.mxu1 %v7164_v49  ;;  %v7285_v49 = vpop.permute.xlu0 %2046 }
 0x272   :  { %2493 = vmatmul.mubr.f32.gmra.mxu0 %v6916_v11  ;;  %5683 = vmatprep.mubr.msk.f32.mxu1 %vm9112_vm7, %v5858_v1  ;;  %v2219_v11 = vpop.f32.mrf.mxu1  ;;  %v7303_v58 = vpop.permute.xlu1 %2036  ;;  %vm7414_vm11 = vcmp.lt.s32.totalorder %v38_v38, 18 }
 0x273   :  { %2497 = vmatprep.mubr.f32.mxu0 %v6926_v10  ;;  %v5861_v10 = vld [vmem:[%s9091_s1 + $0x50] sm:$0xff] }
 0x274   :  { %v2223_v33 = vpop.f32.mrf.mxu1 }
 0x275   :  { %2573 = vmatmul.mubr.f32.gmra.mxu1 %v5859_v51  ;;  %v7301_v44 = vpop.permute.xlu0 %2031 }
 0x276   :  { %2498 = vmatmul.mubr.f32.gmra.mxu0 %v6937_v2  ;;  %5684 = vmatprep.mubr.msk.f32.mxu1 %vm9112_vm7, %v5860_v17  ;;  %v5862_v2 = vld [vmem:[%s9091_s1 + $0x78] sm:$0xff]  ;;  %v2225_v9 = vpop.f32.mrf.mxu1  ;;  %s5887_s1 = smov 33  }
 0x278   :  { %v2229_v55 = vpop.f32.mrf.mxu1 }
 0x279   :  { %2578 = vmatmul.mubr.f32.gmra.mxu1 %v5861_v10 }
 0x27a   :  { %5685 = vmatprep.mubr.msk.f32.mxu1 %vm9112_vm7, %v5862_v2  ;;  %v2231_v37 = vpop.f32.mrf.mxu1  ;;  %vm9131_vm7 = vmmov %vm9129_vm4 }
 0x27c   :  { %v2235_v8 = vpop.f32.mrf.mxu1 }
 0x27d   :  { %2583 = vmatmul.mubr.f32.gmra.mxu1 %v5863_v43  ;;  %v7299_v36 = vpop.f32.mrf.mxu0 }
 0x27e   :  { %v2237_v35 = vpop.f32.mrf.mxu1  ;;  %v2129_v43 = vadd.f32 %v7299_v36, %v7301_v44 }
 0x27f   :  { %v2130_v52 = vpop.f32.mrf.mxu0 }
 0x280   :  { %v2131_v26 = vadd.f32 %v2130_v52, %v7301_v44 }
 0x281   :  { %v2134_v7 = vpop.f32.mrf.mxu0 }
 0x282   :  { %v7306_v53 = vadd.f32 %v2219_v11, %v2131_v26  ;;  %v2135_v5 = vadd.f32 %v2134_v7, %v7303_v58 }
 0x283   :  { %v2136_v27 = vpop.f32.mrf.mxu0 }
 0x284   :  { %v2137_v59 = vadd.f32 %v2136_v27, %v7303_v58  ;;  %v7310_v18 = vadd.f32 %v2223_v33, %v2135_v5 }
 0x286   :  { %v7314_v28 = vadd.f32 %v2225_v9, %v2137_v59 }
 0x287   :  { %v2140_v22 = vpop.f32.mrf.mxu0 }
 0x288   :  { %v2141_v46 = vadd.f32 %v2140_v22, %v7290_v14  ;;  %v2604_v36 = vsel %vm7330_vm8, %v7314_v28, 0.0 }
 0x289   :  { %v2142_v42 = vpop.f32.mrf.mxu0 }
 0x28a   :  { %v2143_v16 = vadd.f32 %v2142_v42, %v7290_v14  ;;  %v2230_v30 = vadd.f32 %v2229_v55, %v2141_v46  ;;  %v2218_v55 = vadd.f32 %v7274_v50, %v2129_v43  ;;  %v2603_v42 = vsel %vm7324_vm6, %v7310_v18, 0.0 }
 0x28b   :  { %v2146_v13 = vpop.f32.mrf.mxu0  ;;  %v2599_v18 = vsel %vm7330_vm8, %v7306_v53, 0.0 }
 0x28c   :  { %v2147_v6 = vadd.f32 %v2146_v13, %v7285_v49  ;;  %v7320_v45 = vadd.f32 %v2231_v37, %v2143_v16  ;;  %v2608_v20 = vsel %vm7324_vm6, %v2230_v30, 0.0  ;;  %v2598_v59 = vsel %vm7324_vm6, %v2218_v55, 0.0 }
 0x28d   :  { %v2148_v29 = vpop.f32.mrf.mxu0  ;;  %v34_v16 = vadd.s32 384, %v7312_v63 }
 0x28e   :  { %v2236_v60 = vadd.f32 %v2235_v8, %v2147_v6  ;;  %v2149_v15 = vadd.f32 %v2148_v29, %v7285_v49  ;;  %v2609_v50 = vsel %vm7330_vm8, %v7320_v45, 0.0 }
 0x28f   :  { %v39_v6 = vand.u32 31, %v34_v16 }
 0x290   :  { %v2613_v19 = vsel %vm7324_vm6, %v2236_v60, 0.0  ;;  %v2238_v24 = vadd.f32 %v2237_v35, %v2149_v15 }
 0x291   :  { %2692 = vrot.lane.b32.xlu1 %v2613_v19, %s5887_s1  ;;  %vm7458_vm13 = vcmp.lt.s32.totalorder %v39_v6, 18 }
 0x292   :  { %v2614_v48 = vsel %vm7330_vm8, %v2238_v24, 0.0 }
 0x293   :  { %2694 = vrot.lane.b32.xlu0 %v2614_v48, %s5887_s1 }
 0x297   :  { %2682 = vrot.lane.b32.xlu0 %v2608_v20, %s5887_s1 }
 0x2fc   :  { %v2395_v47 = vpop.f32.mrf.mxu0 }
 0x2fe   :  { %v7389_v40 = vpop.f32.mrf.mxu0 }
 0x300   :  { %v2306_v57 = vpop.f32.mrf.mxu1 }
 0x301   :  { %v2307_v5 = vadd.f32 %v2306_v57, %v7301_v44 }
 0x302   :  { %v2308_v39 = vpop.f32.mrf.mxu1  ;;  %v2401_v34 = vpop.f32.mrf.mxu0 }
 0x303   :  { %v2693_v3 = vpop.permute.xlu1 %2692  ;;  %v2396_v37 = vadd.f32 %v2395_v47, %v2307_v5  ;;  %v2309_v19 = vadd.f32 %v2308_v39, %v7301_v44 }
 0x304   :  { %v2312_v0 = vpop.f32.mrf.mxu1  ;;  %v2403_v23 = vpop.f32.mrf.mxu0  ;;  %2756 = vst.msk [vmem:[%s9093_s7 + $0x90] sm:$0xff] %vm2739_vm9, %v2693_v3 }
 0x305   :  { %v7396_v56 = vpop.permute.xlu0 %2694  ;;  %v2313_v22 = vadd.f32 %v2312_v0, %v7303_v58  ;;  %v2600_v28 = vsel %vm7414_vm11, %v2396_v37, 0.0  ;;  %v2398_v20 = vadd.f32 %v7389_v40, %v2309_v19  ;;  %v35_v40 = vadd.s32 512, %v7312_v63 }
 0x306   :  { %v2314_v32 = vpop.f32.mrf.mxu1  ;;  %v2407_v21 = vpop.f32.mrf.mxu0  ;;  %v7400_v12 = vsel %vm2702_vm10, %v2693_v3, %v7396_v56 }
 0x307   :  { %2757 = vst [vmem:[%s9093_s7 + $0x98] sm:$0xff] %v7400_v12  ;;  %v2402_v61 = vadd.f32 %v2401_v34, %v2313_v22  ;;  %v2315_v35 = vadd.f32 %v2314_v32, %v7303_v58  ;;  %v2601_v39 = vsel %vm7458_vm13, %v2398_v20, 0.0 }
 0x308   :  { %v2318_v1 = vpop.f32.mrf.mxu1  ;;  %v2409_v33 = vpop.f32.mrf.mxu0 }
 0x309   :  { %v2319_v51 = vadd.f32 %v2318_v1, %v7290_v14  ;;  %v7407_v17 = vpop.permute.xlu0 %2682  ;;  %v2605_v54 = vsel %vm7414_vm11, %v2402_v61, 0.0  ;;  %v2404_v53 = vadd.f32 %v2403_v23, %v2315_v35 }
 0x30a   :  { %v2320_v11 = vpop.f32.mrf.mxu1  ;;  %2751 = vst.msk [vmem:[%s9093_s7 + $0x60] sm:$0xff] %vm2739_vm9, %v7407_v17 }
 0x30b   :  { %v2408_v10 = vadd.f32 %v2407_v21, %v2319_v51  ;;  %v2321_v46 = vadd.f32 %v2320_v11, %v7290_v14  ;;  %v2606_v47 = vsel %vm7458_vm13, %v2404_v53, 0.0  ;;  %v7483_v1 = vld [vmem:[%s9093_s7 + $0x90] sm:$0xff] }
 0x30c   :  { %v2324_v9 = vpop.f32.mrf.mxu1 }
 0x30d   :  { %v2610_v52 = vsel %vm7414_vm11, %v2408_v10, 0.0  ;;  %v2325_v26 = vadd.f32 %v2324_v9, %v7285_v49  ;;  %v2410_v60 = vadd.f32 %v2409_v33, %v2321_v46  ;;  %v40_v9 = vand.u32 31, %v35_v40 }
 0x30e   :  { %v2413_v25 = vpop.f32.mrf.mxu0  ;;  %2686 = vrot.lane.b32.xlu0 %v2610_v52, %s5887_s1  ;;  %v2326_v8 = vpop.f32.mrf.mxu1 }
 0x30f   :  { %v2414_v7 = vadd.f32 %v2413_v25, %v2325_v26  ;;  %v2327_v13 = vadd.f32 %v2326_v8, %v7285_v49  ;;  %v2611_v24 = vsel %vm7458_vm13, %v2410_v60, 0.0  ;;  %vm7489_vm15 = vcmp.lt.s32.totalorder %v40_v9, 18 }
 0x310   :  { %v2415_v45 = vpop.f32.mrf.mxu0 }
 0x311   :  { %v2615_v27 = vsel %vm7414_vm11, %v2414_v7, 0.0  ;;  %v2416_v62 = vadd.f32 %v2415_v45, %v2327_v13 }
 0x312   :  { %2696 = vrot.lane.b32.xlu1 %v2615_v27, %s5887_s1  ;;  %2674 = vrot.lane.b32.xlu0 %v2604_v36, %s5887_s1 }
 0x313   :  { %v2616_v15 = vsel %vm7458_vm13, %v2416_v62, 0.0 }
 0x316   :  { %2684 = vrot.lane.b32.xlu1 %v2609_v50, %s5887_s1  ;;  %2662 = vrot.lane.b32.xlu0 %v2598_v59, %s5887_s1 }
 0x31a   :  { %2672 = vrot.lane.b32.xlu1 %v2603_v42, %s5887_s1  ;;  %2666 = vrot.lane.b32.xlu0 %v2600_v28, %s5887_s1 }
 0x31e   :  { %2676 = vrot.lane.b32.xlu1 %v2605_v54, %s5887_s1 }
 0x322   :  { %2664 = vrot.lane.b32.xlu1 %v2599_v18, %s5887_s1 }
 0x326   :  { %2698 = vrot.lane.b32.xlu1 %v2616_v15, %s5887_s1 }
 0x32a   :  { %v5727_v30 = vpop.f32.mrf.mxu0  ;;  %2688 = vrot.lane.b32.xlu1 %v2611_v24, %s5887_s1 }
 0x32c   :  { %v5728_v48 = vpop.f32.mrf.mxu0 }
 0x32d   :  { %v5729_v27 = vadd.f32 %v5728_v48, %v5727_v30 }
 0x32e   :  { %v5730_v57 = vpop.f32.mrf.mxu0  ;;  %2678 = vrot.lane.b32.xlu1 %v2606_v47, %s5887_s1 }
 0x330   :  { %v5731_v34 = vpop.f32.mrf.mxu0 }
 0x331   :  { %v2569_v3 = vpop.f32.mrf.mxu1  ;;  %v5732_v26 = vadd.f32 %v5731_v34, %v5730_v57 }
 0x332   :  { %v5733_v4 = vpop.f32.mrf.mxu0  ;;  %2668 = vrot.lane.b32.xlu1 %v2601_v39, %s5887_s1 }
 0x333   :  { %v2571_v0 = vpop.f32.mrf.mxu1  ;;  %v2490_v36 = vadd.f32 %v5732_v26, %v7303_v58 }
 0x334   :  { %v5734_v23 = vpop.f32.mrf.mxu0 }
 0x335   :  { %v2574_v32 = vpop.f32.mrf.mxu1  ;;  %v5735_v51 = vadd.f32 %v5734_v23, %v5733_v4 }
 0x336   :  { %v5736_v21 = vpop.f32.mrf.mxu0  ;;  %3145 = vrot.lane.b32.xlu1 %v7400_v12, %s9126_s18  ;;  %v2575_v37 = vadd.f32 %v2574_v32, %v2490_v36 }
 0x337   :  { %v2576_v38 = vpop.f32.mrf.mxu1  ;;  %v2495_v63 = vadd.f32 %v5735_v51, %v7290_v14 }
 0x338   :  { %v5737_v11 = vpop.f32.mrf.mxu0  ;;  %v2607_v28 = vsel %vm7489_vm15, %v2575_v37, 0.0 }
 0x339   :  { %v5738_v33 = vadd.f32 %v5737_v11, %v5736_v21  ;;  %v2579_v10 = vpop.f32.mrf.mxu1 }
 0x33a   :  { %3143 = vrot.lane.b32.xlu1 %v7483_v1, %s9126_s18  ;;  %v2580_v59 = vadd.f32 %v2579_v10, %v2495_v63 }
 0x33b   :  { %v2581_v43 = vpop.f32.mrf.mxu1  ;;  %v2500_v52 = vadd.f32 %v5738_v33, %v7285_v49  ;;  %v2485_v49 = vadd.f32 %v5729_v27, %v7301_v44 }
 0x33c   :  { %v2612_v14 = vsel %vm7489_vm15, %v2580_v59, 0.0 }
 0x33d   :  { %v2584_v25 = vpop.f32.mrf.mxu1  ;;  %v2570_v22 = vadd.f32 %v2569_v3, %v2485_v49 }
 0x33e   :  { %v2585_v7 = vadd.f32 %v2584_v25, %v2500_v52 }
 0x33f   :  { %v2586_v5 = vpop.f32.mrf.mxu1  ;;  %v2602_v58 = vsel %vm7489_vm15, %v2570_v22, 0.0 }
 0x340   :  { %v2617_v50 = vsel %vm7489_vm15, %v2585_v7, 0.0 }
 0x341   :  { %2700 = vrot.lane.b32.xlu0 %v2617_v50, %s5887_s1 }
 0x345   :  { %2690 = vrot.lane.b32.xlu0 %v2612_v14, %s5887_s1 }
 0x349   :  { %2680 = vrot.lane.b32.xlu0 %v2607_v28, %s5887_s1 }
 0x34d   :  { %2670 = vrot.lane.b32.xlu0 %v2602_v58, %s5887_s1 }
 0x380   :  { %v2687_v61 = vpop.permute.xlu0 %2686 }
 0x384   :  { %v2697_v42 = vpop.permute.xlu1 %2696  ;;  %v2675_v44 = vpop.permute.xlu0 %2674 }
 0x385   :  { %v7509_v8 = vsel %vm2702_vm10, %v7396_v56, %v2697_v42 }
 0x386   :  { %2758 = vst [vmem:[%s9093_s7 + $0xa0] sm:$0xff] %v7509_v8 }
 0x388   :  { %v2685_v16 = vpop.permute.xlu1 %2684  ;;  %v2663_v54 = vpop.permute.xlu0 %2662 }
 0x389   :  { %v7517_v13 = vsel %vm2702_vm10, %v7407_v17, %v2685_v16  ;;  %v7520_v6 = vsel %vm2702_vm10, %v2685_v16, %v2687_v61  ;;  %2740 = vst.msk [vmem:[%s9093_s7] sm:$0xff] %vm2739_vm9, %v2663_v54  ;;  %v7539_v17 = vld [vmem:[%s9093_s7 + $0x60] sm:$0xff] }
 0x38a   :  { %2752 = vst [vmem:[%s9093_s7 + $0x68] sm:$0xff] %v7517_v13  ;;  %2753 = vst [vmem:[%s9093_s7 + $0x70] sm:$0xff] %v7520_v6  ;;  %3135 = vrot.lane.b32.xlu0 %v7517_v13, %s9126_s18 }
 0x38c   :  { %v2673_v56 = vpop.permute.xlu1 %2672  ;;  %v2667_v35 = vpop.permute.xlu0 %2666 }
 0x38d   :  { %v7542_v45 = vsel %vm2702_vm10, %v2673_v56, %v2675_v44  ;;  %2746 = vst.msk [vmem:[%s9093_s7 + $0x30] sm:$0xff] %vm2739_vm9, %v2673_v56 }
 0x38e   :  { %2747 = vst [vmem:[%s9093_s7 + $0x38] sm:$0xff] %v7542_v45  ;;  %3125 = vrot.lane.b32.xlu1 %v7542_v45, %s9126_s18  ;;  %3133 = vrot.lane.b32.xlu0 %v7539_v17, %s9126_s18 }
 0x390   :  { %v2677_v18 = vpop.permute.xlu1 %2676  ;;  %v7604_v48 = vld [vmem:[%s9093_s7] sm:$0xff] }
 0x391   :  { %v7557_v46 = vsel %vm2702_vm10, %v2675_v44, %v2677_v18 }
 0x392   :  { %2748 = vst [vmem:[%s9093_s7 + $0x40] sm:$0xff] %v7557_v46  ;;  %3137 = vrot.lane.b32.xlu1 %v7520_v6, %s9126_s18  ;;  %3127 = vrot.lane.b32.xlu0 %v7557_v46, %s9126_s18 }
 0x394   :  { %v7570_v62 = vld [vmem:[%s9093_s7 + $0x30] sm:$0xff]  ;;  %v2665_v60 = vpop.permute.xlu1 %2664 }
 0x395   :  { %v7573_v15 = vsel %vm2702_vm10, %v2663_v54, %v2665_v60  ;;  %v7576_v19 = vsel %vm2702_vm10, %v2665_v60, %v2667_v35 }
 0x396   :  { %2741 = vst [vmem:[%s9093_s7 + $0x8] sm:$0xff] %v7573_v15  ;;  %2742 = vst [vmem:[%s9093_s7 + $0x10] sm:$0xff] %v7576_v19  ;;  %3123 = vrot.lane.b32.xlu1 %v7570_v62, %s9126_s18  ;;  %3147 = vrot.lane.b32.xlu0 %v7509_v8, %s9126_s18 }
 0x398   :  { %v2699_v53 = vpop.permute.xlu1 %2698 }
 0x399   :  { %v7591_v24 = vsel %vm2702_vm10, %v2697_v42, %v2699_v53 }
 0x39a   :  { %2759 = vst [vmem:[%s9093_s7 + $0xa8] sm:$0xff] %v7591_v24  ;;  %3115 = vrot.lane.b32.xlu0 %v7573_v15, %s9126_s18  ;;  %3117 = vrot.lane.b32.xlu1 %v7576_v19, %s9126_s18 }
 0x39c   :  { %v2689_v30 = vpop.permute.xlu1 %2688 }
 0x39d   :  { %v7607_v20 = vsel %vm2702_vm10, %v2687_v61, %v2689_v30 }
 0x39e   :  { %2754 = vst [vmem:[%s9093_s7 + $0x78] sm:$0xff] %v7607_v20  ;;  %3113 = vrot.lane.b32.xlu0 %v7604_v48, %s9126_s18  ;;  %3009 = vrot.lane.b32.xlu1 %v7400_v12, %s5869_s12 }
 0x3a0   :  { %v2679_v47 = vpop.permute.xlu1 %2678 }
 0x3a1   :  { %v7618_v57 = vsel %vm2702_vm10, %v2677_v18, %v2679_v47 }
 0x3a2   :  { %2749 = vst [vmem:[%s9093_s7 + $0x48] sm:$0xff] %v7618_v57  ;;  %3011 = vrot.lane.b32.xlu0 %v7509_v8, %s5869_s12  ;;  %3007 = vrot.lane.b32.xlu1 %v7483_v1, %s5869_s12 }
 0x3a4   :  { %v2669_v34 = vpop.permute.xlu1 %2668 }
 0x3a5   :  { %v7629_v39 = vsel %vm2702_vm10, %v2667_v35, %v2669_v34 }
 0x3a6   :  { %2743 = vst [vmem:[%s9093_s7 + $0x18] sm:$0xff] %v7629_v39  ;;  %2999 = vrot.lane.b32.xlu0 %v7517_v13, %s5869_s12  ;;  %3001 = vrot.lane.b32.xlu1 %v7520_v6, %s5869_s12 }
 0x3a8   :  { %v3146_v9 = vpop.permute.xlu1 %3145 }
 0x3aa   :  { %2997 = vrot.lane.b32.xlu0 %v7539_v17, %s5869_s12  ;;  %2989 = vrot.lane.b32.xlu1 %v7542_v45, %s5869_s12 }
 0x3ac   :  { %v3144_v43 = vpop.permute.xlu1 %3143 }
 0x3ad   :  { %v3165_v59 = vsel %vm9130_vm5, %v3144_v43, %v3146_v9 }
 0x3ae   :  { %2991 = vrot.lane.b32.xlu0 %v7557_v46, %s5869_s12  ;;  %2987 = vrot.lane.b32.xlu1 %v7570_v62, %s5869_s12 }
 0x3b2   :  { %2979 = vrot.lane.b32.xlu0 %v7573_v15, %s5869_s12  ;;  %2981 = vrot.lane.b32.xlu1 %v7576_v19, %s5869_s12 }
 0x3b3   :  { %v2701_v3 = vpop.permute.xlu0 %2700 }
 0x3b4   :  { %v2718_v4 = vsel %vm2702_vm10, %v2699_v53, %v2701_v3 }
 0x3b5   :  { %2760 = vst.msk [vmem:[%s9093_s7 + $0xb0] sm:$0xff] %vm9113_vm1, %v2718_v4 }
 0x3b6   :  { %2977 = vrot.lane.b32.xlu0 %v7604_v48, %s5869_s12  ;;  %2873 = vrot.lane.b32.xlu1 %v7400_v12, %s5871_s14 }
 0x3b7   :  { %v2691_v0 = vpop.permute.xlu0 %2690 }
 0x3b8   :  { %v2714_v23 = vsel %vm2702_vm10, %v2689_v30, %v2691_v0 }
 0x3b9   :  { %2755 = vst.msk [vmem:[%s9093_s7 + $0x80] sm:$0xff] %vm9113_vm1, %v2714_v23 }
 0x3ba   :  { %2875 = vrot.lane.b32.xlu0 %v7509_v8, %s5871_s14  ;;  %2871 = vrot.lane.b32.xlu1 %v7483_v1, %s5871_s14 }
 0x3bb   :  { %v2681_v32 = vpop.permute.xlu0 %2680 }
 0x3bc   :  { %v7672_v21 = vld [vmem:[%s9093_s7 + $0xb0] sm:$0xff]  ;;  %v2710_v40 = vsel %vm2702_vm10, %v2679_v47, %v2681_v32 }
 0x3bd   :  { %2800 = vst.msk [vmem:[#allocation2 + $0x98] sm:$0xff] %vm60_vm14, %v7672_v21 }
 0x3be   :  { %2750 = vst.msk [vmem:[%s9093_s7 + $0x50] sm:$0xff] %vm9113_vm1, %v2710_v40  ;;  %2863 = vrot.lane.b32.xlu0 %v7517_v13, %s5871_s14  ;;  %2865 = vrot.lane.b32.xlu1 %v7520_v6, %s5871_s14 }
 0x3bf   :  { %v2671_v38 = vpop.permute.xlu0 %2670 }
 0x3c0   :  { %v7688_v51 = vld [vmem:[%s9093_s7 + $0x80] sm:$0xff]  ;;  %v2706_v11 = vsel %vm2702_vm10, %v2669_v34, %v2671_v38 }
 0x3c1   :  { %2795 = vst.msk [vmem:[#allocation2 + $0x70] sm:$0xff] %vm60_vm14, %v7688_v51 }
 0x3c2   :  { %2745 = vst.msk [vmem:[%s9093_s7 + $0x20] sm:$0xff] %vm9113_vm1, %v2706_v11  ;;  %3149 = vrot.lane.b32.xlu0 %v7591_v24, %s9126_s18  ;;  %3151 = vrot.lane.b32.xlu1 %v7672_v21, %s9126_s18  ;;  %vm9132_vm1 = vmmov %vm9129_vm4 }
 0x3c3   :  { %vm9134_vm5 = vmmov %vm9132_vm1 }
 0x3c5   :  { %v7704_v33 = vld [vmem:[%s9093_s7 + $0x50] sm:$0xff] }
 0x3c6   :  { %2790 = vst.msk [vmem:[#allocation2 + $0x48] sm:$0xff] %vm60_vm14, %v7704_v33  ;;  %2861 = vrot.lane.b32.xlu0 %v7539_v17, %s5871_s14  ;;  %2853 = vrot.lane.b32.xlu1 %v7542_v45, %s5871_s14 }
 0x3c9   :  { %v7715_v10 = vld [vmem:[%s9093_s7 + $0x20] sm:$0xff] }
 0x3ca   :  { %2785 = vst.msk [vmem:[#allocation2 + $0x20] sm:$0xff] %vm60_vm14, %v7715_v10  ;;  %2855 = vrot.lane.b32.xlu0 %v7557_v46, %s5871_s14  ;;  %3139 = vrot.lane.b32.xlu1 %v7607_v20, %s9126_s18 }
 0x3ce   :  { %2851 = vrot.lane.b32.xlu1 %v7570_v62, %s5871_s14  ;;  %3141 = vrot.lane.b32.xlu0 %v7688_v51, %s9126_s18 }
 0x3d2   :  { %2845 = vrot.lane.b32.xlu1 %v7576_v19, %s5871_s14  ;;  %2843 = vrot.lane.b32.xlu0 %v7573_v15, %s5871_s14 }
 0x3d6   :  { %3129 = vrot.lane.b32.xlu0 %v7618_v57, %s9126_s18  ;;  %3131 = vrot.lane.b32.xlu1 %v7704_v33, %s9126_s18 }
 0x3da   :  { %2841 = vrot.lane.b32.xlu0 %v7604_v48, %s5871_s14  ;;  %3119 = vrot.lane.b32.xlu1 %v7629_v39, %s9126_s18 }
 0x3de   :  { %3013 = vrot.lane.b32.xlu1 %v7591_v24, %s5869_s12  ;;  %3121 = vrot.lane.b32.xlu0 %v7715_v10, %s9126_s18 }
 0x3e2   :  { %3003 = vrot.lane.b32.xlu1 %v7607_v20, %s5869_s12  ;;  %3015 = vrot.lane.b32.xlu0 %v7672_v21, %s5869_s12 }
 0x3e6   :  { %2993 = vrot.lane.b32.xlu1 %v7618_v57, %s5869_s12  ;;  %3005 = vrot.lane.b32.xlu0 %v7688_v51, %s5869_s12 }
 0x3ea   :  { %2983 = vrot.lane.b32.xlu1 %v7629_v39, %s5869_s12  ;;  %2995 = vrot.lane.b32.xlu0 %v7704_v33, %s5869_s12 }
 0x3ee   :  { %3703 = vrot.lane.b32.xlu1 %v7400_v12, %s5881_s28  ;;  %2985 = vrot.lane.b32.xlu0 %v7715_v10, %s5869_s12 }
 0x3f2   :  { %3701 = vrot.lane.b32.xlu1 %v7483_v1, %s5881_s28  ;;  %3705 = vrot.lane.b32.xlu0 %v7509_v8, %s5881_s28 }
 0x3f6   :  { %2879 = vrot.lane.b32.xlu1 %v7672_v21, %s5871_s14  ;;  %2877 = vrot.lane.b32.xlu0 %v7591_v24, %s5871_s14 }
 0x3fa   :  { %3693 = vrot.lane.b32.xlu1 %v7520_v6, %s5881_s28  ;;  %3691 = vrot.lane.b32.xlu0 %v7517_v13, %s5881_s28 }
 0x3fc   :  { %v3136_v52 = vpop.permute.xlu0 %3135 }
 0x3fe   :  { %2867 = vrot.lane.b32.xlu1 %v7607_v20, %s5871_s14  ;;  %3689 = vrot.lane.b32.xlu0 %v7539_v17, %s5881_s28 }
 0x400   :  { %v3126_v26 = vpop.permute.xlu1 %3125  ;;  %v3134_v63 = vpop.permute.xlu0 %3133 }
 0x401   :  { %v3161_v14 = vsel %vm9132_vm1, %v3134_v63, %v3136_v52 }
 0x402   :  { %3679 = vrot.lane.b32.xlu1 %v7542_v45, %s5881_s28  ;;  %2869 = vrot.lane.b32.xlu0 %v7688_v51, %s5871_s14 }
 0x404   :  { %v7779_v25 = vpop.permute.xlu1 %3137  ;;  %v7781_v7 = vpop.permute.xlu0 %3127 }
 0x405   :  { %v3162_v50 = vsel %vm9131_vm7, %v3136_v52, %v7779_v25  ;;  %vm9135_vm7 = vmmov %vm9132_vm1 }
 0x406   :  { %3677 = vrot.lane.b32.xlu1 %v7570_v62, %s5881_s28  ;;  %3681 = vrot.lane.b32.xlu0 %v7557_v46, %s5881_s28 }
 0x408   :  { %v3124_v5 = vpop.permute.xlu1 %3123  ;;  %v7787_v27 = vpop.permute.xlu0 %3147 }
 0x409   :  { %v3166_v36 = vsel %vm9129_vm4, %v3146_v9, %v7787_v27  ;;  %vm9133_vm4 = vmmov %vm9132_vm1  ;;  %v3157_v28 = vsel %vm9134_vm5, %v3124_v5, %v3126_v26 }
 0x40a   :  { %2859 = vrot.lane.b32.xlu1 %v7704_v33, %s5871_s14  ;;  %2857 = vrot.lane.b32.xlu0 %v7618_v57, %s5871_s14  ;;  %v3158_v22 = vsel %vm9133_vm4, %v3126_v26, %v7781_v7  ;;  %vm9136_vm4 = vcmask 1039360  }
 0x40b   :  { %4133 = vmatprep.subr.mxu0 %v3166_v36  ;;  %vm9137_vm5 = vmmov %vm9136_vm4 }
 0x40c   :  { %v7798_v49 = vpop.permute.xlu1 %3117  ;;  %v3116_v37 = vpop.permute.xlu0 %3115  ;;  %4134 = vmatpush1.msra.mxu0 %v3165_v59 }
 0x40d   :  { %4135 = vmatprep.subr.mxu0 %v3162_v50  ;;  %v3154_v44 = vsel %vm9132_vm1, %v3116_v37, %v7798_v49 }
 0x40e   :  { %3669 = vrot.lane.b32.xlu1 %v7576_v19, %s5881_s28  ;;  %3667 = vrot.lane.b32.xlu0 %v7573_v15, %s5881_s28 }
 0x40f   :  { %4136 = vmatpush1.msra.mxu0 %v3161_v14 }
 0x410   :  { %v3010_v58 = vpop.permute.xlu1 %3009  ;;  %v3114_v61 = vpop.permute.xlu0 %3113  ;;  %4137 = vmatprep.subr.mxu0 %v3158_v22 }
 0x411   :  { %v3153_v42 = vsel %vm9135_vm7, %v3114_v61, %v3116_v37  ;;  %4138 = vmatpush1.msra.mxu0 %v3157_v28  ;;  %vm9139_vm7 = vmmov %vm9136_vm4 }
 0x412   :  { %2847 = vrot.lane.b32.xlu1 %v7629_v39, %s5871_s14  ;;  %3665 = vrot.lane.b32.xlu0 %v7604_v48, %s5881_s28 }
 0x413   :  { %4139 = vmatprep.subr.mxu0 %v3154_v44 }
 0x414   :  { %v3008_v16 = vpop.permute.xlu1 %3007  ;;  %v7815_v54 = vpop.permute.xlu0 %3011  ;;  %4140 = vmatpush1.msra.mxu0 %v3153_v42 }
 0x415   :  { %v3029_v56 = vsel %vm176_vm3, %v3008_v16, %v3010_v58  ;;  %v3030_v18 = vsel %vm176_vm3, %v3010_v58, %v7815_v54 }
 0x416   :  { %3553 = vrot.lane.b32.xlu1 %v7400_v12, %s5882_s30  ;;  %2849 = vrot.lane.b32.xlu0 %v7715_v10, %s5871_s14 }
 0x417   :  { %4141 = vmatprep.subr.mxu0 %v3030_v18 }
 0x418   :  { %v7824_v35 = vpop.permute.xlu1 %3001  ;;  %v3000_v60 = vpop.permute.xlu0 %2999  ;;  %4142 = vmatpush1.msra.mxu0 %v3029_v56 }
 0x419   :  { %v3026_v53 = vsel %vm176_vm3, %v3000_v60, %v7824_v35 }
 0x41a   :  { %3551 = vrot.lane.b32.xlu1 %v7483_v1, %s5882_s30  ;;  %3555 = vrot.lane.b32.xlu0 %v7509_v8, %s5882_s30 }
 0x41b   :  { %4143 = vmatprep.subr.mxu0 %v3026_v53 }
 0x41c   :  { %v2990_v30 = vpop.permute.xlu1 %2989  ;;  %v2998_v47 = vpop.permute.xlu0 %2997 }
 0x41d   :  { %v3025_v34 = vsel %vm176_vm3, %v2998_v47, %v3000_v60 }
 0x41e   :  { %3545 = vrot.lane.b32.xlu1 %v7520_v6, %s5882_s30  ;;  %3543 = vrot.lane.b32.xlu0 %v7517_v13, %s5882_s30 }
 0x41f   :  { %4144 = vmatpush1.msra.mxu0 %v3025_v34 }
 0x420   :  { %v2988_v3 = vpop.permute.xlu1 %2987  ;;  %v7837_v4 = vpop.permute.xlu0 %2991 }
 0x421   :  { %v3021_v0 = vsel %vm176_vm3, %v2988_v3, %v2990_v30  ;;  %v3022_v23 = vsel %vm176_vm3, %v2990_v30, %v7837_v4 }
 0x422   :  { %3533 = vrot.lane.b32.xlu1 %v7542_v45, %s5882_s30  ;;  %3541 = vrot.lane.b32.xlu0 %v7539_v17, %s5882_s30 }
 0x423   :  { %4145 = vmatprep.subr.mxu0 %v3022_v23 }
 0x424   :  { %v7846_v32 = vpop.permute.xlu1 %2981  ;;  %v2980_v40 = vpop.permute.xlu0 %2979  ;;  %4146 = vmatpush1.msra.mxu0 %v3021_v0 }
 0x425   :  { %v3018_v38 = vsel %vm176_vm3, %v2980_v40, %v7846_v32 }
 0x426   :  { %3531 = vrot.lane.b32.xlu1 %v7570_v62, %s5882_s30  ;;  %3535 = vrot.lane.b32.xlu0 %v7557_v46, %s5882_s30 }
 0x427   :  { %4147 = vmatprep.subr.mxu0 %v3018_v38 }
 0x428   :  { %v2874_v11 = vpop.permute.xlu1 %2873  ;;  %v2978_v9 = vpop.permute.xlu0 %2977 }
 0x429   :  { %v3017_v43 = vsel %vm176_vm3, %v2978_v9, %v2980_v40 }
 0x42a   :  { %3525 = vrot.lane.b32.xlu1 %v7576_v19, %s5882_s30  ;;  %3523 = vrot.lane.b32.xlu0 %v7573_v15, %s5882_s30 }
 0x42b   :  { %4148 = vmatpush1.msra.mxu0 %v3017_v43 }
 0x42c   :  { %v2872_v52 = vpop.permute.xlu1 %2871  ;;  %v7859_v26 = vpop.permute.xlu0 %2875 }
 0x42d   :  { %v2893_v63 = vsel %vm9136_vm4, %v2872_v52, %v2874_v11  ;;  %v2894_v5 = vsel %vm9137_vm5, %v2874_v11, %v7859_v26  ;;  %vm9140_vm4 = vmmov %vm9132_vm1 }
 0x42e   :  { %3417 = vrot.lane.b32.xlu1 %v7400_v12, %s9138_s25  ;;  %3521 = vrot.lane.b32.xlu0 %v7604_v48, %s5882_s30 }
 0x42f   :  { %4149 = vmatprep.subr.mxu0 %v2894_v5 }
 0x430   :  { %v7868_v36 = vpop.permute.xlu1 %2865  ;;  %v2864_v59 = vpop.permute.xlu0 %2863  ;;  %4150 = vmatpush1.msra.mxu0 %v2893_v63 }
 0x431   :  { %v2890_v50 = vsel %vm9139_vm7, %v2864_v59, %v7868_v36  ;;  %vm9141_vm7 = vmmov %vm9137_vm5 }
 0x432   :  { %3415 = vrot.lane.b32.xlu1 %v7483_v1, %s9138_s25  ;;  %3419 = vrot.lane.b32.xlu0 %v7509_v8, %s9138_s25 }
 0x433   :  { %4151 = vmatprep.subr.mxu0 %v2890_v50 }
 0x434   :  { %v3152_v37 = vpop.permute.xlu1 %3151  ;;  %v3150_v14 = vpop.permute.xlu0 %3149 }
 0x435   :  { %3208 = vst.msk [vmem:[#allocation2 + $0x278] sm:$0xff] %vm60_vm14, %v3152_v37  ;;  %v3167_v22 = vsel %vm9132_vm1, %v7787_v27, %v3150_v14  ;;  %v3168_v28 = vsel %vm9140_vm4, %v3150_v14, %v3152_v37  ;;  %vm9142_vm1 = vmmov %vm9137_vm5 }
 0x436   :  { %3409 = vrot.lane.b32.xlu1 %v7520_v6, %s9138_s25  ;;  %3407 = vrot.lane.b32.xlu0 %v7517_v13, %s9138_s25 }
 0x437   :  { %4287 = vmatprep.subr.mxu1 %v3168_v28 }
 0x438   :  { %v2854_v58 = vpop.permute.xlu1 %2853  ;;  %v2862_v61 = vpop.permute.xlu0 %2861  ;;  %4288 = vmatpush1.msra.mxu1 %v3167_v22  ;;  %v7996_v22 = vld [vmem:[%s9093_s7 + $0x40] sm:$0xff] }
 0x439   :  { %v2889_v42 = vsel %vm9137_vm5, %v2862_v61, %v2864_v59  ;;  %vm9143_vm5 = vmmov %vm9140_vm4 }
 0x43a   :  { %3709 = vrot.lane.b32.xlu1 %v7672_v21, %s5881_s28  ;;  %3707 = vrot.lane.b32.xlu0 %v7591_v24, %s5881_s28 }
 0x43b   :  { %4152 = vmatpush1.msra.mxu0 %v2889_v42 }
 0x43c   :  { %v3140_v27 = vpop.permute.xlu1 %3139  ;;  %v7889_v44 = vpop.permute.xlu0 %2855 }
 0x43d   :  { %v2886_v16 = vsel %vm9141_vm7, %v2854_v58, %v7889_v44  ;;  %v3163_v30 = vsel %vm9143_vm5, %v7779_v25, %v3140_v27  ;;  %vm9144_vm7 = vmmov %vm9142_vm1 }
 0x43e   :  { %3397 = vrot.lane.b32.xlu1 %v7542_v45, %s9138_s25  ;;  %3405 = vrot.lane.b32.xlu0 %v7539_v17, %s9138_s25  ;;  %vm9147_vm5 = vmmov %vm9144_vm7 }
 0x43f   :  { %4153 = vmatprep.subr.mxu0 %v2886_v16  ;;  %v8024_v16 = vld [vmem:[%s9093_s7 + $0x8] sm:$0xff] }
 0x440   :  { %v2852_v56 = vpop.permute.xlu1 %2851  ;;  %v3142_v18 = vpop.permute.xlu0 %3141 }
 0x441   :  { %v2885_v60 = vsel %vm9142_vm1, %v2852_v56, %v2854_v58  ;;  %v3164_v53 = vsel %vm9140_vm4, %v3140_v27, %v3142_v18  ;;  %3203 = vst.msk [vmem:[#allocation2 + $0x250] sm:$0xff] %vm60_vm14, %v3142_v18  ;;  %vm9145_vm1 = vmmov %vm9140_vm4  ;;  %v8009_v58 = vld [vmem:[%s9093_s7 + $0x30] sm:$0xff]  ;;  %v8029_v56 = vld [vmem:[%s9094_s3 + $0x8] sm:$0xff] }
 0x442   :  { %3695 = vrot.lane.b32.xlu1 %v7607_v20, %s5881_s28  ;;  %3399 = vrot.lane.b32.xlu0 %v7557_v46, %s9138_s25  ;;  %vm9146_vm4 = vmmov %vm9145_vm1  ;;  %v8019_v27 = vld [vmem:[%s9093_s7 + $0x10] sm:$0xff] }
 0x443   :  { %4154 = vmatpush1.msra.mxu0 %v2885_v60  ;;  %4289 = vmatprep.subr.mxu1 %v3164_v53  ;;  %v8042_v53 = vld [vmem:[%s9093_s7 + $0x48] sm:$0xff] }
 0x444   :  { %v7906_v47 = vpop.permute.xlu1 %2845  ;;  %v2844_v34 = vpop.permute.xlu0 %2843  ;;  %4290 = vmatpush1.msra.mxu1 %v3163_v30  ;;  %4197 = vmatprep.mubr.f32.mxu0 %v8029_v56 }
 0x445   :  { %v2882_v3 = vsel %vm9144_vm7, %v2844_v34, %v7906_v47  ;;  %vm9148_vm7 = vmmov %vm9145_vm1  ;;  %4351 = vmatprep.mubr.f32.mxu1 %v8029_v56 }
 0x446   :  { %3395 = vrot.lane.b32.xlu1 %v7570_v62, %s9138_s25  ;;  %3697 = vrot.lane.b32.xlu0 %v7688_v51, %s5881_s28 }
 0x447   :  { %4155 = vmatprep.subr.mxu0 %v2882_v3 }
 0x448   :  { %v3132_v46 = vpop.permute.xlu1 %3131  ;;  %v3130_v0 = vpop.permute.xlu0 %3129 }
 0x449   :  { %3198 = vst.msk [vmem:[#allocation2 + $0x228] sm:$0xff] %vm60_vm14, %v3132_v46  ;;  %v3159_v25 = vsel %vm9145_vm1, %v7781_v7, %v3130_v0  ;;  %v3160_v23 = vsel %vm9146_vm4, %v3130_v0, %v3132_v46  ;;  %vm9150_vm4 = vmmov %vm9147_vm5 }
 0x44a   :  { %3389 = vrot.lane.b32.xlu1 %v7576_v19, %s9138_s25  ;;  %3387 = vrot.lane.b32.xlu0 %v7573_v15, %s9138_s25 }
 0x44b   :  { %4291 = vmatprep.subr.mxu1 %v3160_v23 }
 0x44c   :  { %v3120_v40 = vpop.permute.xlu1 %3119  ;;  %v2842_v38 = vpop.permute.xlu0 %2841  ;;  %4292 = vmatpush1.msra.mxu1 %v3159_v25  ;;  %v8063_v25 = vld [vmem:[%s9093_s7] sm:$0xff] }
 0x44d   :  { %v2881_v11 = vsel %vm9147_vm5, %v2842_v38, %v2844_v34  ;;  %vm9151_vm5 = vmmov %vm9150_vm4 }
 0x44e   :  { %3685 = vrot.lane.b32.xlu1 %v7704_v33, %s5881_s28  ;;  %3683 = vrot.lane.b32.xlu0 %v7618_v57, %s5881_s28  ;;  %v3155_v57 = vsel %vm9145_vm1, %v7798_v49, %v3120_v40  ;;  %vm9153_vm1 = vmmov %vm9150_vm4 }
 0x44f   :  { %4156 = vmatpush1.msra.mxu0 %v2881_v11  ;;  %v3792_v11 = vld [vmem:[%s9093_s7 + $0x98] sm:$0xff] }
 0x450   :  { %v3014_v7 = vpop.permute.xlu1 %3013  ;;  %v3122_v9 = vpop.permute.xlu0 %3121  ;;  %4157 = vmatprep.subr.mxu0 %v7400_v12 }
 0x451   :  { %v3156_v19 = vsel %vm9148_vm7, %v3120_v40, %v3122_v9  ;;  %3193 = vst.msk [vmem:[#allocation2 + $0x200] sm:$0xff] %vm60_vm14, %v3122_v9  ;;  %4158 = vmatpush1.msra.mxu0 %v7483_v1  ;;  %vm9152_vm7 = vmmov %vm9150_vm4 }
 0x452   :  { %3281 = vrot.lane.b32.xlu1 %v7400_v12, %s9149_s26  ;;  %3385 = vrot.lane.b32.xlu0 %v7604_v48, %s9138_s25  ;;  %v3031_v12 = vsel %vm176_vm3, %v7815_v54, %v3014_v7 }
 0x453   :  { %4159 = vmatprep.subr.mxu0 %v7517_v13  ;;  %4293 = vmatprep.subr.mxu1 %v3156_v19 }
 0x454   :  { %v3004_v43 = vpop.permute.xlu1 %3003  ;;  %v3016_v52 = vpop.permute.xlu0 %3015  ;;  %4160 = vmatpush1.msra.mxu0 %v7539_v17  ;;  %4294 = vmatpush1.msra.mxu1 %v3155_v57  ;;  %v3793_v57 = vld [vmem:[%s9093_s7 + $0xa0] sm:$0xff] }
 0x455   :  { %v3032_v63 = vsel %vm176_vm3, %v3014_v7, %v3016_v52  ;;  %3072 = vst.msk [vmem:[#allocation2 + $0x1d8] sm:$0xff] %vm60_vm14, %v3016_v52  ;;  %4161 = vmatprep.subr.mxu0 %v7542_v45 }
 0x456   :  { %3671 = vrot.lane.b32.xlu1 %v7629_v39, %s5881_s28  ;;  %3283 = vrot.lane.b32.xlu0 %v7509_v8, %s9149_s26  ;;  %v3027_v8 = vsel %vm176_vm3, %v7824_v35, %v3004_v43 }
 0x457   :  { %4162 = vmatpush1.msra.mxu0 %v7570_v62  ;;  %4295 = vmatprep.subr.mxu1 %v3032_v63  ;;  %v8095_v63 = vld [vmem:[%s9093_s7 + $0xb0] sm:$0xff] }
 0x458   :  { %v2994_v17 = vpop.permute.xlu1 %2993  ;;  %v3006_v49 = vpop.permute.xlu0 %3005  ;;  %4163 = vmatprep.subr.mxu0 %v7573_v15  ;;  %4296 = vmatpush1.msra.mxu1 %v3031_v12  ;;  %v8100_v12 = vld [vmem:[%s9093_s7 + $0xa8] sm:$0xff] }
 0x459   :  { %v3028_v5 = vsel %vm176_vm3, %v3004_v43, %v3006_v49  ;;  %3067 = vst.msk [vmem:[#allocation2 + $0x1b0] sm:$0xff] %vm60_vm14, %v3006_v49  ;;  %4164 = vmatpush1.msra.mxu0 %v7604_v48 }
 0x45a   :  { %3279 = vrot.lane.b32.xlu1 %v7483_v1, %s9149_s26  ;;  %3673 = vrot.lane.b32.xlu0 %v7715_v10, %s5881_s28  ;;  %v3023_v1 = vsel %vm176_vm3, %v7837_v4, %v2994_v17 }
 0x45b   :  { %4297 = vmatprep.subr.mxu1 %v3028_v5 }
 0x45c   :  { %v2984_v62 = vpop.permute.xlu1 %2983  ;;  %v2996_v39 = vpop.permute.xlu0 %2995  ;;  %4298 = vmatpush1.msra.mxu1 %v3027_v8  ;;  %v3787_v8 = vld [vmem:[%s9093_s7 + $0x70] sm:$0xff] }
 0x45d   :  { %v3024_v15 = vsel %vm176_vm3, %v2994_v17, %v2996_v39  ;;  %3062 = vst.msk [vmem:[#allocation2 + $0x188] sm:$0xff] %vm60_vm14, %v2996_v39 }
 0x45e   :  { %3273 = vrot.lane.b32.xlu1 %v7520_v6, %s9149_s26  ;;  %3271 = vrot.lane.b32.xlu0 %v7517_v13, %s9149_s26  ;;  %v3019_v13 = vsel %vm176_vm3, %v7846_v32, %v2984_v62 }
 0x45f   :  { %4299 = vmatprep.subr.mxu1 %v3024_v15 }
 0x460   :  { %v3704_v48 = vpop.permute.xlu1 %3703  ;;  %v2986_v54 = vpop.permute.xlu0 %2985  ;;  %4300 = vmatpush1.msra.mxu1 %v3023_v1 }
 0x461   :  { %v3020_v35 = vsel %vm176_vm3, %v2984_v62, %v2986_v54  ;;  %3057 = vst.msk [vmem:[#allocation2 + $0x160] sm:$0xff] %vm60_vm14, %v2986_v54  ;;  %v3786_v62 = vld [vmem:[%s9093_s7 + $0x68] sm:$0xff] }
 0x462   :  { %3559 = vrot.lane.b32.xlu1 %v7672_v21, %s5882_s30  ;;  %3557 = vrot.lane.b32.xlu0 %v7591_v24, %s5882_s30  ;;  %v7983_v21 = vld [vmem:[%s9093_s7 + $0x60] sm:$0xff] }
 0x463   :  { %4301 = vmatprep.subr.mxu1 %v3020_v35  ;;  %v8126_v35 = vld [vmem:[%s9093_s7 + $0x78] sm:$0xff] }
 0x464   :  { %v3702_v6 = vpop.permute.xlu1 %3701  ;;  %v7975_v4 = vpop.permute.xlu0 %3705  ;;  %4302 = vmatpush1.msra.mxu1 %v3019_v13 }
 0x465   :  { %v3728_v59 = vsel %vm804_vm2, %v3702_v6, %v3704_v48  ;;  %v3729_v50 = vsel %vm804_vm2, %v3704_v48, %v7975_v4 }
 0x466   :  { %3261 = vrot.lane.b32.xlu1 %v7542_v45, %s9149_s26  ;;  %3269 = vrot.lane.b32.xlu0 %v7983_v21, %s9149_s26 }
 0x467   :  { %4165 = vmatprep.subr.mxu0 %v3729_v50  ;;  %v8144_v50 = vld [vmem:[%s9093_s7 + $0x80] sm:$0xff] }
 0x468   :  { %v2880_v24 = vpop.permute.xlu1 %2879  ;;  %v2878_v32 = vpop.permute.xlu0 %2877  ;;  %4166 = vmatpush2.msra.mxu0 %v3728_v59  ;;  %v3780_v59 = vld [vmem:[%s9093_s7 + $0x38] sm:$0xff] }
 0x469   :  { %2936 = vst.msk [vmem:[#allocation2 + $0x138] sm:$0xff] %vm60_vm14, %v2880_v24  ;;  %v2895_v37 = vsel %vm9150_vm4, %v7859_v26, %v2878_v32  ;;  %v2896_v14 = vsel %vm9151_vm5, %v2878_v32, %v2880_v24  ;;  %vm9154_vm4 = vmmov %vm9153_vm1 }
 0x46a   :  { %3547 = vrot.lane.b32.xlu1 %v7607_v20, %s5882_s30  ;;  %3263 = vrot.lane.b32.xlu0 %v7996_v22, %s9149_s26  ;;  %vm9155_vm5 = vmmov %vm9153_vm1 }
 0x46b   :  { %4303 = vmatprep.subr.mxu1 %v2896_v14 }
 0x46c   :  { %v8002_v45 = vpop.permute.xlu1 %3693  ;;  %v3692_v28 = vpop.permute.xlu0 %3691  ;;  %4304 = vmatpush1.msra.mxu1 %v2895_v37 }
 0x46d   :  { %v3724_v26 = vsel %vm804_vm2, %v3692_v28, %v8002_v45 }
 0x46e   :  { %3259 = vrot.lane.b32.xlu1 %v8009_v58, %s9149_s26  ;;  %3549 = vrot.lane.b32.xlu0 %v7688_v51, %s5882_s30 }
 0x46f   :  { %4167 = vmatprep.subr.mxu0 %v3724_v26 }
 0x470   :  { %v2868_v20 = vpop.permute.xlu1 %2867  ;;  %v3690_v61 = vpop.permute.xlu0 %3689 }
 0x471   :  { %v3723_v42 = vsel %vm804_vm2, %v3690_v61, %v3692_v28  ;;  %v2891_v30 = vsel %vm9153_vm1, %v7868_v36, %v2868_v20 }
 0x472   :  { %3253 = vrot.lane.b32.xlu1 %v8019_v27, %s9149_s26  ;;  %3251 = vrot.lane.b32.xlu0 %v8024_v16, %s9149_s26 }
 0x473   :  { %4168 = vmatpush2.msra.mxu0 %v3723_v42 }
 0x474   :  { %v3680_v51 = vpop.permute.xlu1 %3679  ;;  %v2870_v18 = vpop.permute.xlu0 %2869 }
 0x475   :  { %v2892_v60 = vsel %vm9152_vm7, %v2868_v20, %v2870_v18  ;;  %2931 = vst.msk [vmem:[#allocation2 + $0x110] sm:$0xff] %vm60_vm14, %v2870_v18  ;;  %vm9156_vm7 = vmmov %vm9153_vm1  ;;  %v8166_v20 = vld [vmem:[%s9093_s7 + $0x50] sm:$0xff] }
 0x476   :  { %3539 = vrot.lane.b32.xlu1 %v7704_v33, %s5882_s30  ;;  %3537 = vrot.lane.b32.xlu0 %v8042_v53, %s5882_s30  ;;  %v8058_v33 = vld [vmem:[%s9093_s7 + $0x18] sm:$0xff] }
 0x477   :  { %4305 = vmatprep.subr.mxu1 %v2892_v60 }
 0x478   :  { %v3678_v34 = vpop.permute.xlu1 %3677  ;;  %v8050_v3 = vpop.permute.xlu0 %3681  ;;  %4306 = vmatpush1.msra.mxu1 %v2891_v30 }
 0x479   :  { %v3718_v46 = vsel %vm804_vm2, %v3678_v34, %v3680_v51  ;;  %v3719_v0 = vsel %vm804_vm2, %v3680_v51, %v8050_v3  ;;  %v3349_v34 = vld [vmem:[%s9093_s7 + $0x20] sm:$0xff] }
 0x47a   :  { %3527 = vrot.lane.b32.xlu1 %v8058_v33, %s5882_s30  ;;  %3249 = vrot.lane.b32.xlu0 %v8063_v25, %s9149_s26 }
 0x47b   :  { %4169 = vmatprep.subr.mxu0 %v3719_v0 }
 0x47c   :  { %v2860_v36 = vpop.permute.xlu1 %2859  ;;  %v2858_v23 = vpop.permute.xlu0 %2857  ;;  %4170 = vmatpush2.msra.mxu0 %v3718_v46 }
 0x47d   :  { %2926 = vst.msk [vmem:[#allocation2 + $0xe8] sm:$0xff] %vm60_vm14, %v2860_v36  ;;  %v2887_v40 = vsel %vm9154_vm4, %v7889_v44, %v2858_v23  ;;  %v2888_v38 = vsel %vm9155_vm5, %v2858_v23, %v2860_v36  ;;  %v3791_v44 = vld [vmem:[%s9093_s7 + $0x90] sm:$0xff]  ;;  %vm9157_vm4 = vcmask 769024  }
 0x47e   :  { %3859 = vrot.lane.b32.xlu1 %v3792_v11, %s5880_s23  ;;  %3529 = vrot.lane.b32.xlu0 %v7715_v10, %s5882_s30  ;;  %vm9158_vm5 = vmmov %vm9157_vm4 }
 0x47f   :  { %4307 = vmatprep.subr.mxu1 %v2888_v38 }
 0x480   :  { %v8079_v7 = vpop.permute.xlu1 %3669  ;;  %v3668_v9 = vpop.permute.xlu0 %3667  ;;  %4308 = vmatpush1.msra.mxu1 %v2887_v40 }
 0x481   :  { %v3714_v19 = vsel %vm804_vm2, %v3668_v9, %v8079_v7 }
 0x482   :  { %3857 = vrot.lane.b32.xlu1 %v3791_v44, %s5880_s23  ;;  %3861 = vrot.lane.b32.xlu0 %v3793_v57, %s5880_s23 }
 0x483   :  { %4171 = vmatprep.subr.mxu0 %v3714_v19 }
 0x484   :  { %v2848_v10 = vpop.permute.xlu1 %2847  ;;  %v3666_v43 = vpop.permute.xlu0 %3665 }
 0x485   :  { %v3713_v52 = vsel %vm804_vm2, %v3666_v43, %v3668_v9  ;;  %v2883_v39 = vsel %vm9153_vm1, %v7906_v47, %v2848_v10  ;;  %vm9160_vm1 = vmmov %vm9157_vm4 }
 0x486   :  { %3423 = vrot.lane.b32.xlu1 %v8095_v63, %s9138_s25  ;;  %3421 = vrot.lane.b32.xlu0 %v8100_v12, %s9138_s25 }
 0x487   :  { %4172 = vmatpush2.msra.mxu0 %v3713_v52 }
 0x488   :  { %v3554_v17 = vpop.permute.xlu1 %3553  ;;  %v2850_v49 = vpop.permute.xlu0 %2849 }
 0x489   :  { %v2884_v5 = vsel %vm9156_vm7, %v2848_v10, %v2850_v49  ;;  %2921 = vst.msk [vmem:[#allocation2 + $0xc0] sm:$0xff] %vm60_vm14, %v2850_v49  ;;  %vm9159_vm7 = vmmov %vm9157_vm4 }
 0x48a   :  { %3849 = vrot.lane.b32.xlu1 %v3787_v8, %s5880_s23  ;;  %3847 = vrot.lane.b32.xlu0 %v3786_v62, %s5880_s23 }
 0x48b   :  { %4309 = vmatprep.subr.mxu1 %v2884_v5 }
 0x48c   :  { %v3552_v15 = vpop.permute.xlu1 %3551  ;;  %v8118_v1 = vpop.permute.xlu0 %3555  ;;  %4310 = vmatpush1.msra.mxu1 %v2883_v39 }
 0x48d   :  { %v3573_v48 = vsel %vm60_vm14, %v3552_v15, %v3554_v17  ;;  %v3574_v54 = vsel %vm60_vm14, %v3554_v17, %v8118_v1  ;;  %4311 = vmatprep.subr.mxu1 %v8100_v12 }
 0x48e   :  { %3411 = vrot.lane.b32.xlu1 %v8126_v35, %s9138_s25  ;;  %3845 = vrot.lane.b32.xlu0 %v7983_v21, %s5880_s23 }
 0x48f   :  { %4312 = vmatpush1.msra.mxu1 %v3793_v57  ;;  %4173 = vmatprep.subr.mxu0 %v3574_v54  ;;  %v8259_v54 = vld [vmem:[%s9093_s7 + $0x28] sm:$0xff] }
 0x490   :  { %v8133_v47 = vpop.permute.xlu1 %3545  ;;  %v3544_v13 = vpop.permute.xlu0 %3543  ;;  %4313 = vmatprep.subr.mxu1 %v8126_v35  ;;  %4174 = vmatpush2.msra.mxu0 %v3573_v48  ;;  %4606 = vst [vmem:[%s9096_s8 + $0x28] sm:$0xff] %v8259_v54  ;;  %4612 = vst [vmem:[%s9096_s8 + $0x58] sm:$0xff] %v8259_v54 }
 0x491   :  { %v3570_v6 = vsel %vm60_vm14, %v3544_v13, %v8133_v47  ;;  %4314 = vmatpush1.msra.mxu1 %v3787_v8  ;;  %4601 = vst [vmem:[%s9096_s8] sm:$0xff] %v8259_v54  ;;  %4605 = vst [vmem:[%s9096_s8 + $0x20] sm:$0xff] %v8259_v54 }
 0x492   :  { %3835 = vrot.lane.b32.xlu1 %v3780_v59, %s5880_s23  ;;  %3413 = vrot.lane.b32.xlu0 %v8144_v50, %s9138_s25  ;;  %4607 = vst [vmem:[%s9096_s8 + $0x30] sm:$0xff] %v8259_v54  ;;  %4611 = vst [vmem:[%s9096_s8 + $0x50] sm:$0xff] %v8259_v54 }
 0x493   :  { %4315 = vmatprep.subr.mxu1 %v8042_v53  ;;  %4175 = vmatprep.subr.mxu0 %v3570_v6 }
 0x494   :  { %v3534_v21 = vpop.permute.xlu1 %3533  ;;  %v3542_v24 = vpop.permute.xlu0 %3541  ;;  %4316 = vmatpush1.msra.mxu1 %v7996_v22 }
 0x495   :  { %v3569_v32 = vsel %vm60_vm14, %v3542_v24, %v3544_v13  ;;  %4317 = vmatprep.subr.mxu1 %v8058_v33 }
 0x496   :  { %3833 = vrot.lane.b32.xlu1 %v8009_v58, %s5880_s23  ;;  %3837 = vrot.lane.b32.xlu0 %v7996_v22, %s5880_s23 }
 0x497   :  { %4318 = vmatpush1.msra.mxu1 %v8019_v27  ;;  %4176 = vmatpush2.msra.mxu0 %v3569_v32 }
 0x498   :  { %v3532_v37 = vpop.permute.xlu1 %3531  ;;  %v8158_v14 = vpop.permute.xlu0 %3535 }
 0x499   :  { %v3565_v28 = vsel %vm60_vm14, %v3532_v37, %v3534_v21  ;;  %v3566_v26 = vsel %vm60_vm14, %v3534_v21, %v8158_v14  ;;  %v4116_v37 = vld [vmem:[%s9095_s4 + $0x8] sm:$0xff] }
 0x49a   :  { %3403 = vrot.lane.b32.xlu1 %v8166_v20, %s9138_s25  ;;  %3401 = vrot.lane.b32.xlu0 %v8042_v53, %s9138_s25 }
 0x49b   :  { %4177 = vmatprep.subr.mxu0 %v3566_v26 }
 0x49c   :  { %v8172_v22 = vpop.permute.xlu1 %3525  ;;  %v3524_v58 = vpop.permute.xlu0 %3523  ;;  %4178 = vmatpush2.msra.mxu0 %v3565_v28 }
 0x49d   :  { %v3562_v61 = vsel %vm60_vm14, %v3524_v58, %v8172_v22 }
 0x49e   :  { %3825 = vrot.lane.b32.xlu1 %v8019_v27, %s5880_s23  ;;  %3823 = vrot.lane.b32.xlu0 %v8024_v16, %s5880_s23 }
 0x49f   :  { %4179 = vmatprep.subr.mxu0 %v3562_v61  ;;  %v4115_v61 = vld [vmem:[%s9095_s4] sm:$0xff] }
 0x4a0   :  { %v3418_v42 = vpop.permute.xlu1 %3417  ;;  %v3522_v51 = vpop.permute.xlu0 %3521 }
 0x4a1   :  { %v3561_v18 = vsel %vm60_vm14, %v3522_v51, %v3524_v58 }
 0x4a2   :  { %3391 = vrot.lane.b32.xlu1 %v8058_v33, %s9138_s25  ;;  %3821 = vrot.lane.b32.xlu0 %v8063_v25, %s5880_s23 }
 0x4a3   :  { %4180 = vmatpush2.msra.mxu0 %v3561_v18 }
 0x4a4   :  { %v3416_v60 = vpop.permute.xlu1 %3415  ;;  %v8185_v30 = vpop.permute.xlu0 %3419 }
 0x4a5   :  { %v3437_v27 = vsel %vm9157_vm4, %v3416_v60, %v3418_v42  ;;  %v3438_v16 = vsel %vm9158_vm5, %v3418_v42, %v8185_v30  ;;  %vm9161_vm4 = vmmov %vm9160_vm1 }
 0x4a6   :  { %3863 = vrot.lane.b32.xlu1 %v8100_v12, %s5880_s23  ;;  %3393 = vrot.lane.b32.xlu0 %v3349_v34, %s9138_s25  ;;  %vm9162_vm5 = vmmov %vm9160_vm1 }
 0x4a7   :  { %4181 = vmatprep.subr.mxu0 %v3438_v16 }
 0x4a8   :  { %v8196_v46 = vpop.permute.xlu1 %3409  ;;  %v3408_v0 = vpop.permute.xlu0 %3407  ;;  %4182 = vmatpush2.msra.mxu0 %v3437_v27 }
 0x4a9   :  { %v3434_v25 = vsel %vm9159_vm7, %v3408_v0, %v8196_v46  ;;  %vm9163_vm7 = vmmov %vm9160_vm1 }
 0x4aa   :  { %3285 = vrot.lane.b32.xlu1 %v8100_v12, %s9149_s26  ;;  %3865 = vrot.lane.b32.xlu0 %v8095_v63, %s5880_s23 }
 0x4ab   :  { %4183 = vmatprep.subr.mxu0 %v3434_v25 }
 0x4ac   :  { %v8204_v36 = vpop.permute.xlu1 %3709  ;;  %v3708_v23 = vpop.permute.xlu0 %3707 }
 0x4ad   :  { %v3730_v40 = vsel %vm804_vm2, %v7975_v4, %v3708_v23  ;;  %v3731_v38 = vsel %vm804_vm2, %v3708_v23, %v8204_v36 }
 0x4ae   :  { %3851 = vrot.lane.b32.xlu1 %v8126_v35, %s5880_s23  ;;  %3287 = vrot.lane.b32.xlu0 %v8095_v63, %s9149_s26 }
 0x4af   :  { %4319 = vmatprep.subr.mxu1 %v3731_v38 }
 0x4b0   :  { %v3398_v11 = vpop.permute.xlu1 %3397  ;;  %v3406_v9 = vpop.permute.xlu0 %3405  ;;  %4320 = vmatpush2.msra.mxu1 %v3730_v40 }
 0x4b1   :  { %v3433_v19 = vsel %vm9160_vm1, %v3406_v9, %v3408_v0 }
 0x4b2   :  { %3275 = vrot.lane.b32.xlu1 %v8126_v35, %s9149_s26  ;;  %3853 = vrot.lane.b32.xlu0 %v8144_v50, %s5880_s23 }
 0x4b3   :  { %4184 = vmatpush2.msra.mxu0 %v3433_v19 }
 0x4b4   :  { %v3696_v4 = vpop.permute.xlu1 %3695  ;;  %v8219_v44 = vpop.permute.xlu0 %3399 }
 0x4b5   :  { %v3725_v57 = vsel %vm804_vm2, %v8002_v45, %v3696_v4  ;;  %v3430_v10 = vsel %vm9161_vm4, %v3398_v11, %v8219_v44  ;;  %vm9164_vm4 = vcmask 777216  }
 0x4b6   :  { %3839 = vrot.lane.b32.xlu1 %v8042_v53, %s5880_s23  ;;  %3277 = vrot.lane.b32.xlu0 %v8144_v50, %s9149_s26 }
 0x4b7   :  { %4185 = vmatprep.subr.mxu0 %v3430_v10 }
 0x4b8   :  { %v3396_v43 = vpop.permute.xlu1 %3395  ;;  %v8229_v52 = vpop.permute.xlu0 %3697 }
 0x4b9   :  { %v3429_v63 = vsel %vm9162_vm5, %v3396_v43, %v3398_v11  ;;  %v3726_v12 = vsel %vm804_vm2, %v3696_v4, %v8229_v52  ;;  %vm9165_vm5 = vmmov %vm9164_vm4  ;;  %v8324_v43 = vld [vmem:[%s9094_s3] sm:$0xff] }
 0x4ba   :  { %3265 = vrot.lane.b32.xlu1 %v8042_v53, %s9149_s26  ;;  %3841 = vrot.lane.b32.xlu0 %v8166_v20, %s5880_s23 }
 0x4bb   :  { %4186 = vmatpush2.msra.mxu0 %v3429_v63  ;;  %4321 = vmatprep.subr.mxu1 %v3726_v12 }
 0x4bc   :  { %v8238_v45 = vpop.permute.xlu1 %3389  ;;  %v3388_v17 = vpop.permute.xlu0 %3387  ;;  %4322 = vmatpush2.msra.mxu1 %v3725_v57 }
 0x4bd   :  { %v3426_v49 = vsel %vm9163_vm7, %v3388_v17, %v8238_v45  ;;  %vm9166_vm7 = vmmov %vm9164_vm4 }
 0x4be   :  { %3827 = vrot.lane.b32.xlu1 %v8058_v33, %s5880_s23  ;;  %3267 = vrot.lane.b32.xlu0 %v8166_v20, %s9149_s26 }
 0x4bf   :  { %4187 = vmatprep.subr.mxu0 %v3426_v49 }
 0x4c0   :  { %v8246_v53 = vpop.permute.xlu1 %3685  ;;  %v3684_v5 = vpop.permute.xlu0 %3683 }
 0x4c1   :  { %v3720_v8 = vsel %vm804_vm2, %v8050_v3, %v3684_v5  ;;  %v3721_v62 = vsel %vm804_vm2, %v3684_v5, %v8246_v53  ;;  %v8339_v5 = vld [vmem:[%s9094_s3 + $0x18] sm:$0xff] }
 0x4c2   :  { %3255 = vrot.lane.b32.xlu1 %v8058_v33, %s9149_s26  ;;  %3829 = vrot.lane.b32.xlu0 %v3349_v34, %s5880_s23 }
 0x4c3   :  { %4323 = vmatprep.subr.mxu1 %v3721_v62 }
 0x4c4   :  { %v3282_v39 = vpop.permute.xlu1 %3281  ;;  %v3386_v15 = vpop.permute.xlu0 %3385  ;;  %4324 = vmatpush2.msra.mxu1 %v3720_v8 }
 0x4c5   :  { %v3425_v48 = vsel %vm9160_vm1, %v3386_v15, %v3388_v17  ;;  %vm9167_vm1 = vmmov %vm9164_vm4 }
 0x4c6   :  { %3711 = vrot.lane.b32.xlu1 %v8259_v54, %s5881_s28  ;;  %3257 = vrot.lane.b32.xlu0 %v3349_v34, %s9149_s26 }
 0x4c7   :  { %4188 = vmatpush2.msra.mxu0 %v3425_v48 }
 0x4c8   :  { %v3672_v3 = vpop.permute.xlu1 %3671  ;;  %v8264_v33 = vpop.permute.xlu0 %3283 }
 0x4c9   :  { %v3715_v35 = vsel %vm804_vm2, %v8079_v7, %v3672_v3  ;;  %v3302_v13 = vsel %vm9164_vm4, %v3282_v39, %v8264_v33  ;;  %vm9168_vm4 = vmmov %vm9167_vm1 }
 0x4ca   :  { %3687 = vrot.lane.b32.xlu1 %v8259_v54, %s5881_s28  ;;  %3699 = vrot.lane.b32.xlu0 %v8259_v54, %s5881_s28 }
 0x4cb   :  { %4189 = vmatprep.subr.mxu0 %v3302_v13 }
 0x4cc   :  { %v3280_v6 = vpop.permute.xlu1 %3279  ;;  %v8274_v59 = vpop.permute.xlu0 %3673 }
 0x4cd   :  { %v3301_v50 = vsel %vm9165_vm5, %v3280_v6, %v3282_v39  ;;  %v3716_v21 = vsel %vm804_vm2, %v3672_v3, %v8274_v59  ;;  %vm9169_vm5 = vmmov %vm9167_vm1 }
 0x4ce   :  { %3867 = vrot.lane.b32.xlu1 %v8259_v54, %s5880_s23  ;;  %3675 = vrot.lane.b32.xlu0 %v8259_v54, %s5881_s28 }
 0x4cf   :  { %4190 = vmatpush2.msra.mxu0 %v3301_v50  ;;  %4325 = vmatprep.subr.mxu1 %v3716_v21 }
 0x4d0   :  { %v8283_v7 = vpop.permute.xlu1 %3273  ;;  %v3272_v24 = vpop.permute.xlu0 %3271  ;;  %4326 = vmatpush2.msra.mxu1 %v3715_v35 }
 0x4d1   :  { %v3298_v32 = vsel %vm9166_vm7, %v3272_v24, %v8283_v7  ;;  %vm9170_vm7 = vmmov %vm9167_vm1 }
 0x4d2   :  { %3843 = vrot.lane.b32.xlu1 %v8259_v54, %s5880_s23  ;;  %3855 = vrot.lane.b32.xlu0 %v8259_v54, %s5880_s23 }
 0x4d3   :  { %4191 = vmatprep.subr.mxu0 %v3298_v32 }
 0x4d4   :  { %v3560_v28 = vpop.permute.xlu1 %3559  ;;  %v3558_v26 = vpop.permute.xlu0 %3557 }
 0x4d5   :  { %3616 = vst.msk [vmem:[#allocation2 + $0x458] sm:$0xff] %vm60_vm14, %v3560_v28  ;;  %v3575_v20 = vsel %vm60_vm14, %v8118_v1, %v3558_v26  ;;  %v3576_v58 = vsel %vm60_vm14, %v3558_v26, %v3560_v28 }
 0x4d6   :  { %4124 = vperm.xlu1 %5817, %v4116_v37   ;;  %3831 = vrot.lane.b32.xlu0 %v8259_v54, %s5880_s23 }
 0x4d7   :  { %4327 = vmatprep.subr.mxu1 %v3576_v58 }
 0x4d8   :  { %v3262_v42 = vpop.permute.xlu1 %3261  ;;  %v3270_v51 = vpop.permute.xlu0 %3269  ;;  %4328 = vmatpush2.msra.mxu1 %v3575_v20 }
 0x4d9   :  { %v3297_v18 = vsel %vm9167_vm1, %v3270_v51, %v3272_v24 }
 0x4da   :  { %4119 = vperm.xlu0 %5816, %v4115_v61   ;;  %4192 = vmatpush2.msra.mxu0 %v3297_v18 }
 0x4dc   :  { %v3548_v60 = vpop.permute.xlu1 %3547  ;;  %v8304_v1 = vpop.permute.xlu0 %3263 }
 0x4dd   :  { %v3571_v27 = vsel %vm60_vm14, %v8133_v47, %v3548_v60  ;;  %v3294_v16 = vsel %vm9168_vm4, %v3262_v42, %v8304_v1  ;;  %vm9171_vm4 = vcmask 769024  }
 0x4de   :  { %4193 = vmatprep.subr.mxu0 %v3294_v16 }
 0x4e0   :  { %v3260_v34 = vpop.permute.xlu1 %3259  ;;  %v3550_v0 = vpop.permute.xlu0 %3549 }
 0x4e1   :  { %v3293_v25 = vsel %vm9169_vm5, %v3260_v34, %v3262_v42  ;;  %v3572_v23 = vsel %vm60_vm14, %v3548_v60, %v3550_v0  ;;  %3611 = vst.msk [vmem:[#allocation2 + $0x430] sm:$0xff] %vm60_vm14, %v3550_v0  ;;  %vm9172_vm5 = vmmov %vm9171_vm4 }
 0x4e2   :  { %4194 = vmatpush2.msra.mxu0 %v3293_v25  ;;  %4329 = vmatprep.subr.mxu1 %v3572_v23 }
 0x4e3   :  { %4330 = vmatpush2.msra.mxu1 %v3571_v27 }
 0x4e4   :  { %v8313_v40 = vpop.permute.xlu1 %3253  ;;  %v3252_v38 = vpop.permute.xlu0 %3251 }
 0x4e5   :  { %v3290_v47 = vsel %vm9170_vm7, %v3252_v38, %v8313_v40  ;;  %vm9173_vm7 = vmmov %vm9171_vm4 }
 0x4e6   :  { %4195 = vmatprep.subr.mxu0 %v3290_v47 }
 0x4e8   :  { %v3540_v11 = vpop.permute.xlu1 %3539  ;;  %v3538_v9 = vpop.permute.xlu0 %3537 }
 0x4e9   :  { %3606 = vst.msk [vmem:[#allocation2 + $0x408] sm:$0xff] %vm60_vm14, %v3540_v11  ;;  %v3567_v19 = vsel %vm60_vm14, %v8158_v14, %v3538_v9  ;;  %v3568_v4 = vsel %vm60_vm14, %v3538_v9, %v3540_v11  ;;  %v8332_v14 = vld [vmem:[%s9094_s3 + $0x20] sm:$0xff] }
 0x4ea   :  { %4331 = vmatprep.subr.mxu1 %v3568_v4 }
 0x4eb   :  { %4332 = vmatpush2.msra.mxu1 %v3567_v19  ;;  %v8378_v19 = vld [vmem:[%s9094_s3 + $0x28] sm:$0xff] }
 0x4ec   :  { %v3528_v57 = vpop.permute.xlu1 %3527  ;;  %v3250_v10 = vpop.permute.xlu0 %3249 }
 0x4ed   :  { %v3563_v63 = vsel %vm60_vm14, %v8172_v22, %v3528_v57  ;;  %v3289_v12 = vsel %vm9167_vm1, %v3250_v10, %v3252_v38  ;;  %vm9174_vm1 = vmmov %vm9171_vm4  ;;  %v8367_v38 = vld [vmem:[%s9094_s3 + $0x10] sm:$0xff] }
 0x4ee   :  { %4196 = vmatpush2.msra.mxu0 %v3289_v12 }
 0x4ef   :  { %4198 = vmatmul.mubr.f32.vlgmr.msra.gmra.mxu0 %v8324_v43 }
 0x4f0   :  { %v3860_v17 = vpop.permute.xlu1 %3859  ;;  %v3530_v49 = vpop.permute.xlu0 %3529  ;;  %4203 = vmatprep.mubr.f32.mxu0 %v8332_v14 }
 0x4f1   :  { %v3564_v22 = vsel %vm60_vm14, %v3528_v57, %v3530_v49  ;;  %3601 = vst.msk [vmem:[#allocation2 + $0x3e0] sm:$0xff] %vm60_vm14, %v3530_v49 }
 0x4f2   :  { %4333 = vmatprep.subr.mxu1 %v3564_v22 }
 0x4f3   :  { %4204 = vmatmul.mubr.f32.gmra.mxu0 %v8339_v5  ;;  %4334 = vmatpush2.msra.mxu1 %v3563_v63 }
 0x4f4   :  { %v3858_v8 = vpop.permute.xlu1 %3857  ;;  %v3862_v62 = vpop.permute.xlu0 %3861  ;;  %4274 = vmatprep.mubr.f32.mxu0 %v8259_v54 }
 0x4f5   :  { %v3884_v39 = vsel %vm883_vm0, %v3858_v8, %v3860_v17  ;;  %v3885_v15 = vsel %vm883_vm0, %v3860_v17, %v3862_v62 }
 0x4f6   :  { %4234 = vmatprep.subr.mxu0 %v3885_v15 }
 0x4f7   :  { %4235 = vmatpush1.msra.mxu0 %v3884_v39 }
 0x4f8   :  { %v3424_v48 = vpop.permute.xlu1 %3423  ;;  %v3422_v3 = vpop.permute.xlu0 %3421 }
 0x4f9   :  { %3480 = vst.msk [vmem:[#allocation2 + $0x3b8] sm:$0xff] %vm60_vm14, %v3424_v48  ;;  %v3439_v35 = vsel %vm9171_vm4, %v8185_v30, %v3422_v3  ;;  %v3440_v13 = vsel %vm9172_vm5, %v3422_v3, %v3424_v48  ;;  %vm9175_vm4 = vmmov %vm9174_vm1 }
 0x4fa   :  { %4335 = vmatprep.subr.mxu1 %v3440_v13  ;;  %vm9176_vm5 = vmmov %vm9174_vm1 }
 0x4fb   :  { %4336 = vmatpush2.msra.mxu1 %v3439_v35 }
 0x4fc   :  { %v3850_v6 = vpop.permute.xlu1 %3849  ;;  %v3848_v50 = vpop.permute.xlu0 %3847 }
 0x4fd   :  { %v3880_v21 = vsel %vm883_vm0, %v3848_v50, %v3850_v6 }
 0x4fe   :  { %4236 = vmatprep.subr.mxu0 %v3880_v21 }
 0x500   :  { %v3412_v24 = vpop.permute.xlu1 %3411  ;;  %v3846_v32 = vpop.permute.xlu0 %3845 }
 0x501   :  { %v3435_v37 = vsel %vm9173_vm7, %v8196_v46, %v3412_v24  ;;  %v3879_v28 = vsel %vm883_vm0, %v3846_v32, %v3848_v50  ;;  %vm9177_vm7 = vmmov %vm9174_vm1 }
 0x502   :  { %4237 = vmatpush1.msra.mxu0 %v3879_v28 }
 0x504   :  { %v3836_v26 = vpop.permute.xlu1 %3835  ;;  %v3414_v20 = vpop.permute.xlu0 %3413 }
 0x505   :  { %v3436_v30 = vsel %vm9174_vm1, %v3412_v24, %v3414_v20  ;;  %3475 = vst.msk [vmem:[#allocation2 + $0x390] sm:$0xff] %vm60_vm14, %v3414_v20 }
 0x506   :  { %4337 = vmatprep.subr.mxu1 %v3436_v30 }
 0x507   :  { %4338 = vmatpush2.msra.mxu1 %v3435_v37 }
 0x508   :  { %v3834_v58 = vpop.permute.xlu1 %3833  ;;  %v3838_v61 = vpop.permute.xlu0 %3837 }
 0x509   :  { %v3874_v42 = vsel %vm883_vm0, %v3834_v58, %v3836_v26  ;;  %v3875_v51 = vsel %vm883_vm0, %v3836_v26, %v3838_v61  ;;  %v8419_v58 = vpack.i.bf16 %v8259_v54, %v8259_v54 }
 0x50a   :  { %4238 = vmatprep.subr.mxu0 %v3875_v51 }
 0x50b   :  { %4239 = vmatpush1.msra.mxu0 %v3874_v42  ;;  %5819 = vrot.lane.b32.xlu1 %v8419_v58, %s5881_s28 }
 0x50c   :  { %v3404_v46 = vpop.permute.xlu1 %3403  ;;  %v3402_v18 = vpop.permute.xlu0 %3401  ;;  %5824 = vrot.lane.b32.xlu0 %v8419_v58, %s5882_s30 }
 0x50d   :  { %3470 = vst.msk [vmem:[#allocation2 + $0x368] sm:$0xff] %vm60_vm14, %v3404_v46  ;;  %v3431_v60 = vsel %vm9175_vm4, %v8219_v44, %v3402_v18  ;;  %v3432_v27 = vsel %vm9176_vm5, %v3402_v18, %v3404_v46  ;;  %vm9178_vm4 = vcmask 777216  }
 0x50e   :  { %4339 = vmatprep.subr.mxu1 %v3432_v27  ;;  %vm9179_vm5 = vmmov %vm9178_vm4 }
 0x50f   :  { %4340 = vmatpush2.msra.mxu1 %v3431_v60  ;;  %5829 = vrot.lane.b32.xlu1 %v8419_v58, %s9138_s25 }
 0x510   :  { %v3826_v16 = vpop.permute.xlu1 %3825  ;;  %v3824_v34 = vpop.permute.xlu0 %3823  ;;  %5834 = vrot.lane.b32.xlu0 %v8419_v58, %s9149_s26 }
 0x511   :  { %v3870_v0 = vsel %vm883_vm0, %v3824_v34, %v3826_v16 }
 0x512   :  { %4240 = vmatprep.subr.mxu0 %v3870_v0 }
 0x513   :  { %5839 = vrot.lane.b32.xlu1 %v8419_v58, %s9126_s18 }
 0x514   :  { %v3392_v25 = vpop.permute.xlu1 %3391  ;;  %v3822_v23 = vpop.permute.xlu0 %3821 }
 0x515   :  { %v3427_v47 = vsel %vm9177_vm7, %v8238_v45, %v3392_v25  ;;  %v3869_v44 = vsel %vm883_vm0, %v3822_v23, %v3824_v34  ;;  %vm9180_vm7 = vmmov %vm9178_vm4 }
 0x516   :  { %4241 = vmatpush1.msra.mxu0 %v3869_v44 }
 0x517   :  { %5686 = vmatmul.mubr.msk.f32.vlgmr.msra.gmra.mxu0 %vm1120_vm12, %v8367_v38 }
 0x518   :  { %v3864_v11 = vpop.permute.xlu1 %3863  ;;  %v3394_v9 = vpop.permute.xlu0 %3393  ;;  %4280 = vmatprep.mubr.f32.mxu0 %v8259_v54 }
 0x519   :  { %v3886_v4 = vsel %vm883_vm0, %v3862_v62, %v3864_v11  ;;  %v3428_v57 = vsel %vm9174_vm1, %v3392_v25, %v3394_v9  ;;  %3465 = vst.msk [vmem:[#allocation2 + $0x340] sm:$0xff] %vm60_vm14, %v3394_v9  ;;  %vm9181_vm1 = vmmov %vm9178_vm4 }
 0x51a   :  { %4341 = vmatprep.subr.mxu1 %v3428_v57 }
 0x51b   :  { %5687 = vmatmul.mubr.msk.f32.gmra.mxu0 %vm1120_vm12, %v8378_v19  ;;  %4342 = vmatpush2.msra.mxu1 %v3427_v47 }
 0x51c   :  { %v3286_v45 = vpop.permute.xlu1 %3285  ;;  %v8385_v10 = vpop.permute.xlu0 %3865  ;;  %4428 = vmatprep.mubr.f32.mxu0 %v8259_v54 }
 0x51d   :  { %v3303_v63 = vsel %vm9178_vm4, %v8264_v33, %v3286_v45  ;;  %v3887_v12 = vsel %vm883_vm0, %v3864_v11, %v8385_v10  ;;  %vm9182_vm4 = vmmov %vm9181_vm1  ;;  %v3998_v11 = vld [vmem:[#allocation2 + $0x228] sm:$0xff] }
 0x51e   :  { %4388 = vmatprep.subr.mxu0 %v3887_v12  ;;  %v4063_v12 = vld [vmem:[#allocation2 + $0x430] sm:$0xff] }
 0x51f   :  { %4389 = vmatpush1.msra.mxu0 %v3886_v4 }
 0x520   :  { %v3852_v17 = vpop.permute.xlu1 %3851  ;;  %v3288_v49 = vpop.permute.xlu0 %3287 }
 0x521   :  { %v3881_v22 = vsel %vm883_vm0, %v3850_v6, %v3852_v17  ;;  %v3304_v8 = vsel %vm9179_vm5, %v3286_v45, %v3288_v49  ;;  %3344 = vst.msk [vmem:[#allocation2 + $0x318] sm:$0xff] %vm60_vm14, %v3288_v49  ;;  %vm9183_vm5 = vmmov %vm9181_vm1  ;;  %v3993_v45 = vld [vmem:[#allocation2 + $0x200] sm:$0xff]  ;;  %v3983_v49 = vld [vmem:[#allocation2 + $0x1b0] sm:$0xff] }
 0x522   :  { %4343 = vmatprep.subr.mxu1 %v3304_v8 }
 0x523   :  { %4344 = vmatpush2.msra.mxu1 %v3303_v63  ;;  %v3988_v63 = vld [vmem:[#allocation2 + $0x1d8] sm:$0xff] }
 0x524   :  { %v3276_v62 = vpop.permute.xlu1 %3275  ;;  %v8395_v39 = vpop.permute.xlu0 %3853 }
 0x525   :  { %v3299_v33 = vsel %vm9180_vm7, %v8283_v7, %v3276_v62  ;;  %v3882_v15 = vsel %vm883_vm0, %v3852_v17, %v8395_v39  ;;  %vm9184_vm7 = vmmov %vm9181_vm1 }
 0x526   :  { %4390 = vmatprep.subr.mxu0 %v3882_v15  ;;  %v3973_v15 = vld [vmem:[#allocation2 + $0x160] sm:$0xff] }
 0x527   :  { %4391 = vmatpush1.msra.mxu0 %v3881_v22  ;;  %v4058_v22 = vld [vmem:[#allocation2 + $0x408] sm:$0xff] }
 0x528   :  { %v3840_v48 = vpop.permute.xlu1 %3839  ;;  %v3278_v3 = vpop.permute.xlu0 %3277 }
 0x529   :  { %v3876_v35 = vsel %vm883_vm0, %v3838_v61, %v3840_v48  ;;  %v3300_v13 = vsel %vm9181_vm1, %v3276_v62, %v3278_v3  ;;  %3339 = vst.msk [vmem:[#allocation2 + $0x2f0] sm:$0xff] %vm60_vm14, %v3278_v3  ;;  %v3978_v62 = vld [vmem:[#allocation2 + $0x188] sm:$0xff]  ;;  %v3968_v3 = vld [vmem:[#allocation2 + $0x138] sm:$0xff] }
 0x52a   :  { %4345 = vmatprep.subr.mxu1 %v3300_v13  ;;  %v3963_v13 = vld [vmem:[#allocation2 + $0x110] sm:$0xff] }
 0x52b   :  { %4346 = vmatpush2.msra.mxu1 %v3299_v33 }
 0x52c   :  { %v3266_v6 = vpop.permute.xlu1 %3265  ;;  %v8404_v50 = vpop.permute.xlu0 %3841 }
 0x52d   :  { %v3877_v7 = vsel %vm883_vm0, %v3840_v48, %v8404_v50  ;;  %v3295_v28 = vsel %vm9183_vm5, %v8304_v1, %v3266_v6  ;;  %v4048_v48 = vld [vmem:[#allocation2 + $0x3b8] sm:$0xff] }
 0x52e   :  { %4392 = vmatprep.subr.mxu0 %v3877_v7  ;;  %v4033_v7 = vld [vmem:[#allocation2 + $0x340] sm:$0xff] }
 0x52f   :  { %4393 = vmatpush1.msra.mxu0 %v3876_v35  ;;  %v4043_v35 = vld [vmem:[#allocation2 + $0x390] sm:$0xff] }
 0x530   :  { %v3828_v21 = vpop.permute.xlu1 %3827  ;;  %v3268_v24 = vpop.permute.xlu0 %3267 }
 0x531   :  { %v3871_v32 = vsel %vm883_vm0, %v3826_v16, %v3828_v21  ;;  %v3296_v37 = vsel %vm9182_vm4, %v3266_v6, %v3268_v24  ;;  %3334 = vst.msk [vmem:[#allocation2 + $0x2c8] sm:$0xff] %vm60_vm14, %v3268_v24  ;;  %v4008_v16 = vld [vmem:[#allocation2 + $0x278] sm:$0xff]  ;;  %v4038_v6 = vld [vmem:[#allocation2 + $0x368] sm:$0xff]  ;;  %vm9193_vm4 = vmmov %vm9181_vm1 }
 0x532   :  { %4347 = vmatprep.subr.mxu1 %v3296_v37  ;;  %v4028_v24 = vld [vmem:[#allocation2 + $0x318] sm:$0xff]  ;;  %v4023_v37 = vld [vmem:[#allocation2 + $0x2f0] sm:$0xff] }
 0x533   :  { %4348 = vmatpush2.msra.mxu1 %v3295_v28 }
 0x534   :  { %v3256_v26 = vpop.permute.xlu1 %3255  ;;  %v8413_v20 = vpop.permute.xlu0 %3829 }
 0x535   :  { %v3872_v30 = vsel %vm883_vm0, %v3828_v21, %v8413_v20  ;;  %v3291_v46 = vsel %vm9181_vm1, %v8313_v40, %v3256_v26  ;;  %v3953_v21 = vld [vmem:[#allocation2 + $0xc0] sm:$0xff] }
 0x536   :  { %4394 = vmatprep.subr.mxu0 %v3872_v30  ;;  %v3933_v30 = vld [vmem:[#allocation2 + $0x20] sm:$0xff] }
 0x537   :  { %4395 = vmatpush1.msra.mxu0 %v3871_v32  ;;  %v3948_v32 = vld [vmem:[#allocation2 + $0x98] sm:$0xff] }
 0x538   :  { %v3712_v1 = vpop.permute.xlu1 %3711  ;;  %v3258_v61 = vpop.permute.xlu0 %3257  ;;  %5688 = vmatmul.mubr.msk.f32.vlgmr.msra.gmra.mxu0 %vm1120_vm12, %v8367_v38  ;;  %v4018_v28 = vld [vmem:[#allocation2 + $0x2c8] sm:$0xff] }
 0x539   :  { %v3732_v42 = vsel %vm804_vm2, %v8204_v36, %v3712_v1  ;;  %v3292_v51 = vsel %vm9184_vm7, %v3256_v26, %v3258_v61  ;;  %3329 = vst.msk [vmem:[#allocation2 + $0x2a0] sm:$0xff] %vm60_vm14, %v3258_v61  ;;  %4434 = vmatprep.mubr.f32.mxu0 %v8259_v54  ;;  %v3938_v26 = vld [vmem:[#allocation2 + $0x48] sm:$0xff]  ;;  %vm9195_vm7 = vcmask 1039360  }
 0x53a   :  { %3772 = vst.msk [vmem:[#allocation2 + $0x4f8] sm:$0xff] %vm60_vm14, %v3732_v42  ;;  %4349 = vmatprep.subr.mxu1 %v3292_v51 }
 0x53b   :  { %4350 = vmatpush2.msra.mxu1 %v3291_v46 }
 0x53c   :  { %v3688_v18 = vpop.permute.xlu1 %3687  ;;  %v3700_v60 = vpop.permute.xlu0 %3699  ;;  %4352 = vmatmul.mubr.f32.vlgmr.msra.gmra.mxu1 %v8324_v43  ;;  %5689 = vmatmul.mubr.msk.f32.gmra.mxu0 %vm1120_vm12, %v8378_v19 }
 0x53d   :  { %v3722_v36 = vsel %vm804_vm2, %v8246_v53, %v3688_v18  ;;  %v3727_v54 = vsel %vm804_vm2, %v8229_v52, %v3700_v60  ;;  %4357 = vmatprep.mubr.f32.mxu1 %v8332_v14  ;;  %4505 = vmatprep.mubr.f32.mxu0 %v8029_v56 }
 0x53e   :  { %3762 = vst.msk [vmem:[#allocation2 + $0x4a8] sm:$0xff] %vm60_vm14, %v3722_v36  ;;  %3767 = vst.msk [vmem:[#allocation2 + $0x4d0] sm:$0xff] %vm60_vm14, %v3727_v54 }
 0x540   :  { %v3868_v40 = vpop.permute.xlu1 %3867  ;;  %v3676_v27 = vpop.permute.xlu0 %3675  ;;  %4358 = vmatmul.mubr.f32.gmra.mxu1 %v8339_v5 }
 0x541   :  { %v3888_v52 = vsel %vm883_vm0, %v8385_v10, %v3868_v40  ;;  %v3717_v56 = vsel %vm804_vm2, %v8274_v59, %v3676_v27  ;;  %v4088_v53 = vld [vmem:[#allocation2 + $0x4f8] sm:$0xff]  ;;  %5791 = vmatprep.mubr.msk.f32.mxu1 %vm1120_vm12, %v8367_v38  ;;  %v4003_v38 = vld [vmem:[#allocation2 + $0x250] sm:$0xff] }
 0x542   :  { %3928 = vst.msk [vmem:[#allocation2 + $0x598] sm:$0xff] %vm60_vm14, %v3888_v52  ;;  %3757 = vst.msk [vmem:[#allocation2 + $0x480] sm:$0xff] %vm60_vm14, %v3717_v56  ;;  %5739 = vmatprep.subr.mxu0 %v4088_v53  ;;  %v4068_v10 = vld [vmem:[#allocation2 + $0x458] sm:$0xff] }
 0x543   :  { %5740 = vmatpush3.msra.mxu0 %v4008_v16 }
 0x544   :  { %v3844_v34 = vpop.permute.xlu1 %3843  ;;  %v3856_v0 = vpop.permute.xlu0 %3855 }
 0x545   :  { %v3878_v25 = vsel %vm883_vm0, %v8404_v50, %v3844_v34  ;;  %v3883_v59 = vsel %vm883_vm0, %v8395_v39, %v3856_v0  ;;  %v4083_v23 = vld [vmem:[#allocation2 + $0x4d0] sm:$0xff]  ;;  %v4078_v47 = vld [vmem:[#allocation2 + $0x4a8] sm:$0xff]  ;;  %v4053_v39 = vld [vmem:[#allocation2 + $0x3e0] sm:$0xff] }
 0x546   :  { %3918 = vst.msk [vmem:[#allocation2 + $0x548] sm:$0xff] %vm60_vm14, %v3878_v25  ;;  %3923 = vst.msk [vmem:[#allocation2 + $0x570] sm:$0xff] %vm60_vm14, %v3883_v59  ;;  %5741 = vmatprep.subr.mxu0 %v4083_v23  ;;  %v3958_v50 = vld [vmem:[#allocation2 + $0xe8] sm:$0xff] }
 0x547   :  { %5742 = vmatpush3.msra.mxu0 %v4003_v38 }
 0x548   :  { %5743 = vmatprep.subr.mxu0 %v4078_v47  ;;  %v3832_v44 = vpop.permute.xlu0 %3831 }
 0x549   :  { %v3873_v9 = vsel %vm883_vm0, %v8413_v20, %v3832_v44  ;;  %5744 = vmatpush3.msra.mxu0 %v3998_v11  ;;  %v4073_v4 = vld [vmem:[#allocation2 + $0x480] sm:$0xff]  ;;  %v4108_v57 = vld [vmem:[#allocation2 + $0x598] sm:$0xff] }
 0x54a   :  { %3913 = vst.msk [vmem:[#allocation2 + $0x520] sm:$0xff] %vm60_vm14, %v3873_v9  ;;  %5745 = vmatprep.subr.mxu0 %v4073_v4  ;;  %5783 = vmatprep.subr.mxu1 %v4108_v57  ;;  %v4013_v20 = vld [vmem:[#allocation2 + $0x2a0] sm:$0xff] }
 0x54b   :  { %5746 = vmatpush3.msra.mxu0 %v3993_v45  ;;  %5784 = vmatpush3.msra.mxu1 %v4108_v57 }
 0x54c   :  { %5747 = vmatprep.subr.mxu0 %v4068_v10 }
 0x54d   :  { %5748 = vmatpush3.msra.mxu0 %v3988_v63  ;;  %v4103_v17 = vld [vmem:[#allocation2 + $0x570] sm:$0xff]  ;;  %v4098_v8 = vld [vmem:[#allocation2 + $0x548] sm:$0xff] }
 0x54e   :  { %5749 = vmatprep.subr.mxu0 %v4063_v12  ;;  %5785 = vmatprep.subr.mxu1 %v4103_v17 }
 0x54f   :  { %5750 = vmatpush3.msra.mxu0 %v3983_v49  ;;  %5786 = vmatpush3.msra.mxu1 %v4103_v17 }
 0x550   :  { %5751 = vmatprep.subr.mxu0 %v4058_v22  ;;  %5787 = vmatprep.subr.mxu1 %v4098_v8 }
 0x551   :  { %5752 = vmatpush3.msra.mxu0 %v3978_v62  ;;  %5788 = vmatpush3.msra.mxu1 %v4098_v8  ;;  %v4093_v33 = vld [vmem:[#allocation2 + $0x520] sm:$0xff]  ;;  %v4125_v40 = vpop.permute.xlu1 %4124 }
 0x552   :  { %5753 = vmatprep.subr.mxu0 %v4053_v39  ;;  %5789 = vmatprep.subr.mxu1 %v4093_v33 }
 0x553   :  { %5754 = vmatpush3.msra.mxu0 %v3973_v15  ;;  %5790 = vmatpush3.msra.mxu1 %v4093_v33 }
 0x554   :  { %5755 = vmatprep.subr.mxu0 %v4048_v48  ;;  %5792 = vmatmul.mubr.msk.f32.vlgmr.msra.gmra.mxu1 %vm1120_vm12, %v8378_v19  ;;  %v3943_v19 = vld [vmem:[#allocation2 + $0x70] sm:$0xff]  ;;  %vm9185_vm12 = vcmask 793600  }
 0x555   :  { %5756 = vmatpush3.msra.mxu0 %v3968_v3  ;;  %v4120_v51 = vpop.permute.xlu0 %4119 }
 0x556   :  { %5757 = vmatprep.subr.mxu0 %v4043_v35 }
 0x557   :  { %5758 = vmatpush3.msra.mxu0 %v3963_v13 }
 0x558   :  { %5759 = vmatprep.subr.mxu0 %v4038_v6 }
 0x559   :  { %5760 = vmatpush3.msra.mxu0 %v3958_v50 }
 0x55a   :  { %5761 = vmatprep.subr.mxu0 %v4033_v7 }
 0x55b   :  { %5762 = vmatpush3.msra.mxu0 %v3953_v21 }
 0x55c   :  { %5763 = vmatprep.subr.mxu0 %v4028_v24 }
 0x55d   :  { %5764 = vmatpush3.msra.mxu0 %v3948_v32 }
 0x55e   :  { %5765 = vmatprep.subr.mxu0 %v4023_v37 }
 0x55f   :  { %5766 = vmatpush3.msra.mxu0 %v3943_v19 }
 0x560   :  { %5767 = vmatprep.subr.mxu0 %v4018_v28 }
 0x561   :  { %5768 = vmatpush3.msra.mxu0 %v3938_v26 }
 0x562   :  { %5769 = vmatprep.subr.mxu0 %v4013_v20 }
 0x563   :  { %5770 = vmatpush3.msra.mxu0 %v3933_v30 }
 0x564   :  { %4506 = vmatmul.mubr.f32.vlgmr.msra.gmra.mxu0 %v8324_v43 }
 0x565   :  { %4510 = vmatprep.mubr.f32.mxu0 %v8332_v14 }
 0x568   :  { %4511 = vmatmul.mubr.f32.gmra.mxu0 %v8339_v5 }
 0x57d   :  { %v8529_v37 = vpop.permute.xlu1 %5819 }
 0x57e   :  { %v8531_v19 = vpop.permute.xlu0 %5824 }
 0x581   :  { %v8533_v28 = vpop.permute.xlu1 %5829 }
 0x582   :  { %v8535_v26 = vpop.permute.xlu0 %5834 }
 0x585   :  { %v8537_v20 = vpop.permute.xlu1 %5839 }
 0x5af   :  { %v4199_v1 = vpop.f32.mrf.mxu0 }
 0x5b0   :  { %v4200_v18 = vadd.f32 %v4199_v1, %v4120_v51 }
 0x5b1   :  { %v4201_v61 = vpop.f32.mrf.mxu0 }
 0x5b2   :  { %v4202_v36 = vadd.f32 %v4201_v61, %v4120_v51 }
 0x5b3   :  { %v4205_v42 = vpop.f32.mrf.mxu0 }
 0x5b4   :  { %v4206_v52 = vadd.f32 %v4205_v42, %v4125_v40 }
 0x5b5   :  { %v4207_v46 = vpop.f32.mrf.mxu0 }
 0x5b6   :  { %v4208_v14 = vadd.f32 %v4207_v46, %v4125_v40 }
 0x5d7   :  { %v4276_v60 = vpop.f32.mrf.mxu0 }
 0x5d8   :  { %v4277_v54 = vadd.f32 %v4276_v60, %v4200_v18 }
 0x5d9   :  { %v4278_v27 = vpop.f32.mrf.mxu0 }
 0x5da   :  { %v4591_v56 = vsel %vm7324_vm6, %v4277_v54, 0.0  ;;  %v4279_v43 = vadd.f32 %v4278_v27, %v4202_v36 }
 0x5db   :  { %v4282_v53 = vpop.f32.mrf.mxu0  ;;  %4623 = vrot.lane.b32.xlu0 %v4591_v56, %s5887_s1 }
 0x5dc   :  { %v4592_v5 = vsel %vm7330_vm8, %v4279_v43, 0.0  ;;  %v4283_v16 = vadd.f32 %v4282_v53, %v4206_v52 }
 0x5dd   :  { %v4284_v34 = vpop.f32.mrf.mxu0  ;;  %4625 = vrot.lane.b32.xlu1 %v4592_v5, %s5887_s1 }
 0x5de   :  { %v4285_v0 = vadd.f32 %v4284_v34, %v4208_v14  ;;  %v4596_v25 = vsel %vm7324_vm6, %v4283_v16, 0.0  ;;  %vm9186_vm6 = vmmov %vm9185_vm12 }
 0x5e0   :  { %v4597_v59 = vsel %vm7330_vm8, %v4285_v0, 0.0  ;;  %vm9187_vm8 = vcmask 130048  }
 0x5e1   :  { %4633 = vrot.lane.b32.xlu1 %v4596_v25, %s5887_s1  ;;  %4635 = vrot.lane.b32.xlu0 %v4597_v59, %s5887_s1 }
 0x5f8   :  { %v4430_v23 = vpop.f32.mrf.mxu0 }
 0x5fa   :  { %v4432_v47 = vpop.f32.mrf.mxu0 }
 0x5fc   :  { %v4353_v38 = vpop.f32.mrf.mxu1  ;;  %v4436_v45 = vpop.f32.mrf.mxu0 }
 0x5fd   :  { %v4354_v44 = vadd.f32 %v4353_v38, %v4120_v51 }
 0x5fe   :  { %v4355_v11 = vpop.f32.mrf.mxu1  ;;  %v4438_v22 = vpop.f32.mrf.mxu0 }
 0x5ff   :  { %v4356_v9 = vadd.f32 %v4355_v11, %v4120_v51  ;;  %v4431_v4 = vadd.f32 %v4430_v23, %v4354_v44  ;;  %v8715_v23 = vld [vmem:[%s9097_s5 + $0x8] sm:$0xff] }
 0x600   :  { %v4359_v57 = vpop.f32.mrf.mxu1  ;;  %5692 = vmatprep.mubr.msk.f32.mxu1 %vm9187_vm8, %v8715_v23 }
 0x601   :  { %v4593_v41 = vsel %vm7414_vm11, %v4431_v4, 0.0  ;;  %v4360_v10 = vadd.f32 %v4359_v57, %v4125_v40  ;;  %v4433_v63 = vadd.f32 %v4432_v47, %v4356_v9 }
 0x602   :  { %v4361_v31 = vpop.f32.mrf.mxu1  ;;  %4627 = vrot.lane.b32.xlu0 %v4593_v41, %s5887_s1 }
 0x603   :  { %v4594_v12 = vsel %vm7458_vm13, %v4433_v63, 0.0  ;;  %v4362_v17 = vadd.f32 %v4361_v31, %v4125_v40  ;;  %v4437_v49 = vadd.f32 %v4436_v45, %v4360_v10 }
 0x604   :  { %4629 = vrot.lane.b32.xlu1 %v4594_v12, %s5887_s1 }
 0x605   :  { %v4598_v8 = vsel %vm7414_vm11, %v4437_v49, 0.0  ;;  %v4439_v62 = vadd.f32 %v4438_v22, %v4362_v17  ;;  %vm9190_vm11 = vmmov %vm9181_vm1 }
 0x606   :  { %vm9196_vm1 = vmmov %vm9195_vm7 }
 0x607   :  { %v4599_v39 = vsel %vm7458_vm13, %v4439_v62, 0.0 }
 0x608   :  { %4637 = vrot.lane.b32.xlu1 %v4598_v8, %s5887_s1 }
 0x60c   :  { %4639 = vrot.lane.b32.xlu1 %v4599_v39, %s5887_s1 }
 0x614   :  { %v5793_v15 = vpop.f32.mrf.mxu1 }
 0x616   :  { %v4582_v13 = vpop.f32.mrf.mxu1 }
 0x624   :  { %v5771_v33 = vpop.f32.mrf.mxu0 }
 0x626   :  { %v5772_v48 = vpop.f32.mrf.mxu0 }
 0x627   :  { %v5773_v3 = vadd.f32 %v5772_v48, %v5771_v33 }
 0x628   :  { %v5774_v35 = vpop.f32.mrf.mxu0 }
 0x629   :  { %v4508_v6 = vadd.f32 %v5773_v3, %v4120_v51 }
 0x62a   :  { %v5775_v50 = vpop.f32.mrf.mxu0 }
 0x62b   :  { %v5776_v7 = vadd.f32 %v5775_v50, %v5774_v35  ;;  %v4583_v21 = vadd.f32 %v4582_v13, %v4508_v6 }
 0x62d   :  { %v4513_v2 = vadd.f32 %v5776_v7, %v4125_v40  ;;  %v4595_v24 = vsel %vm7489_vm15, %v4583_v21, 0.0 }
 0x62e   :  { %4631 = vrot.lane.b32.xlu0 %v4595_v24, %s5887_s1 }
 0x62f   :  { %v4588_v29 = vadd.f32 %v5793_v15, %v4513_v2 }
 0x631   :  { %v4600_v32 = vsel %vm7489_vm15, %v4588_v29, 0.0  ;;  %vm9192_vm15 = vcmask 785408  }
 0x632   :  { %4641 = vrot.lane.b32.xlu0 %v4600_v32, %s5887_s1  ;;  %vm9194_vm5 = vmmov %vm9192_vm15 }
 0x64d   :  { %v4624_v30 = vpop.permute.xlu0 %4623 }
 0x64e   :  { %4661 = vst.msk [vmem:[%s9096_s8] sm:$0xff] %vm2739_vm9, %v4624_v30 }
 0x64f   :  { %v4626_v55 = vpop.permute.xlu1 %4625 }
 0x650   :  { %v8544_v1 = vsel %vm2702_vm10, %v4624_v30, %v4626_v55 }
 0x651   :  { %4662 = vst [vmem:[%s9096_s8 + $0x8] sm:$0xff] %v8544_v1 }
 0x653   :  { %v4634_v61 = vpop.permute.xlu1 %4633  ;;  %v4636_v42 = vpop.permute.xlu0 %4635 }
 0x654   :  { %4666 = vst.msk [vmem:[%s9096_s8 + $0x30] sm:$0xff] %vm2739_vm9, %v4634_v61  ;;  %v8555_v51 = vsel %vm2702_vm10, %v4634_v61, %v4636_v42  ;;  %vm9188_vm9 = vmmov %vm9187_vm8 }
 0x655   :  { %v8560_v46 = vld [vmem:[%s9096_s8] sm:$0xff]  ;;  %4667 = vst [vmem:[%s9096_s8 + $0x38] sm:$0xff] %v8555_v51  ;;  %5693 = vmatprep.mubr.msk.f32.mxu0 %vm9188_vm9, %v8715_v23  ;;  %vm9199_vm8 = vmmov %vm9193_vm4 }
 0x656   :  { %5183 = vrot.lane.b32.xlu0 %v8560_v46, %s5881_s28 }
 0x65a   :  { %5105 = vrot.lane.b32.xlu0 %v8560_v46, %s5882_s30 }
 0x65b   :  { %v8573_v18 = vld [vmem:[%s9096_s8 + $0x30] sm:$0xff] }
 0x65c   :  { %5195 = vrot.lane.b32.xlu1 %v8573_v18, %s5881_s28 }
 0x65e   :  { %5027 = vrot.lane.b32.xlu0 %v8560_v46, %s9138_s25 }
 0x660   :  { %5117 = vrot.lane.b32.xlu1 %v8573_v18, %s5882_s30 }
 0x662   :  { %4949 = vrot.lane.b32.xlu0 %v8560_v46, %s9149_s26 }
 0x664   :  { %5039 = vrot.lane.b32.xlu1 %v8573_v18, %s9138_s25 }
 0x666   :  { %4871 = vrot.lane.b32.xlu0 %v8560_v46, %s9126_s18 }
 0x668   :  { %4961 = vrot.lane.b32.xlu1 %v8573_v18, %s9149_s26 }
 0x66a   :  { %4793 = vrot.lane.b32.xlu0 %v8560_v46, %s5869_s12 }
 0x66c   :  { %4883 = vrot.lane.b32.xlu1 %v8573_v18, %s9126_s18 }
 0x66e   :  { %4715 = vrot.lane.b32.xlu0 %v8560_v46, %s5871_s14 }
 0x670   :  { %4805 = vrot.lane.b32.xlu1 %v8573_v18, %s5869_s12 }
 0x672   :  { %5261 = vrot.lane.b32.xlu0 %v8560_v46, %s5880_s23 }
 0x674   :  { %4727 = vrot.lane.b32.xlu1 %v8573_v18, %s5871_s14  ;;  %v4628_v60 = vpop.permute.xlu0 %4627 }
 0x675   :  { %v4644_v36 = vsel %vm2702_vm10, %v4626_v55, %v4628_v60  ;;  %v5407_v55 = vld [vmem:[%s9098_s6] sm:$0xff] }
 0x676   :  { %4663 = vst [vmem:[%s9096_s8 + $0x10] sm:$0xff] %v4644_v36  ;;  %4683 = vst [vmem:[#allocation2 + $0x10] sm:$0xff] %v4644_v36  ;;  %v4630_v54 = vpop.permute.xlu1 %4629  ;;  %5185 = vrot.lane.b32.xlu0 %v8544_v1, %s5881_s28 }
 0x677   :  { %v8608_v40 = vsel %vm2702_vm10, %v4628_v60, %v4630_v54 }
 0x678   :  { %4664 = vst [vmem:[%s9096_s8 + $0x18] sm:$0xff] %v8608_v40  ;;  %5273 = vrot.lane.b32.xlu1 %v8573_v18, %s5880_s23 }
 0x67a   :  { %v4638_v27 = vpop.permute.xlu1 %4637  ;;  %5107 = vrot.lane.b32.xlu0 %v8544_v1, %s5882_s30 }
 0x67b   :  { %v4648_v52 = vsel %vm2702_vm10, %v4636_v42, %v4638_v27 }
 0x67c   :  { %4668 = vst [vmem:[%s9096_s8 + $0x40] sm:$0xff] %v4648_v52  ;;  %4688 = vst [vmem:[#allocation2 + $0x38] sm:$0xff] %v4648_v52  ;;  %5197 = vrot.lane.b32.xlu1 %v8555_v51, %s5881_s28 }
 0x67e   :  { %v4640_v56 = vpop.permute.xlu1 %4639  ;;  %5029 = vrot.lane.b32.xlu0 %v8544_v1, %s9138_s25 }
 0x67f   :  { %v8627_v43 = vsel %vm2702_vm10, %v4638_v27, %v4640_v56  ;;  %v8632_v53 = vld [vmem:[%s9096_s8 + $0x18] sm:$0xff] }
 0x680   :  { %4669 = vst [vmem:[%s9096_s8 + $0x48] sm:$0xff] %v8627_v43  ;;  %5119 = vrot.lane.b32.xlu1 %v8555_v51, %s5882_s30 }
 0x682   :  { %4951 = vrot.lane.b32.xlu0 %v8544_v1, %s9149_s26 }
 0x684   :  { %5041 = vrot.lane.b32.xlu1 %v8555_v51, %s9138_s25 }
 0x686   :  { %4873 = vrot.lane.b32.xlu0 %v8544_v1, %s9126_s18 }
 0x687   :  { %v8649_v14 = vld [vmem:[%s9096_s8 + $0x48] sm:$0xff] }
 0x688   :  { %4963 = vrot.lane.b32.xlu1 %v8555_v51, %s9149_s26 }
 0x68a   :  { %4795 = vrot.lane.b32.xlu0 %v8544_v1, %s5869_s12 }
 0x68c   :  { %4885 = vrot.lane.b32.xlu1 %v8555_v51, %s9126_s18 }
 0x68e   :  { %4717 = vrot.lane.b32.xlu0 %v8544_v1, %s5871_s14 }
 0x690   :  { %4807 = vrot.lane.b32.xlu1 %v8555_v51, %s5869_s12 }
 0x692   :  { %5263 = vrot.lane.b32.xlu0 %v8544_v1, %s5880_s23 }
 0x694   :  { %4729 = vrot.lane.b32.xlu1 %v8555_v51, %s5871_s14 }
 0x696   :  { %5111 = vrot.lane.b32.xlu0 %v8608_v40, %s5882_s30 }
 0x698   :  { %5275 = vrot.lane.b32.xlu1 %v8555_v51, %s5880_s23 }
 0x69a   :  { %4955 = vrot.lane.b32.xlu0 %v8608_v40, %s9149_s26 }
 0x69c   :  { %5187 = vrot.lane.b32.xlu1 %v4644_v36, %s5881_s28 }
 0x69e   :  { %4799 = vrot.lane.b32.xlu0 %v8608_v40, %s5869_s12 }
 0x6a0   :  { %v4632_v5 = vpop.permute.xlu0 %4631  ;;  %5109 = vrot.lane.b32.xlu1 %v4644_v36, %s5882_s30 }
 0x6a1   :  { %v4646_v16 = vsel %vm2702_vm10, %v4630_v54, %v4632_v5 }
 0x6a2   :  { %4665 = vst.msk [vmem:[%s9096_s8 + $0x20] sm:$0xff] %vm9185_vm12, %v4646_v16  ;;  %5199 = vrot.lane.b32.xlu0 %v4648_v52, %s5881_s28 }
 0x6a4   :  { %v4642_v34 = vpop.permute.xlu0 %4641  ;;  %5031 = vrot.lane.b32.xlu1 %v4644_v36, %s9138_s25 }
 0x6a5   :  { %v4650_v0 = vsel %vm2702_vm10, %v4640_v56, %v4642_v34  ;;  %vm9189_vm10 = vcmask 769024  }
 0x6a6   :  { %4670 = vst.msk [vmem:[%s9096_s8 + $0x50] sm:$0xff] %vm9186_vm6, %v4650_v0  ;;  %5121 = vrot.lane.b32.xlu0 %v4648_v52, %s5882_s30  ;;  %vm9191_vm13 = vmmov %vm9189_vm10 }
 0x6a7   :  { %vm9197_vm12 = vmmov %vm9189_vm10 }
 0x6a8   :  { %4953 = vrot.lane.b32.xlu1 %v4644_v36, %s9149_s26  ;;  %vm9198_vm6 = vmmov %vm9193_vm4 }
 0x6a9   :  { %v8692_v25 = vld [vmem:[%s9096_s8 + $0x20] sm:$0xff]  ;;  %vm9200_vm9 = vmmov %vm9189_vm10 }
 0x6aa   :  { %5043 = vrot.lane.b32.xlu0 %v4648_v52, %s9138_s25  ;;  %4685 = vst [vmem:[#allocation2 + $0x20] sm:$0xff] %v8692_v25 }
 0x6ac   :  { %4875 = vrot.lane.b32.xlu1 %v4644_v36, %s9126_s18 }
 0x6ad   :  { %v8700_v59 = vld [vmem:[%s9096_s8 + $0x50] sm:$0xff] }
 0x6ae   :  { %4965 = vrot.lane.b32.xlu0 %v4648_v52, %s9149_s26  ;;  %4690 = vst [vmem:[#allocation2 + $0x48] sm:$0xff] %v8700_v59 }
 0x6b0   :  { %4797 = vrot.lane.b32.xlu1 %v4644_v36, %s5869_s12 }
 0x6b2   :  { %4887 = vrot.lane.b32.xlu0 %v4648_v52, %s9126_s18 }
 0x6b4   :  { %4719 = vrot.lane.b32.xlu1 %v4644_v36, %s5871_s14 }
 0x6b6   :  { %4809 = vrot.lane.b32.xlu0 %v4648_v52, %s5869_s12 }
 0x6b8   :  { %5265 = vrot.lane.b32.xlu1 %v4644_v36, %s5880_s23 }
 0x6ba   :  { %4731 = vrot.lane.b32.xlu0 %v4648_v52, %s5871_s14 }
 0x6bc   :  { %5189 = vrot.lane.b32.xlu1 %v8608_v40, %s5881_s28 }
 0x6be   :  { %5277 = vrot.lane.b32.xlu0 %v4648_v52, %s5880_s23 }
 0x6c0   :  { %5033 = vrot.lane.b32.xlu1 %v8608_v40, %s9138_s25 }
 0x6c2   :  { %5201 = vrot.lane.b32.xlu0 %v8627_v43, %s5881_s28 }
 0x6c4   :  { %4877 = vrot.lane.b32.xlu1 %v8608_v40, %s9126_s18 }
 0x6c6   :  { %5123 = vrot.lane.b32.xlu0 %v8627_v43, %s5882_s30 }
 0x6c8   :  { %5045 = vrot.lane.b32.xlu1 %v8627_v43, %s9138_s25  ;;  %v5184_v38 = vpop.permute.xlu0 %5183 }
 0x6ca   :  { %4967 = vrot.lane.b32.xlu0 %v8627_v43, %s9149_s26 }
 0x6cc   :  { %4889 = vrot.lane.b32.xlu1 %v8627_v43, %s9126_s18  ;;  %v5106_v47 = vpop.permute.xlu0 %5105 }
 0x6ce   :  { %v5196_v44 = vpop.permute.xlu1 %5195  ;;  %4811 = vrot.lane.b32.xlu0 %v8627_v43, %s5869_s12 }
 0x6d0   :  { %5113 = vrot.lane.b32.xlu1 %v8692_v25, %s5882_s30  ;;  %v5028_v11 = vpop.permute.xlu0 %5027 }
 0x6d2   :  { %v5118_v9 = vpop.permute.xlu1 %5117  ;;  %5191 = vrot.lane.b32.xlu0 %v8692_v25, %s5881_s28 }
 0x6d4   :  { %4957 = vrot.lane.b32.xlu1 %v8692_v25, %s9149_s26  ;;  %v4950_v4 = vpop.permute.xlu0 %4949 }
 0x6d6   :  { %v5040_v57 = vpop.permute.xlu1 %5039  ;;  %5035 = vrot.lane.b32.xlu0 %v8692_v25, %s9138_s25 }
 0x6d8   :  { %5203 = vrot.lane.b32.xlu1 %v8700_v59, %s5881_s28  ;;  %v4872_v45 = vpop.permute.xlu0 %4871 }
 0x6da   :  { %v4962_v41 = vpop.permute.xlu1 %4961  ;;  %4879 = vrot.lane.b32.xlu0 %v8692_v25, %s9126_s18 }
 0x6dc   :  { %5125 = vrot.lane.b32.xlu1 %v8700_v59, %s5882_s30  ;;  %v4794_v10 = vpop.permute.xlu0 %4793 }
 0x6de   :  { %v4884_v63 = vpop.permute.xlu1 %4883  ;;  %5047 = vrot.lane.b32.xlu0 %v8700_v59, %s9138_s25 }
 0x6e0   :  { %4801 = vrot.lane.b32.xlu1 %v8692_v25, %s5869_s12  ;;  %v4716_v31 = vpop.permute.xlu0 %4715 }
 0x6e2   :  { %v4806_v12 = vpop.permute.xlu1 %4805  ;;  %5844 = vrot.lane.b32.xlu0 %v8419_v58, %s5869_s12 }
 0x6e4   :  { %4969 = vrot.lane.b32.xlu1 %v8700_v59, %s9149_s26  ;;  %v5262_v17 = vpop.permute.xlu0 %5261 }
 0x6e6   :  { %v4728_v49 = vpop.permute.xlu1 %4727  ;;  %4891 = vrot.lane.b32.xlu0 %v8700_v59, %s9126_s18 }
 0x6e8   :  { %4733 = vrot.lane.b32.xlu1 %v8627_v43, %s5871_s14  ;;  %v5186_v22 = vpop.permute.xlu0 %5185 }
 0x6e9   :  { %v8765_v8 = vsel %vm804_vm2, %v5184_v38, %v5186_v22 }
 0x6ea   :  { %v5274_v62 = vpop.permute.xlu1 %5273  ;;  %4723 = vrot.lane.b32.xlu0 %v8692_v25, %s5871_s14 }
 0x6ec   :  { %4813 = vrot.lane.b32.xlu1 %v8700_v59, %s5869_s12  ;;  %v5108_v39 = vpop.permute.xlu0 %5107 }
 0x6ed   :  { %v8772_v33 = vsel %vm60_vm14, %v5106_v47, %v5108_v39 }
 0x6ee   :  { %v5198_v15 = vpop.permute.xlu1 %5197  ;;  %4735 = vrot.lane.b32.xlu0 %v8700_v59, %s5871_s14 }
 0x6ef   :  { %v5212_v48 = vsel %vm804_vm2, %v5196_v44, %v5198_v15 }
 0x6f0   :  { %4721 = vrot.lane.b32.xlu1 %v8608_v40, %s5871_s14  ;;  %v5030_v3 = vpop.permute.xlu0 %5029 }
 0x6f1   :  { %v8780_v35 = vsel %vm9189_vm10, %v5028_v11, %v5030_v3  ;;  %vm9201_vm10 = vmmov %vm9194_vm5 }
 0x6f2   :  { %v5120_v13 = vpop.permute.xlu1 %5119  ;;  %5279 = vrot.lane.b32.xlu0 %v8627_v43, %s5880_s23 }
 0x6f3   :  { %v5134_v6 = vsel %vm60_vm14, %v5118_v9, %v5120_v13 }
 0x6f4   :  { %5849 = vrot.lane.b32.xlu1 %v8419_v58, %s5871_s14  ;;  %v4952_v50 = vpop.permute.xlu0 %4951  ;;  %v8801_v58 = vld [vmem:[%s9093_s7 + $0x28] sm:$0xff] }
 0x6f5   :  { %v8788_v7 = vsel %vm9190_vm11, %v4950_v4, %v4952_v50  ;;  %vm9202_vm11 = vmmov %vm9193_vm4 }
 0x6f6   :  { %v5042_v21 = vpop.permute.xlu1 %5041  ;;  %5267 = vrot.lane.b32.xlu0 %v8608_v40, %s5880_s23 }
 0x6f7   :  { %v5056_v2 = vsel %vm9191_vm13, %v5040_v57, %v5042_v21  ;;  %vm9203_vm13 = vmmov %vm9194_vm5 }
 0x6f8   :  { %5281 = vrot.lane.b32.xlu1 %v8700_v59, %s5880_s23  ;;  %v4874_v24 = vpop.permute.xlu0 %4873 }
 0x6f9   :  { %v8796_v29 = vsel %vm9192_vm15, %v4872_v45, %v4874_v24  ;;  %vm9204_vm15 = vmmov %vm9196_vm1 }
 0x6fa   :  { %v4964_v32 = vpop.permute.xlu1 %4963  ;;  %5283 = vrot.lane.b32.xlu0 %v8801_v58, %s5880_s23 }
 0x6fb   :  { %v4978_v30 = vsel %vm9193_vm4, %v4962_v41, %v4964_v32  ;;  %vm9205_vm4 = vmmov %vm9196_vm1 }
 0x6fc   :  { %5269 = vrot.lane.b32.xlu1 %v8692_v25, %s5880_s23  ;;  %v4796_v61 = vpop.permute.xlu0 %4795 }
 0x6fd   :  { %v8812_v42 = vsel %vm176_vm3, %v4794_v10, %v4796_v61 }
 0x6fe   :  { %v4886_v60 = vpop.permute.xlu1 %4885  ;;  %5410 = vperm.xlu0 %5816, %v5407_v55  }
 0x6ff   :  { %v4900_v36 = vsel %vm9194_vm5, %v4884_v63, %v4886_v60  ;;  %vm9206_vm5 = vmmov %vm9200_vm9 }
 0x700   :  { %5271 = vrot.lane.b32.xlu1 %v8801_v58, %s5880_s23  ;;  %v4718_v54 = vpop.permute.xlu0 %4717 }
 0x701   :  { %v8818_v40 = vsel %vm9195_vm7, %v4716_v31, %v4718_v54  ;;  %vm9207_vm7 = vmmov %vm9201_vm10 }
 0x702   :  { %v4808_v27 = vpop.permute.xlu1 %4807 }
 0x703   :  { %v8821_v52 = vsel %vm176_vm3, %v4806_v12, %v4808_v27 }
 0x704   :  { %v5264_v56 = vpop.permute.xlu0 %5263 }
 0x705   :  { %v8824_v43 = vsel %vm883_vm0, %v5262_v17, %v5264_v56 }
 0x706   :  { %v8826_v5 = vpop.permute.xlu1 %4729 }
 0x707   :  { %v8830_v16 = vsel %vm9196_vm1, %v4728_v49, %v8826_v5  ;;  %vm9208_vm1 = vmmov %vm9206_vm5 }
 0x708   :  { %v8832_v34 = vpop.permute.xlu0 %5111 }
 0x70a   :  { %v8834_v0 = vpop.permute.xlu1 %5275 }
 0x70b   :  { %v8838_v38 = vsel %vm883_vm0, %v5274_v62, %v8834_v0 }
 0x70c   :  { %v8840_v47 = vpop.permute.xlu0 %4955 }
 0x70e   :  { %v5188_v44 = vpop.permute.xlu1 %5187 }
 0x70f   :  { %v5208_v11 = vsel %vm804_vm2, %v5186_v22, %v5188_v44 }
 0x710   :  { %v8843_v9 = vpop.permute.xlu0 %4799 }
 0x712   :  { %v5110_v4 = vpop.permute.xlu1 %5109 }
 0x713   :  { %v5130_v57 = vsel %vm60_vm14, %v5108_v39, %v5110_v4  ;;  %v8848_v45 = vsel %vm60_vm14, %v5110_v4, %v8832_v34 }
 0x714   :  { %v8850_v41 = vpop.permute.xlu0 %5199 }
 0x715   :  { %v5213_v10 = vsel %vm804_vm2, %v5198_v15, %v8850_v41 }
 0x716   :  { %v5032_v63 = vpop.permute.xlu1 %5031  ;;  %5416 = vmatprep.subr.mxu1 %v5213_v10  ;;  %v5822_v10 = vunpack.i.h.bf16 %v8529_v37 }
 0x717   :  { %v5052_v31 = vsel %vm9197_vm12, %v5030_v3, %v5032_v63  ;;  %5417 = vmatpush1.msra.mxu1 %v5212_v48  ;;  %vm9209_vm12 = vcmask 130048  }
 0x718   :  { %v8855_v12 = vpop.permute.xlu0 %5121  ;;  %5418 = vmatprep.subr.mxu1 %v5208_v11 }
 0x719   :  { %v5135_v17 = vsel %vm60_vm14, %v5120_v13, %v8855_v12  ;;  %5419 = vmatpush1.msra.mxu1 %v8765_v8 }
 0x71a   :  { %v4954_v49 = vpop.permute.xlu1 %4953  ;;  %5420 = vmatprep.subr.mxu1 %v5135_v17  ;;  %v5837_v17 = vunpack.i.h.bf16 %v8535_v26 }
 0x71b   :  { %v4974_v22 = vsel %vm9198_vm6, %v4952_v50, %v4954_v49  ;;  %v8863_v62 = vsel %vm9199_vm8, %v4954_v49, %v8840_v47  ;;  %5421 = vmatpush1.msra.mxu1 %v5134_v6  ;;  %vm9210_vm8 = vmmov %vm9207_vm7 }
 0x71c   :  { %v8865_v39 = vpop.permute.xlu0 %5043  ;;  %5422 = vmatprep.subr.mxu1 %v5130_v57  ;;  %v5827_v57 = vunpack.i.h.bf16 %v8531_v19 }
 0x71d   :  { %v5057_v15 = vsel %vm9200_vm9, %v5042_v21, %v8865_v39  ;;  %5423 = vmatpush1.msra.mxu1 %v8772_v33  ;;  %vm9211_vm9 = vmmov %vm9198_vm6 }
 0x71e   :  { %v4876_v48 = vpop.permute.xlu1 %4875  ;;  %5424 = vmatprep.subr.mxu1 %v5057_v15  ;;  %v5832_v15 = vunpack.i.h.bf16 %v8533_v28 }
 0x71f   :  { %v4896_v8 = vsel %vm9201_vm10, %v4874_v24, %v4876_v48  ;;  %5425 = vmatpush1.msra.mxu1 %v5056_v2  ;;  %vm9212_vm10 = vmmov %vm9198_vm6 }
 0x720   :  { %v4966_v3 = vpop.permute.xlu0 %4965  ;;  %5426 = vmatprep.subr.mxu1 %v5052_v31 }
 0x721   :  { %v4979_v13 = vsel %vm9202_vm11, %v4964_v32, %v4966_v3  ;;  %5427 = vmatpush1.msra.mxu1 %v8780_v35  ;;  %vm9213_vm11 = vmmov %vm9208_vm1 }
 0x722   :  { %v4798_v6 = vpop.permute.xlu1 %4797  ;;  %5428 = vmatprep.subr.mxu1 %v4979_v13 }
 0x723   :  { %v4818_v50 = vsel %vm176_vm3, %v4796_v61, %v4798_v6  ;;  %v8876_v21 = vsel %vm176_vm3, %v4798_v6, %v8843_v9  ;;  %5429 = vmatpush1.msra.mxu1 %v4978_v30 }
 0x724   :  { %v4888_v33 = vpop.permute.xlu0 %4887  ;;  %5430 = vmatprep.subr.mxu1 %v4974_v22 }
 0x725   :  { %v4901_v24 = vsel %vm9203_vm13, %v4886_v60, %v4888_v33  ;;  %5431 = vmatpush1.msra.mxu1 %v8788_v7  ;;  %vm9214_vm13 = vmmov %vm9208_vm1 }
 0x726   :  { %v8880_v2 = vpop.permute.xlu1 %4719  ;;  %5432 = vmatprep.subr.mxu1 %v4901_v24 }
 0x727   :  { %v4740_v35 = vsel %vm9204_vm15, %v4718_v54, %v8880_v2  ;;  %5433 = vmatpush1.msra.mxu1 %v4900_v36  ;;  %vm9215_vm15 = vmmov %vm9207_vm7 }
 0x728   :  { %v4810_v32 = vpop.permute.xlu0 %4809  ;;  %5434 = vmatprep.subr.mxu1 %v4896_v8 }
 0x729   :  { %v4823_v55 = vsel %vm176_vm3, %v4808_v27, %v4810_v32  ;;  %5435 = vmatpush1.msra.mxu1 %v8796_v29 }
 0x72a   :  { %v8886_v30 = vpop.permute.xlu1 %5265  ;;  %5436 = vmatprep.subr.mxu1 %v4823_v55 }
 0x72b   :  { %v5286_v61 = vsel %vm883_vm0, %v5264_v56, %v8886_v30  ;;  %5437 = vmatpush1.msra.mxu1 %v8821_v52 }
 0x72c   :  { %v8891_v7 = vpop.permute.xlu0 %4731  ;;  %5438 = vmatprep.subr.mxu1 %v4818_v50 }
 0x72d   :  { %v4745_v60 = vsel %vm9205_vm4, %v8826_v5, %v8891_v7  ;;  %5439 = vmatpush1.msra.mxu1 %v8812_v42  ;;  %vm9216_vm4 = vmmov %vm9207_vm7 }
 0x72e   :  { %v5190_v36 = vpop.permute.xlu1 %5189  ;;  %5440 = vmatprep.subr.mxu1 %v4745_v60  ;;  %v5831_v60 = vunpack.i.l.bf16 %v8533_v28 }
 0x72f   :  { %v8898_v29 = vsel %vm804_vm2, %v5188_v44, %v5190_v36  ;;  %5441 = vmatpush1.msra.mxu1 %v8830_v16 }
 0x730   :  { %v8901_v54 = vpop.permute.xlu0 %5277  ;;  %5442 = vmatprep.subr.mxu1 %v4740_v35 }
 0x731   :  { %v5291_v27 = vsel %vm883_vm0, %v8834_v0, %v8901_v54  ;;  %5443 = vmatpush1.msra.mxu1 %v8818_v40 }
 0x732   :  { %v5034_v52 = vpop.permute.xlu1 %5033  ;;  %5444 = vmatprep.subr.mxu1 %v8555_v51  ;;  %v8923_v51 = vld [vmem:[%s9097_s5] sm:$0xff] }
 0x733   :  { %v8909_v42 = vsel %vm9206_vm5, %v5032_v63, %v5034_v52  ;;  %5445 = vmatpush1.msra.mxu1 %v8573_v18  ;;  %vm9218_vm5 = vmmov %vm9208_vm1 }
 0x734   :  { %v5202_v56 = vpop.permute.xlu0 %5201  ;;  %5446 = vmatprep.subr.mxu1 %v8544_v1 }
 0x735   :  { %v5214_v5 = vsel %vm804_vm2, %v8850_v41, %v5202_v56  ;;  %5447 = vmatpush1.msra.mxu1 %v8560_v46 }
 0x736   :  { %v4878_v16 = vpop.permute.xlu1 %4877  ;;  %5476 = vmatprep.subr.mxu1 %v5291_v27 }
 0x737   :  { %v8917_v40 = vsel %vm9207_vm7, %v4876_v48, %v4878_v16  ;;  %5477 = vmatpush2.msra.mxu1 %v8838_v38  ;;  %vm9220_vm7 = vmmov %vm9198_vm6 }
 0x738   :  { %v5124_v18 = vpop.permute.xlu0 %5123  ;;  %5478 = vmatprep.subr.mxu1 %v5286_v61 }
 0x739   :  { %v8927_v1 = vsel %vm60_vm14, %v8855_v12, %v5124_v18  ;;  %5479 = vmatpush2.msra.mxu1 %v8824_v43 }
 0x73a   :  { %v5046_v46 = vpop.permute.xlu1 %5045  ;;  %5481 = vmatmul.mubr.f32.vlgmr.msra.gmra.mxu1 %v8923_v51  ;;  %5558 = vmatprep.subr.mxu1 %v8801_v58 }
 0x73b   :  { %v8934_v0 = vsel %vm9208_vm1, %v8865_v39, %v5046_v46  ;;  %5694 = vmatprep.mubr.msk.f32.mxu1 %vm9209_vm12, %v8715_v23 }
 0x73c   :  { %v8938_v38 = vpop.permute.xlu0 %4967 }
 0x73d   :  { %v8942_v44 = vsel %vm9198_vm6, %v4966_v3, %v8938_v38  ;;  %v5821_v3 = vunpack.i.l.bf16 %v8529_v37 }
 0x73e   :  { %v8944_v11 = vpop.permute.xlu1 %4889 }
 0x73f   :  { %v8948_v43 = vsel %vm9210_vm8, %v4888_v33, %v8944_v11  ;;  %v5842_v33 = vunpack.i.h.bf16 %v8537_v20 }
 0x740   :  { %v8950_v4 = vpop.permute.xlu0 %4811 }
 0x741   :  { %v8955_v41 = vsel %vm176_vm3, %v4810_v32, %v8950_v4  ;;  %v5826_v32 = vunpack.i.l.bf16 %v8531_v19 }
 0x742   :  { %v5114_v23 = vpop.permute.xlu1 %5113 }
 0x743   :  { %v5132_v63 = vsel %vm60_vm14, %v8832_v34, %v5114_v23  ;;  %v5133_v31 = vsel %vm60_vm14, %v5114_v23, %v5827_v57 }
 0x744   :  { %5153 = vst [vmem:[#allocation2 + $0x200] sm:$0xff] %v5133_v31  ;;  %v5192_v12 = vpop.permute.xlu0 %5191 }
 0x745   :  { %v5210_v49 = vsel %vm804_vm2, %v5190_v36, %v5192_v12  ;;  %v5211_v22 = vsel %vm804_vm2, %v5192_v12, %v5822_v10 }
 0x746   :  { %5231 = vst [vmem:[#allocation2 + $0x250] sm:$0xff] %v5211_v22  ;;  %v4958_v39 = vpop.permute.xlu1 %4957 }
 0x747   :  { %v8967_v48 = vsel %vm9211_vm9, %v8840_v47, %v4958_v39  ;;  %v8970_v34 = vsel %vm9212_vm10, %v4958_v39, %v5837_v17 }
 0x748   :  { %4997 = vst [vmem:[#allocation2 + $0x160] sm:$0xff] %v8970_v34  ;;  %v5036_v8 = vpop.permute.xlu0 %5035 }
 0x749   :  { %v5054_v13 = vsel %vm9213_vm11, %v5034_v52, %v5036_v8  ;;  %v5055_v6 = vsel %vm9214_vm13, %v5036_v8, %v5832_v15 }
 0x74a   :  { %5075 = vst [vmem:[#allocation2 + $0x1b0] sm:$0xff] %v5055_v6  ;;  %v5204_v50 = vpop.permute.xlu1 %5203 }
 0x74b   :  { %v5215_v24 = vsel %vm804_vm2, %v5202_v56, %v5204_v50  ;;  %v5216_v47 = vsel %vm804_vm2, %v5204_v50, %v5821_v3  ;;  %vm9217_vm2 = vmmov %vm9208_vm1 }
 0x74c   :  { %5236 = vst [vmem:[#allocation2 + $0x278] sm:$0xff] %v5216_v47  ;;  %v4880_v35 = vpop.permute.xlu0 %4879  ;;  %5487 = vmatprep.subr.mxu0 %v5215_v24  ;;  %5559 = vmatpush1.msra.mxu1 %v5216_v47  ;;  %vm9221_vm1 = vmmov %vm9216_vm4 }
 0x74d   :  { %v8981_v37 = vsel %vm9215_vm15, %v4878_v16, %v4880_v35  ;;  %v8984_v55 = vsel %vm9216_vm4, %v4880_v35, %v5842_v33  ;;  %5488 = vmatpush1.msra.mxu0 %v5214_v5  ;;  %5560 = vmatprep.subr.mxu1 %v8801_v58  ;;  %v5836_v16 = vunpack.i.l.bf16 %v8535_v26  ;;  %vm9222_vm12 = vmmov %vm9221_vm1 }
 0x74e   :  { %4919 = vst [vmem:[#allocation2 + $0x110] sm:$0xff] %v8984_v55  ;;  %v5126_v61 = vpop.permute.xlu1 %5125  ;;  %5489 = vmatprep.subr.mxu0 %v5210_v49  ;;  %5561 = vmatpush1.msra.mxu1 %v5211_v22 }
 0x74f   :  { %v5137_v36 = vsel %vm60_vm14, %v5124_v18, %v5126_v61  ;;  %v5138_v19 = vsel %vm60_vm14, %v5126_v61, %v5826_v32  ;;  %5490 = vmatpush1.msra.mxu0 %v8898_v29  ;;  %5562 = vmatprep.subr.mxu1 %v8801_v58  ;;  %vm9219_vm14 = vmmov %vm9198_vm6  ;;  %vm9223_vm6 = vcmask 1039360  }
 0x750   :  { %5158 = vst [vmem:[#allocation2 + $0x228] sm:$0xff] %v5138_v19  ;;  %v5048_v27 = vpop.permute.xlu0 %5047  ;;  %5491 = vmatprep.subr.mxu0 %v5137_v36  ;;  %5563 = vmatpush1.msra.mxu1 %v5138_v19  ;;  %vm9224_vm8 = vmmov %vm9223_vm6 }
 0x751   :  { %v5059_v52 = vsel %vm9217_vm2, %v5046_v46, %v5048_v27  ;;  %v5060_v56 = vsel %vm9218_vm5, %v5048_v27, %v5831_v60  ;;  %5492 = vmatpush1.msra.mxu0 %v8927_v1  ;;  %5564 = vmatprep.subr.mxu1 %v8801_v58  ;;  %v5841_v46 = vunpack.i.l.bf16 %v8537_v20  ;;  %vm9225_vm9 = vmmov %vm9223_vm6 }
 0x752   :  { %5080 = vst [vmem:[#allocation2 + $0x1d8] sm:$0xff] %v5060_v56  ;;  %v4802_v28 = vpop.permute.xlu1 %4801  ;;  %5493 = vmatprep.subr.mxu0 %v5132_v63  ;;  %5565 = vmatpush1.msra.mxu1 %v5133_v31 }
 0x753   :  { %v4820_v29 = vsel %vm176_vm3, %v8843_v9, %v4802_v28  ;;  %5494 = vmatpush1.msra.mxu0 %v8848_v45  ;;  %5566 = vmatprep.subr.mxu1 %v8801_v58 }
 0x754   :  { %v5845_v5 = vpop.permute.xlu0 %5844  ;;  %5495 = vmatprep.subr.mxu0 %v5059_v52  ;;  %5567 = vmatpush1.msra.mxu1 %v5060_v56 }
 0x755   :  { %v5847_v18 = vunpack.i.h.bf16 %v5845_v5  ;;  %5496 = vmatpush1.msra.mxu0 %v8934_v0  ;;  %5568 = vmatprep.subr.mxu1 %v8801_v58  ;;  %v5846_v23 = vunpack.i.l.bf16 %v5845_v5 }
 0x756   :  { %v4970_v1 = vpop.permute.xlu1 %4969  ;;  %5497 = vmatprep.subr.mxu0 %v5054_v13  ;;  %5569 = vmatpush1.msra.mxu1 %v5055_v6 }
 0x757   :  { %v4821_v9 = vsel %vm176_vm3, %v4802_v28, %v5847_v18  ;;  %v4981_v45 = vsel %vm9219_vm14, %v8938_v38, %v4970_v1  ;;  %v4982_v57 = vsel %vm9220_vm7, %v4970_v1, %v5836_v16  ;;  %5498 = vmatpush1.msra.mxu0 %v8909_v42  ;;  %5570 = vmatprep.subr.mxu1 %v8801_v58 }
 0x758   :  { %4841 = vst [vmem:[#allocation2 + $0xc0] sm:$0xff] %v4821_v9  ;;  %5002 = vst [vmem:[#allocation2 + $0x188] sm:$0xff] %v4982_v57  ;;  %v4892_v26 = vpop.permute.xlu0 %4891  ;;  %5499 = vmatprep.subr.mxu0 %v4981_v45  ;;  %5571 = vmatpush1.msra.mxu1 %v4982_v57 }
 0x759   :  { %v4903_v0 = vsel %vm9221_vm1, %v8944_v11, %v4892_v26  ;;  %v4904_v20 = vsel %vm9222_vm12, %v4892_v26, %v5841_v46  ;;  %5500 = vmatpush1.msra.mxu0 %v8942_v44  ;;  %5572 = vmatprep.subr.mxu1 %v8801_v58 }
 0x75a   :  { %4924 = vst [vmem:[#allocation2 + $0x138] sm:$0xff] %v4904_v20  ;;  %v4734_v38 = vpop.permute.xlu1 %4733  ;;  %5501 = vmatprep.subr.mxu0 %v8967_v48  ;;  %5573 = vmatpush1.msra.mxu1 %v8970_v34  ;;  %v5317_v48 = vld [vmem:[#allocation2 + $0x10] sm:$0xff] }
 0x75b   :  { %v4746_v42 = vsel %vm9223_vm6, %v8891_v7, %v4734_v38  ;;  %5502 = vmatpush1.msra.mxu0 %v8863_v62  ;;  %5574 = vmatprep.subr.mxu1 %v8801_v58 }
 0x75c   :  { %v4724_v11 = vpop.permute.xlu0 %4723  ;;  %5503 = vmatprep.subr.mxu0 %v4903_v0  ;;  %5575 = vmatpush1.msra.mxu1 %v4904_v20 }
 0x75d   :  { %5504 = vmatpush1.msra.mxu0 %v8948_v43  ;;  %5576 = vmatprep.subr.mxu1 %v8801_v58 }
 0x75e   :  { %v4814_v44 = vpop.permute.xlu1 %4813  ;;  %5505 = vmatprep.subr.mxu0 %v8981_v37  ;;  %5577 = vmatpush1.msra.mxu1 %v8984_v55 }
 0x75f   :  { %v4825_v7 = vsel %vm176_vm3, %v8950_v4, %v4814_v44  ;;  %v4826_v62 = vsel %vm176_vm3, %v4814_v44, %v5846_v23  ;;  %5506 = vmatpush1.msra.mxu0 %v8917_v40  ;;  %5578 = vmatprep.subr.mxu1 %v8801_v58  ;;  %vm9226_vm3 = vmmov %vm9223_vm6 }
 0x760   :  { %4846 = vst [vmem:[#allocation2 + $0xe8] sm:$0xff] %v4826_v62  ;;  %v4736_v10 = vpop.permute.xlu0 %4735  ;;  %5507 = vmatprep.subr.mxu0 %v4825_v7  ;;  %5579 = vmatpush1.msra.mxu1 %v4826_v62  ;;  %vm9227_vm10 = vmmov %vm9226_vm3 }
 0x761   :  { %v4747_v43 = vsel %vm9224_vm8, %v4734_v38, %v4736_v10  ;;  %5508 = vmatpush1.msra.mxu0 %v8955_v41  ;;  %5580 = vmatprep.subr.mxu1 %v8801_v58  ;;  %vm9228_vm11 = vmmov %vm9226_vm3 }
 0x762   :  { %v4722_v63 = vpop.permute.xlu1 %4721  ;;  %5509 = vmatprep.subr.mxu0 %v4820_v29  ;;  %5581 = vmatpush1.msra.mxu1 %v4821_v9 }
 0x763   :  { %v4741_v4 = vsel %vm9225_vm9, %v8880_v2, %v4722_v63  ;;  %v4742_v40 = vsel %vm9226_vm3, %v4722_v63, %v4724_v11  ;;  %5510 = vmatpush1.msra.mxu0 %v8876_v21  ;;  %5582 = vmatprep.subr.mxu1 %v8801_v58  ;;  %v5322_v2 = vld [vmem:[#allocation2 + $0x38] sm:$0xff] }
 0x764   :  { %v5280_v31 = vpop.permute.xlu0 %5279  ;;  %5511 = vmatprep.subr.mxu0 %v4747_v43 }
 0x765   :  { %v5292_v12 = vsel %vm883_vm0, %v8901_v54, %v5280_v31  ;;  %5512 = vmatpush1.msra.mxu0 %v4746_v42 }
 0x766   :  { %v5850_v41 = vpop.permute.xlu1 %5849  ;;  %5513 = vmatprep.subr.mxu0 %v4742_v40 }
 0x767   :  { %v5852_v17 = vunpack.i.h.bf16 %v5850_v41  ;;  %v5851_v49 = vunpack.i.l.bf16 %v5850_v41  ;;  %5514 = vmatpush1.msra.mxu0 %v4741_v4 }
 0x768   :  { %v5268_v22 = vpop.permute.xlu0 %5267  ;;  %5515 = vmatprep.subr.mxu0 %v8649_v14 }
 0x769   :  { %v4743_v39 = vsel %vm9227_vm10, %v4724_v11, %v5852_v17  ;;  %v4748_v21 = vsel %vm9228_vm11, %v4736_v10, %v5851_v49  ;;  %v5287_v15 = vsel %vm883_vm0, %v8886_v30, %v5268_v22  ;;  %5516 = vmatpush1.msra.mxu0 %v5322_v2 }
 0x76a   :  { %4763 = vst [vmem:[#allocation2 + $0x70] sm:$0xff] %v4743_v39  ;;  %4768 = vst [vmem:[#allocation2 + $0x98] sm:$0xff] %v4748_v21  ;;  %v5282_v54 = vpop.permute.xlu1 %5281  ;;  %5517 = vmatprep.subr.mxu0 %v8632_v53  ;;  %5583 = vmatpush1.msra.mxu1 %v4748_v21 }
 0x76b   :  { %v5293_v34 = vsel %vm883_vm0, %v5280_v31, %v5282_v54  ;;  %5518 = vmatpush1.msra.mxu0 %v5317_v48  ;;  %5584 = vmatprep.subr.mxu1 %v8801_v58 }
 0x76c   :  { %v5284_v14 = vpop.permute.xlu0 %5283  ;;  %5547 = vmatprep.subr.mxu0 %v5293_v34  ;;  %5585 = vmatpush1.msra.mxu1 %v4743_v39 }
 0x76d   :  { %v5294_v8 = vsel %vm883_vm0, %v5282_v54, %v5284_v14  ;;  %5548 = vmatpush2.msra.mxu0 %v5292_v12  ;;  %5586 = vmatprep.subr.mxu1 %v8801_v58 }
 0x76e   :  { %5314 = vst [vmem:[#allocation2 + $0x2c8] sm:$0xff] %v5294_v8  ;;  %v5270_v30 = vpop.permute.xlu1 %5269  ;;  %5587 = vmatpush1.msra.mxu1 %v8700_v59 }
 0x76f   :  { %v5288_v53 = vsel %vm883_vm0, %v5268_v22, %v5270_v30  ;;  %5588 = vmatprep.subr.mxu1 %v8801_v58 }
 0x770   :  { %5549 = vmatprep.subr.mxu0 %v5288_v53  ;;  %5589 = vmatpush1.msra.mxu1 %v8692_v25 }
 0x771   :  { %5550 = vmatpush2.msra.mxu0 %v5287_v15  ;;  %5618 = vmatprep.subr.mxu1 %v8801_v58 }
 0x772   :  { %v5272_v3 = vpop.permute.xlu1 %5271  ;;  %5552 = vmatmul.mubr.f32.vlgmr.msra.gmra.mxu0 %v8923_v51  ;;  %5619 = vmatpush2.msra.mxu1 %v5294_v8 }
 0x773   :  { %v5289_v13 = vsel %vm883_vm0, %v5270_v30, %v5272_v3  ;;  %5620 = vmatprep.subr.mxu1 %v8801_v58 }
 0x774   :  { %5309 = vst [vmem:[#allocation2 + $0x2a0] sm:$0xff] %v5289_v13  ;;  %5621 = vmatpush2.msra.mxu1 %v5289_v13 }
 0x775   :  { %5623 = vmatmul.mubr.f32.vlgmr.msra.gmra.mxu1 %v8923_v51 }
 0x779   :  { %v5411_v59 = vpop.permute.xlu0 %5410 }
 0x7fa   :  { %v5482_v6 = vpop.f32.mrf.mxu1 }
 0x7fb   :  { %v5483_v50 = vadd.f32 %v5482_v6, %v5411_v59 }
 0x7fc   :  { %v5484_v33 = vpop.f32.mrf.mxu1 }
 0x7fd   :  { %5628 = vst [vmem:[%s9099_s9] sm:$0xff] %v5483_v50  ;;  %v5633_v25 = vadd.f32 4.0, %v5483_v50  ;;  %v5485_v24 = vadd.f32 %v5484_v33, %v5411_v59 }
 0x7ff   :  { %v5638_v47 = vmax.f32 %v5633_v25, 0.0  ;;  %5629 = vst [vmem:[%s9099_s9 + $0x8] sm:$0xff] %v5485_v24  ;;  %v5634_v58 = vadd.f32 4.0, %v5485_v24 }
 0x801   :  { %v5643_v35 = vmin.f32 %v5638_v47, 8.0  ;;  %v5639_v32 = vmax.f32 %v5634_v58, 0.0 }
 0x803   :  { %v5648_v37 = vmul.f32 0.125, %v5643_v35  ;;  %v5644_v51 = vmin.f32 %v5639_v32, 8.0 }
 0x805   :  { %5653 = vst [vmem:[%s9100_s10] sm:$0xff] %v5648_v37  ;;  %v5649_v55 = vmul.f32 0.125, %v5644_v51 }
 0x807   :  { %5654 = vst [vmem:[%s9100_s10 + $0x8] sm:$0xff] %v5649_v55 }
 0x832   :  { %v5553_v61 = vpop.f32.mrf.mxu0 }
 0x833   :  { %v5554_v60 = vadd.f32 %v5553_v61, %v5411_v59 }
 0x834   :  { %v5555_v36 = vpop.f32.mrf.mxu0 }
 0x835   :  { %5630 = vst [vmem:[%s9099_s9 + $0x10] sm:$0xff] %v5554_v60  ;;  %v5635_v19 = vadd.f32 4.0, %v5554_v60  ;;  %v5556_v27 = vadd.f32 %v5555_v36, %v5411_v59  ;;  %v5624_v52 = vpop.f32.mrf.mxu1 }
 0x836   :  { %v5625_v56 = vadd.f32 %v5624_v52, %v5411_v59 }
 0x837   :  { %v5640_v28 = vmax.f32 %v5635_v19, 0.0  ;;  %5631 = vst [vmem:[%s9099_s9 + $0x18] sm:$0xff] %v5556_v27  ;;  %v5636_v29 = vadd.f32 4.0, %v5556_v27  ;;  %v5626_v5 = vpop.f32.mrf.mxu1 }
 0x838   :  { %5632 = vst [vmem:[%s9099_s9 + $0x20] sm:$0xff] %v5625_v56  ;;  %v5637_v16 = vadd.f32 4.0, %v5625_v56 }
 0x839   :  { %v5645_v18 = vmin.f32 %v5640_v28, 8.0  ;;  %v5641_v1 = vmax.f32 %v5636_v29, 0.0 }
 0x83a   :  { %v5642_v46 = vmax.f32 %v5637_v16, 0.0 }
 0x83b   :  { %v5650_v9 = vmul.f32 0.125, %v5645_v18  ;;  %v5646_v45 = vmin.f32 %v5641_v1, 8.0 }
 0x83c   :  { %v5647_v57 = vmin.f32 %v5642_v46, 8.0 }
 0x83d   :  { %5655 = vst [vmem:[%s9100_s10 + $0x10] sm:$0xff] %v5650_v9  ;;  %v5651_v26 = vmul.f32 0.125, %v5646_v45 }
 0x83e   :  { %v5652_v0 = vmul.f32 0.125, %v5647_v57 }
 0x83f   :  { %5656 = vst [vmem:[%s9100_s10 + $0x18] sm:$0xff] %v5651_v26 }
 0x840   :  { %5657 = vst [vmem:[%s9100_s10 + $0x20] sm:$0xff] %v5652_v0 }

</bundles_post_ra>
